<compile_context>
chip_gen: v7x
topology: tpu7x:2x2x1
jax: 0.10.0
libtpu: 0.0.40
codegen_flags: <defaults>
</compile_context>

<pallas_src>
import math

import jax
import jax.numpy as jnp
from jax import lax
from jax.experimental import pallas as pl
from jax.experimental.pallas import tpu as pltpu


def _round_up(x, m):
    return (x + m - 1) // m * m


# ---------------------------------------------------------------------------
# Pallas kernel: the entire forward as three chained MXU matmuls.
# ---------------------------------------------------------------------------
def fused_forward_kernel(x_ref, wt_ref, bt_ref, we_ref, be_ref, wd_ref, bd_ref,
                         o_ref):
    """o = (relu(x @ Wt + bt) @ We + be) @ Wd + bd

    x_ref : (TB, K0)   flattened NCHW input tile (K0 = Cin*H*W)
    wt_ref: (K0, F)    conv as dense Toeplitz matrix (F = Ho*Wo*Cout)
    bt_ref: (1, F)     conv bias broadcast over spatial positions
    we_ref: (F, L)     emb weight, input axis permuted to (Ho, Wo, Cout) order
    be_ref: (1, L)
    wd_ref: (L, Op)    dec weight, output dim zero-padded to a lane multiple
    bd_ref: (1, Op)
    o_ref : (TB, Op)
    """
    feat = jnp.dot(x_ref[...], wt_ref[...], preferred_element_type=jnp.float32)
    feat = jnp.maximum(feat + bt_ref[...], 0.0)                    # conv + ReLU
    z = jnp.dot(feat, we_ref[...], preferred_element_type=jnp.float32)
    z = z + be_ref[...]                                            # emb
    y = jnp.dot(z, wd_ref[...], preferred_element_type=jnp.float32)
    o_ref[...] = y + bd_ref[...]                                   # dec


# ---------------------------------------------------------------------------
# Parameter setup (PyTorch layouts) + one-time re-layout for the fused kernel
# ---------------------------------------------------------------------------
def num_sindy_terms(dim, poly_order):
    """Number of SINDy library terms: monomials of degree 0..poly_order."""
    return sum(math.comb(order + dim - 1, dim - 1)
               for order in range(poly_order + 1))


def init_params(key, in_shape=(2, 16, 16), kernel_size=5, kernel_features=16,
                latent_dim=64, poly_order=3):
    """Deterministic synthetic parameters (shapes match the PyTorch module)."""
    dim, num_lattice = in_shape[0], in_shape[1]
    cin, cout, k = dim, kernel_features, kernel_size
    ho = num_lattice - k + 1                      # VALID conv, stride 1
    out_size = cout * ho * ho                     # flattened CNN output
    out_dim = dim * num_sindy_terms(dim, poly_order)

    ks = jax.random.split(key, 6)
    return {
        # torch Conv2d weight layout: (Cout, Cin, KH, KW)
        "w_conv": jax.random.normal(ks[0], (cout, cin, k, k), jnp.float32)
                  / math.sqrt(cin * k * k),
        "b_conv": jax.random.normal(ks[1], (cout,), jnp.float32) * 0.1,
        # torch Linear weight layout: (out_features, in_features)
        "w_emb": jax.random.normal(ks[2], (latent_dim, out_size), jnp.float32)
                 / math.sqrt(out_size),
        "b_emb": jax.random.normal(ks[3], (latent_dim,), jnp.float32) * 0.1,
        "w_dec": jax.random.normal(ks[4], (out_dim, latent_dim), jnp.float32)
                 / math.sqrt(latent_dim),
        "b_dec": jax.random.normal(ks[5], (out_dim,), jnp.float32) * 0.1,
    }


def prepare_pallas_params(params, in_shape, lane=128):
    """One-time re-layout of PyTorch-style params for the fused Pallas kernel."""
    cin, h, w = in_shape
    w_conv, b_conv = params["w_conv"], params["b_conv"]
    w_emb, b_emb = params["w_emb"], params["b_emb"]
    w_dec, b_dec = params["w_dec"], params["b_dec"]

    cout, _, kh, kw = w_conv.shape
    ho, wo = h - kh + 1, w - kw + 1
    latent = w_emb.shape[0]
    out_dim = w_dec.shape[0]

    # ---- conv -> dense Toeplitz matrix -----------------------------------
    # W_t[(ci, r, s), (pi, pj, co)] = w_conv[co, ci, r - pi, s - pj] (masked)
    dr = jnp.arange(h)[:, None] - jnp.arange(ho)[None, :]          # (H, Ho)
    ds = jnp.arange(w)[:, None] - jnp.arange(wo)[None, :]          # (W, Wo)
    valid = (((dr >= 0) & (dr < kh))[:, None, :, None]
             & ((ds >= 0) & (ds < kw))[None, :, None, :])          # (H,W,Ho,Wo)
    dr_c = jnp.clip(dr, 0, kh - 1)[:, None, :, None]               # (H,1,Ho,1)
    ds_c = jnp.clip(ds, 0, kw - 1)[None, :, None, :]               # (1,W,1,Wo)
    gathered = w_conv[:, :, dr_c, ds_c]                # (Cout,Cin,H,W,Ho,Wo)
    toep = jnp.where(valid[None, None], gathered, 0.0)
    w_toep = (toep.transpose(1, 2, 3, 4, 5, 0)         # (Cin,H,W,Ho,Wo,Cout)
              .reshape(cin * h * w, ho * wo * cout))
    b_toep = jnp.broadcast_to(b_conv, (ho * wo, cout)).reshape(1, -1)

    # ---- emb: permute in_features (Cout,Ho,Wo) -> (Ho,Wo,Cout), transpose --
    w_emb_p = (w_emb.reshape(latent, cout, ho, wo)
               .transpose(2, 3, 1, 0)
               .reshape(ho * wo * cout, latent))

    # ---- dec: transpose + zero-pad the output dim to a lane multiple ------
    out_pad = _round_up(out_dim, lane)
    w_dec_p = jnp.zeros((latent, out_pad), w_dec.dtype).at[:, :out_dim].set(w_dec.T)
    b_dec_p = jnp.zeros((1, out_pad), b_dec.dtype).at[0, :out_dim].set(b_dec)

    meta = dict(cin=cin, h=h, w=w, cout=cout, ho=ho, wo=wo,
                latent=latent, out_dim=out_dim, out_pad=out_pad)
    return {"w_toep": w_toep, "b_toep": b_toep,
            "w_emb": w_emb_p, "b_emb": b_emb.reshape(1, latent),
            "w_dec": w_dec_p, "b_dec": b_dec_p, "meta": meta}


# ---------------------------------------------------------------------------
# Forward (single fused pallas_call, gridded over the batch)
# ---------------------------------------------------------------------------
def cnn_wfc_exp_emb_forward(x, pparams, *, block_batch=None):
    meta = pparams["meta"]
    n = x.shape[0]
    k0 = meta["cin"] * meta["h"] * meta["w"]                 # 512
    feat_dim = meta["ho"] * meta["wo"] * meta["cout"]        # 2304
    latent, out_pad, out_dim = meta["latent"], meta["out_pad"], meta["out_dim"]

    if block_batch is None:
        block_batch = min(128, _round_up(n, 8))              # sublane-aligned
    tb = block_batch
    n_pad = _round_up(n, tb)

    x_flat = x.reshape(n, k0).astype(jnp.float32)
    if n_pad != n:
        x_flat = jnp.pad(x_flat, ((0, n_pad - n), (0, 0)))

    const = lambda i: (0, 0)   # weights: same block every step -> VMEM-resident

    out = pl.pallas_call(
        fused_forward_kernel,
        out_shape=jax.ShapeDtypeStruct((n_pad, out_pad), jnp.float32),
        grid=(n_pad // tb,),
        in_specs=[
            pl.BlockSpec((tb, k0), lambda i: (i, 0)),        # x tile
            pl.BlockSpec((k0, feat_dim), const),             # conv Toeplitz
            pl.BlockSpec((1, feat_dim), const),              # conv bias
            pl.BlockSpec((feat_dim, latent), const),         # emb weight
            pl.BlockSpec((1, latent), const),                # emb bias
            pl.BlockSpec((latent, out_pad), const),          # dec weight
            pl.BlockSpec((1, out_pad), const),               # dec bias
        ],
        out_specs=pl.BlockSpec((tb, out_pad), lambda i: (i, 0)),
        compiler_params=pltpu.CompilerParams(
            dimension_semantics=("parallel",)),              # megacore on v7x
    )(x_flat, pparams["w_toep"], pparams["b_toep"],
      pparams["w_emb"], pparams["b_emb"],
      pparams["w_dec"], pparams["b_dec"])

    return out[:n, :out_dim]


# ---------------------------------------------------------------------------
# Pure-JAX reference (mirrors the PyTorch forward exactly)
# ---------------------------------------------------------------------------
def reference_forward(x, params):
    conv = lax.conv_general_dilated(
        x, params["w_conv"], window_strides=(1, 1), padding="VALID",
        dimension_numbers=("NCHW", "OIHW", "NCHW"),
        precision=lax.Precision.HIGHEST)
    conv = jnp.maximum(conv + params["b_conv"][None, :, None, None], 0.0)
    flat = conv.reshape(conv.shape[0], -1)
    z = jnp.matmul(flat, params["w_emb"].T,
                   precision=lax.Precision.HIGHEST) + params["b_emb"]
    return jnp.matmul(z, params["w_dec"].T,
                      precision=lax.Precision.HIGHEST) + params["b_dec"]


if __name__ == "__main__":
    key = jax.random.PRNGKey(0)
    pkey, xkey = jax.random.split(key)

    # in_shape = (dim, num_lattice, num_lattice): dim=2 field on 16x16 lattice.
    in_shape = (2, 16, 16)
    batch = 2

    params = init_params(pkey, in_shape=in_shape, kernel_size=5,
                         kernel_features=16, latent_dim=64, poly_order=3)
    pparams = prepare_pallas_params(params, in_shape)   # one-time re-layout

    x = jax.random.uniform(xkey, (batch,) + in_shape, dtype=jnp.float32)

    out = cnn_wfc_exp_emb_forward(x, pparams)
    out = jax.block_until_ready(out)

    ref = reference_forward(x, params)
    expected_out_dim = in_shape[0] * num_sindy_terms(in_shape[0], 3)  # 2*10=20
    assert out.shape == (batch, expected_out_dim), out.shape
    max_err = float(jnp.max(jnp.abs(out - ref)))
    assert jnp.allclose(out, ref, rtol=2e-2, atol=2e-2), max_err

    print("KERNEL_OK")
</pallas_src>

<mosaic_0001>
module attributes {stable_mosaic.version = 11 : i64} {
  func.func @fused_forward_kernel(%arg0: i32, %arg1: memref<8x512xf32, #tpu.memory_space<vmem>>, %arg2: memref<512x2304xf32, #tpu.memory_space<vmem>>, %arg3: memref<1x2304xf32, #tpu.memory_space<vmem>>, %arg4: memref<2304x64xf32, #tpu.memory_space<vmem>>, %arg5: memref<1x64xf32, #tpu.memory_space<vmem>>, %arg6: memref<64x128xf32, #tpu.memory_space<vmem>>, %arg7: memref<1x128xf32, #tpu.memory_space<vmem>>, %arg8: memref<8x128xf32, #tpu.memory_space<vmem>>) attributes {dimension_semantics = [#tpu.dimension_semantics<parallel>], iteration_bounds = array<i64: 1>, scalar_prefetch = 0 : i64, scratch_operands = 0 : i64, tpu.core_type = #tpu.core_type<tc>, window_params = [{transform_indices = @transform_0, window_bounds = array<i64: 8, 512>}, {pipeline_mode = #tpu.pipeline_mode<synchronous>, transform_indices = @transform_1, window_bounds = array<i64: 512, 2304>}, {pipeline_mode = #tpu.pipeline_mode<synchronous>, transform_indices = @transform_2, window_bounds = array<i64: 1, 2304>}, {pipeline_mode = #tpu.pipeline_mode<synchronous>, transform_indices = @transform_3, window_bounds = array<i64: 2304, 64>}, {pipeline_mode = #tpu.pipeline_mode<synchronous>, transform_indices = @transform_4, window_bounds = array<i64: 1, 64>}, {pipeline_mode = #tpu.pipeline_mode<synchronous>, transform_indices = @transform_5, window_bounds = array<i64: 64, 128>}, {pipeline_mode = #tpu.pipeline_mode<synchronous>, transform_indices = @transform_6, window_bounds = array<i64: 1, 128>}, {transform_indices = @transform_7, window_bounds = array<i64: 8, 128>}]} {
    %c0 = arith.constant 0 : index
    %c0_0 = arith.constant 0 : index
    %0 = vector.load %arg1[%c0, %c0_0] : memref<8x512xf32, #tpu.memory_space<vmem>>, vector<8x512xf32>
    %c0_1 = arith.constant 0 : index
    %c0_2 = arith.constant 0 : index
    %1 = vector.load %arg2[%c0_1, %c0_2] : memref<512x2304xf32, #tpu.memory_space<vmem>>, vector<512x2304xf32>
    %cst = arith.constant dense<0.000000e+00> : vector<8x2304xf32>
    %2 = tpu.matmul %0, %1, %cst {dimension_numbers = #tpu.dot_dimension_numbers<[1], [0], [0], [1], [0, 0, 1, 1], [], []>} : vector<8x512xf32>, vector<512x2304xf32>, vector<8x2304xf32> -> vector<8x2304xf32>
    %c0_3 = arith.constant 0 : index
    %c0_4 = arith.constant 0 : index
    %3 = vector.load %arg3[%c0_3, %c0_4] : memref<1x2304xf32, #tpu.memory_space<vmem>>, vector<1x2304xf32>
    %4 = vector.broadcast %3 : vector<1x2304xf32> to vector<8x2304xf32>
    %5 = arith.addf %2, %4 : vector<8x2304xf32>
    %cst_5 = arith.constant 0.000000e+00 : f32
    %6 = vector.broadcast %cst_5 : f32 to vector<8x2304xf32>
    %7 = arith.maximumf %5, %6 : vector<8x2304xf32>
    %c0_6 = arith.constant 0 : index
    %c0_7 = arith.constant 0 : index
    %8 = vector.load %arg4[%c0_6, %c0_7] : memref<2304x64xf32, #tpu.memory_space<vmem>>, vector<2304x64xf32>
    %cst_8 = arith.constant dense<0.000000e+00> : vector<8x64xf32>
    %9 = tpu.matmul %7, %8, %cst_8 {dimension_numbers = #tpu.dot_dimension_numbers<[1], [0], [0], [1], [0, 0, 1, 1], [], []>} : vector<8x2304xf32>, vector<2304x64xf32>, vector<8x64xf32> -> vector<8x64xf32>
    %c0_9 = arith.constant 0 : index
    %c0_10 = arith.constant 0 : index
    %10 = vector.load %arg5[%c0_9, %c0_10] : memref<1x64xf32, #tpu.memory_space<vmem>>, vector<1x64xf32>
    %11 = vector.broadcast %10 : vector<1x64xf32> to vector<8x64xf32>
    %12 = arith.addf %9, %11 : vector<8x64xf32>
    %c0_11 = arith.constant 0 : index
    %c0_12 = arith.constant 0 : index
    %13 = vector.load %arg6[%c0_11, %c0_12] : memref<64x128xf32, #tpu.memory_space<vmem>>, vector<64x128xf32>
    %cst_13 = arith.constant dense<0.000000e+00> : vector<8x128xf32>
    %14 = tpu.matmul %12, %13, %cst_13 {dimension_numbers = #tpu.dot_dimension_numbers<[1], [0], [0], [1], [0, 0, 1, 1], [], []>} : vector<8x64xf32>, vector<64x128xf32>, vector<8x128xf32> -> vector<8x128xf32>
    %c0_14 = arith.constant 0 : index
    %c0_15 = arith.constant 0 : index
    %15 = vector.load %arg7[%c0_14, %c0_15] : memref<1x128xf32, #tpu.memory_space<vmem>>, vector<1x128xf32>
    %16 = vector.broadcast %15 : vector<1x128xf32> to vector<8x128xf32>
    %17 = arith.addf %14, %16 : vector<8x128xf32>
    %c0_16 = arith.constant 0 : index
    %c0_17 = arith.constant 0 : index
    %18 = vector.load %arg8[%c0_16, %c0_17] : memref<8x128xf32, #tpu.memory_space<vmem>>, vector<8x128xf32>
    tpu.vector_store %arg8[%c0_16, %c0_17], %17 {strides = array<i32>} : memref<8x128xf32, #tpu.memory_space<vmem>>, vector<8x128xf32>,
    return
  }
  func.func @transform_0(%arg0: i32) -> (i32, i32) {
    %c0_i32 = arith.constant 0 : i32
    %c0_i32_0 = arith.constant 0 : i32
    return %arg0, %c0_i32 : i32, i32
  }
  func.func @transform_1(%arg0: i32) -> (i32, i32) {
    %c0_i32 = arith.constant 0 : i32
    %c0_i32_0 = arith.constant 0 : i32
    %c0_i32_1 = arith.constant 0 : i32
    return %c0_i32, %c0_i32_0 : i32, i32
  }
  func.func @transform_2(%arg0: i32) -> (i32, i32) {
    %c0_i32 = arith.constant 0 : i32
    %c0_i32_0 = arith.constant 0 : i32
    %c0_i32_1 = arith.constant 0 : i32
    return %c0_i32, %c0_i32_0 : i32, i32
  }
  func.func @transform_3(%arg0: i32) -> (i32, i32) {
    %c0_i32 = arith.constant 0 : i32
    %c0_i32_0 = arith.constant 0 : i32
    %c0_i32_1 = arith.constant 0 : i32
    return %c0_i32, %c0_i32_0 : i32, i32
  }
  func.func @transform_4(%arg0: i32) -> (i32, i32) {
    %c0_i32 = arith.constant 0 : i32
    %c0_i32_0 = arith.constant 0 : i32
    %c0_i32_1 = arith.constant 0 : i32
    return %c0_i32, %c0_i32_0 : i32, i32
  }
  func.func @transform_5(%arg0: i32) -> (i32, i32) {
    %c0_i32 = arith.constant 0 : i32
    %c0_i32_0 = arith.constant 0 : i32
    %c0_i32_1 = arith.constant 0 : i32
    return %c0_i32, %c0_i32_0 : i32, i32
  }
  func.func @transform_6(%arg0: i32) -> (i32, i32) {
    %c0_i32 = arith.constant 0 : i32
    %c0_i32_0 = arith.constant 0 : i32
    %c0_i32_1 = arith.constant 0 : i32
    return %c0_i32, %c0_i32_0 : i32, i32
  }
  func.func @transform_7(%arg0: i32) -> (i32, i32) {
    %c0_i32 = arith.constant 0 : i32
    %c0_i32_0 = arith.constant 0 : i32
    return %arg0, %c0_i32 : i32, i32
  }
}

</mosaic_0001>

<bundles_post_ra>
// kernel: tpu_custom_call.1
= control target key start
LH: loop header
LB: loop body
LE: loop exit
PB: predicated region body
PF: predicated region fallthrough
CT: control target
= control target key end

     0   :  { %12 = vsyncpa [#allocation3], 0  ;;  %s6822_s0 = inlined_call_operand.hbm [shape: f32[8,512], index: 0, kind: input, shape index: {}]   ;;  %s6823_s1 = inlined_call_operand.hbm [shape: f32[512,2304], index: 1, kind: input, shape index: {}]   ;;  %s6824_s2 = inlined_call_operand.hbm [shape: f32[1,2304], index: 2, kind: input, shape index: {}]   ;;  %s6825_s3 = inlined_call_operand.vmem [shape: f32[2304,64], index: 3, kind: input, shape index: {}]   ;;  %s6826_s4 = inlined_call_operand.hbm [shape: f32[1,64], index: 4, kind: input, shape index: {}]   ;;  %s6827_s5 = inlined_call_operand.hbm [shape: f32[64,128], index: 5, kind: input, shape index: {}]   ;;  %s6828_s6 = inlined_call_operand.hbm [shape: f32[1,128], index: 6, kind: input, shape index: {}]   ;;  %s6829_s7 = inlined_call_operand.hbm [shape: f32[8,128], index: 7, kind: output, shape index: {}]  }
   0x1   :  { %13 = vsyncpa [#allocation6], 0 }
   0x2   :  { %14 = vsyncpa [#allocation9], 0 }
   0x3   :  { %15 = vsyncpa [#allocation12], 0 }
   0x4   :  { %16 = vsyncpa [#allocation4], 0  ;;  %s5709_s24 = smov [#allocation5]   ;;  %s5545_s28 = scalar_lea.hbm %s6823_s1, 147456 }
   0x5   :  { %s32_s25 = sshll.u32 %s5709_s24, 4  ;;  %p5546_p0 = scmp.ne.s32.totalorder %s6823_s1, %s5545_s28  ;;  %s33_s25 = int_to_ptr.vmem [resolvable:$true] %s32_s25 }
   0x6   :  { %p5549_p1 = scmp.lt.u32.totalorder %s5545_s28, %s6823_s1 }
   0x8   :  { %p5551_p2 = pnand %p5549_p1, %p5546_p0 }
   0xa   :  { %5554 = shalt.err (!%p5551_p2)
}
   0xb   :  { %s5555_s10 = scalar_lea.vmem %s33_s25, 147456  ;;  %p5560_p4 = scmp.lt.s32.totalorder %s33_s25, %s33_s25 }
   0xc   :  { %p5556_p3 = scmp.ne.s32.totalorder %s33_s25, %s5555_s10  ;;  %p5561_p5 = scmp.lt.s32.totalorder %s5555_s10, %s5555_s10 }
   0xe   :  { %p5562_p6 = por %p5561_p5, %p5560_p4 }
  0x10   :  { %p5563_p7 = pnand %p5562_p6, %p5556_p3 }
  0x12   :  { %5566 = shalt.err (!%p5563_p7)
}
  0x13   :  { %s5710_s11 = smov 2304   ;;  %s5711_s12 = smov 144  }
  0x14   :  { %38 = dma.hbm_to_vmem [thread:$0]  %s6823_s1, 147456, %s33_s25, [#allocation6], %s5710_s11, %s5710_s11, %s5711_s12  }
  0x15   :  { %s5712_s15 = smov [#allocation8]   ;;  %s5713_s17 = smov [#allocation2]  }
  0x16   :  { %s57_s16 = sshll.u32 %s5712_s15, 4  ;;  %s23_s18 = sshll.u32 %s5713_s17, 4  ;;  %s58_s16 = int_to_ptr.vmem [resolvable:$true] %s57_s16  ;;  %s24_s18 = int_to_ptr.vmem [resolvable:$true] %s23_s18 }
  0x17   :  { %s5567_s21 = scalar_lea.hbm %s6826_s4, 16 }
  0x18   :  { %p5568_p8 = scmp.ne.s32.totalorder %s6826_s4, %s5567_s21  ;;  %p5571_p9 = scmp.lt.u32.totalorder %s5567_s21, %s6826_s4 }
  0x1a   :  { %p5573_p10 = pnand %p5571_p9, %p5568_p8 }
  0x1c   :  { %5576 = shalt.err (!%p5573_p10)
}
  0x1d   :  { %s5577_s1 = scalar_lea.vmem %s58_s16, 16  ;;  %s5581_s25 = scalar_lea.vmem %s58_s16, 32 }
  0x1e   :  { %p5578_p11 = scmp.ne.s32.totalorder %s58_s16, %s5577_s1  ;;  %p5582_p12 = scmp.lt.s32.totalorder %s58_s16, %s58_s16 }
  0x1f   :  { %p5583_p13 = scmp.lt.s32.totalorder %s5581_s25, %s5577_s1 }
  0x21   :  { %p5584_p0 = por %p5583_p13, %p5582_p12 }
  0x23   :  { %p5585_p1 = pnand %p5584_p0, %p5578_p11 }
  0x25   :  { %5588 = shalt.err (!%p5585_p1)
}
  0x26   :  { %60 = dma.hbm_to_vmem [thread:$0]  %s6826_s4, 16, %s58_s16, [#allocation9]  }
  0x27   :  { %s5589_s8 = scalar_lea.hbm %s6822_s0, 512 }
  0x28   :  { %p5590_p2 = scmp.ne.s32.totalorder %s6822_s0, %s5589_s8  ;;  %p5593_p3 = scmp.lt.u32.totalorder %s5589_s8, %s6822_s0 }
  0x2a   :  { %p5595_p4 = pnand %p5593_p3, %p5590_p2 }
  0x2c   :  { %5598 = shalt.err (!%p5595_p4)
}
  0x2d   :  { %s5599_s13 = scalar_lea.vmem %s24_s18, 512  ;;  %p5604_p6 = scmp.lt.s32.totalorder %s24_s18, %s24_s18 }
  0x2e   :  { %p5600_p5 = scmp.ne.s32.totalorder %s24_s18, %s5599_s13  ;;  %p5605_p7 = scmp.lt.s32.totalorder %s5599_s13, %s5599_s13 }
  0x30   :  { %p5606_p8 = por %p5605_p7, %p5604_p6 }
  0x32   :  { %p5607_p9 = pnand %p5606_p8, %p5600_p5 }
  0x34   :  { %5610 = shalt.err (!%p5607_p9)
}
  0x35   :  { %26 = dma.hbm_to_vmem [thread:$0]  %s6822_s0, 512, %s24_s18, [#allocation3]  }
  0x36   :  { %s5714_s15 = smov [#allocation7]   ;;  %s5715_s17 = smov [#allocation10]  }
  0x37   :  { %s45_s16 = sshll.u32 %s5714_s15, 4  ;;  %s66_s19 = sshll.u32 %s5715_s17, 4  ;;  %s46_s16 = int_to_ptr.vmem [resolvable:$true] %s45_s16  ;;  %s67_s19 = int_to_ptr.vmem [resolvable:$true] %s66_s19 }
  0x38   :  { %s5611_s22 = scalar_lea.hbm %s6824_s2, 288 }
  0x39   :  { %p5612_p10 = scmp.ne.s32.totalorder %s6824_s2, %s5611_s22  ;;  %p5615_p11 = scmp.lt.u32.totalorder %s5611_s22, %s6824_s2 }
  0x3b   :  { %p5617_p12 = pnand %p5615_p11, %p5612_p10 }
  0x3d   :  { %5620 = shalt.err (!%p5617_p12)
}
  0x3e   :  { %s5621_s0 = scalar_lea.vmem %s46_s16, 288  ;;  %p5626_p0 = scmp.lt.s32.totalorder %s46_s16, %s46_s16 }
  0x3f   :  { %p5622_p13 = scmp.ne.s32.totalorder %s46_s16, %s5621_s0  ;;  %p5627_p1 = scmp.lt.s32.totalorder %s5621_s0, %s5621_s0 }
  0x41   :  { %p5628_p2 = por %p5627_p1, %p5626_p0 }
  0x43   :  { %p5629_p3 = pnand %p5628_p2, %p5622_p13 }
  0x45   :  { %5632 = shalt.err (!%p5629_p3)
}
  0x46   :  { %48 = dma.hbm_to_vmem [thread:$0]  %s6824_s2, 288, %s46_s16, [#allocation6]  }
  0x47   :  { %s5633_s29 = scalar_lea.hbm %s6827_s5, 1024 }
  0x48   :  { %p5634_p4 = scmp.ne.s32.totalorder %s6827_s5, %s5633_s29  ;;  %p5637_p5 = scmp.lt.u32.totalorder %s5633_s29, %s6827_s5 }
  0x4a   :  { %p5639_p6 = pnand %p5637_p5, %p5634_p4 }
  0x4c   :  { %5642 = shalt.err (!%p5639_p6)
}
  0x4d   :  { %s5643_s11 = scalar_lea.vmem %s67_s19, 1024  ;;  %p5648_p8 = scmp.lt.s32.totalorder %s67_s19, %s67_s19 }
  0x4e   :  { %p5644_p7 = scmp.ne.s32.totalorder %s67_s19, %s5643_s11  ;;  %p5649_p9 = scmp.lt.s32.totalorder %s5643_s11, %s5643_s11 }
  0x50   :  { %p5650_p10 = por %p5649_p9, %p5648_p8 }
  0x52   :  { %p5651_p11 = pnand %p5650_p10, %p5644_p7 }
  0x54   :  { %5654 = shalt.err (!%p5651_p11)
}
  0x55   :  { %s5716_s2 = smov 128   ;;  %s5717_s12 = smov 8  }
  0x56   :  { %72 = dma.hbm_to_vmem [thread:$0]  %s6827_s5, 1024, %s67_s19, [#allocation9], %s5716_s2, %s5716_s2, %s5717_s12  }
  0x57   :  { %s5718_s14 = smov [#allocation11]   ;;  %s5655_s20 = scalar_lea.hbm %s6828_s6, 16 }
  0x58   :  { %s79_s15 = sshll.u32 %s5718_s14, 4  ;;  %p5656_p12 = scmp.ne.s32.totalorder %s6828_s6, %s5655_s20  ;;  %s80_s15 = int_to_ptr.vmem [resolvable:$true] %s79_s15 }
  0x59   :  { %p5659_p13 = scmp.lt.u32.totalorder %s5655_s20, %s6828_s6 }
  0x5b   :  { %p5661_p0 = pnand %p5659_p13, %p5656_p12 }
  0x5d   :  { %5664 = shalt.err (!%p5661_p0)
}
  0x5e   :  { %s5665_s26 = scalar_lea.vmem %s80_s15, 16  ;;  %s5669_s5 = scalar_lea.vmem %s80_s15, 32 }
  0x5f   :  { %p5666_p1 = scmp.ne.s32.totalorder %s80_s15, %s5665_s26  ;;  %p5670_p2 = scmp.lt.s32.totalorder %s80_s15, %s80_s15 }
  0x60   :  { %p5671_p3 = scmp.lt.s32.totalorder %s5669_s5, %s5665_s26 }
  0x62   :  { %p5672_p4 = por %p5671_p3, %p5670_p2 }
  0x64   :  { %p5673_p5 = pnand %p5672_p4, %p5666_p1 }
  0x66   :  { %5676 = shalt.err (!%p5673_p5)
}
  0x67   :  { %82 = dma.hbm_to_vmem [thread:$0]  %s6828_s6, 16, %s80_s15, [#allocation12]  }
  0x68   :  { %5699 = dma.done.wait [#allocation3], 512  }
  0x69   :  { %5700 = vsyncadd [#allocation3], 4294966784 }
  0x6a   :  { %5701 = dma.done.wait [#allocation6], 147744  }
  0x6b   :  { %5702 = vsyncadd [#allocation6], 4294819552 }
  0x6c   :  { %5703 = dma.done.wait [#allocation9], 1040  }
  0x6d   :  { %5704 = vsyncadd [#allocation9], 4294966256 }
  0x6e   :  { %5705 = dma.done.wait [#allocation12], 16  }
  0x6f   :  { %5706 = vsyncadd [#allocation12], 4294967280  ;;  %v106_v0 = vld [vmem:[#allocation5 + $0x8] sm:$0xff]  ;;  %v124_v1 = vld [vmem:[#allocation5 + $0x98] sm:$0xff]  ;;  %vm5720_vm0 = vmmov 0   ;;  %vm3589_vm1 = vcmask 523264  }
  0x70   :  { %v108_v2 = vld [vmem:[#allocation5 + $0x18] sm:$0xff]  ;;  %v4028_v3 = vpack.c.bf16 %v124_v1, %v106_v0  ;;  %v126_v4 = vld [vmem:[#allocation5 + $0xa8] sm:$0xff]  ;;  %v105_v5 = vld [vmem:[#allocation5] sm:$0xff] }
  0x71   :  { %v123_v6 = vld [vmem:[#allocation5 + $0x90] sm:$0xff]  ;;  %v4156_v7 = vpack.c.bf16 %v126_v4, %v108_v2  ;;  %v125_v10 = vld [vmem:[#allocation5 + $0xa0] sm:$0xff]  ;;  %v142_v11 = vld [vmem:[#allocation5 + $0x128] sm:$0xff] }
  0x72   :  { %v4030_v8 = vpack.c.bf16 %v123_v6, %v105_v5  ;;  %v107_v9 = vld [vmem:[#allocation5 + $0x10] sm:$0xff]  ;;  %4029 = vmatprep.subr.bf16.mxu0 %v4028_v3  ;;  %v160_v13 = vld [vmem:[#allocation5 + $0x1b8] sm:$0xff]  ;;  %v162_v15 = vld [vmem:[#allocation5 + $0x1c8] sm:$0xff] }
  0x73   :  { %v4158_v12 = vpack.c.bf16 %v125_v10, %v107_v9  ;;  %v144_v14 = vld [vmem:[#allocation5 + $0x138] sm:$0xff]  ;;  %4157 = vmatprep.subr.bf16.mxu1 %v4156_v7  ;;  %v4032_v16 = vpack.c.bf16 %v160_v13, %v142_v11  ;;  %v141_v18 = vld [vmem:[#allocation5 + $0x120] sm:$0xff]  ;;  %v159_v19 = vld [vmem:[#allocation5 + $0x1b0] sm:$0xff] }
  0x74   :  { %4031 = vmatpush1.bf16.msra.mxu0 %v4030_v8  ;;  %v4160_v17 = vpack.c.bf16 %v162_v15, %v144_v14  ;;  %v143_v20 = vld [vmem:[#allocation5 + $0x130] sm:$0xff]  ;;  %v4034_v21 = vpack.c.bf16 %v159_v19, %v141_v18  ;;  %v161_v22 = vld [vmem:[#allocation5 + $0x1c0] sm:$0xff]  ;;  %v178_v23 = vld [vmem:[#allocation5 + $0x248] sm:$0xff] }
  0x75   :  { %4159 = vmatpush1.bf16.msra.mxu1 %v4158_v12  ;;  %v196_v24 = vld [vmem:[#allocation5 + $0x2d8] sm:$0xff]  ;;  %4033 = vmatprep.subr.bf16.mxu0 %v4032_v16  ;;  %v4162_v25 = vpack.c.bf16 %v161_v22, %v143_v20  ;;  %v198_v28 = vld [vmem:[#allocation5 + $0x2e8] sm:$0xff]  ;;  %v177_v29 = vld [vmem:[#allocation5 + $0x240] sm:$0xff] }
  0x76   :  { %4161 = vmatprep.subr.bf16.mxu1 %v4160_v17  ;;  %v4036_v26 = vpack.c.bf16 %v196_v24, %v178_v23  ;;  %v180_v27 = vld [vmem:[#allocation5 + $0x258] sm:$0xff]  ;;  %v195_v31 = vld [vmem:[#allocation5 + $0x2d0] sm:$0xff]  ;;  %v197_v33 = vld [vmem:[#allocation5 + $0x2e0] sm:$0xff] }
  0x77   :  { %v4164_v30 = vpack.c.bf16 %v198_v28, %v180_v27  ;;  %v179_v32 = vld [vmem:[#allocation5 + $0x250] sm:$0xff]  ;;  %v4038_v34 = vpack.c.bf16 %v195_v31, %v177_v29  ;;  %v214_v35 = vld [vmem:[#allocation5 + $0x368] sm:$0xff]  ;;  %v232_v36 = vld [vmem:[#allocation5 + $0x3f8] sm:$0xff] }
  0x78   :  { %4035 = vmatpush1.bf16.msra.mxu0 %v4034_v21  ;;  %v216_v37 = vld [vmem:[#allocation5 + $0x378] sm:$0xff]  ;;  %v4166_v38 = vpack.c.bf16 %v197_v33, %v179_v32  ;;  %v4040_v39 = vpack.c.bf16 %v232_v36, %v214_v35  ;;  %v234_v40 = vld [vmem:[#allocation5 + $0x408] sm:$0xff]  ;;  %v213_v41 = vld [vmem:[#allocation5 + $0x360] sm:$0xff] }
  0x79   :  { %4163 = vmatpush1.bf16.msra.mxu1 %v4162_v25  ;;  %4037 = vmatprep.subr.bf16.mxu0 %v4036_v26  ;;  %v231_v42 = vld [vmem:[#allocation5 + $0x3f0] sm:$0xff]  ;;  %v4168_v43 = vpack.c.bf16 %v234_v40, %v216_v37  ;;  %v233_v45 = vld [vmem:[#allocation5 + $0x400] sm:$0xff]  ;;  %v250_v46 = vld [vmem:[#allocation5 + $0x488] sm:$0xff] }
  0x7a   :  { %4165 = vmatprep.subr.bf16.mxu1 %v4164_v30  ;;  %v215_v44 = vld [vmem:[#allocation5 + $0x370] sm:$0xff]  ;;  %v268_v47 = vld [vmem:[#allocation5 + $0x518] sm:$0xff]  ;;  %v270_v49 = vld [vmem:[#allocation5 + $0x528] sm:$0xff]  ;;  %v4042_v50 = vpack.c.bf16 %v231_v42, %v213_v41 }
  0x7b   :  { %v252_v48 = vld [vmem:[#allocation5 + $0x498] sm:$0xff]  ;;  %v4170_v51 = vpack.c.bf16 %v233_v45, %v215_v44  ;;  %v4044_v52 = vpack.c.bf16 %v268_v47, %v250_v46  ;;  %v249_v53 = vld [vmem:[#allocation5 + $0x480] sm:$0xff]  ;;  %v267_v54 = vld [vmem:[#allocation5 + $0x510] sm:$0xff] }
  0x7c   :  { %4039 = vmatpush1.bf16.msra.mxu0 %v4038_v34  ;;  %v251_v55 = vld [vmem:[#allocation5 + $0x490] sm:$0xff]  ;;  %v4172_v56 = vpack.c.bf16 %v270_v49, %v252_v48  ;;  %v269_v57 = vld [vmem:[#allocation5 + $0x520] sm:$0xff]  ;;  %v286_v58 = vld [vmem:[#allocation5 + $0x5a8] sm:$0xff]  ;;  %v4046_v62 = vpack.c.bf16 %v267_v54, %v249_v53 }
  0x7d   :  { %4167 = vmatpush1.bf16.msra.mxu1 %v4166_v38  ;;  %4041 = vmatprep.subr.bf16.mxu0 %v4040_v39  ;;  %v304_v59 = vld [vmem:[#allocation5 + $0x638] sm:$0xff]  ;;  %v306_v61 = vld [vmem:[#allocation5 + $0x648] sm:$0xff]  ;;  %v4174_v63 = vpack.c.bf16 %v269_v57, %v251_v55  ;;  %v285_v1 = vld [vmem:[#allocation5 + $0x5a0] sm:$0xff] }
  0x7e   :  { %4169 = vmatprep.subr.bf16.mxu1 %v4168_v43  ;;  %v288_v60 = vld [vmem:[#allocation5 + $0x5b8] sm:$0xff]  ;;  %v4048_v0 = vpack.c.bf16 %v304_v59, %v286_v58  ;;  %v303_v2 = vld [vmem:[#allocation5 + $0x630] sm:$0xff]  ;;  %v305_v5 = vld [vmem:[#allocation5 + $0x640] sm:$0xff] }
  0x7f   :  { %v287_v3 = vld [vmem:[#allocation5 + $0x5b0] sm:$0xff]  ;;  %v4176_v4 = vpack.c.bf16 %v306_v61, %v288_v60  ;;  %v322_v6 = vld [vmem:[#allocation5 + $0x6c8] sm:$0xff]  ;;  %v340_v7 = vld [vmem:[#allocation5 + $0x758] sm:$0xff]  ;;  %v4050_v10 = vpack.c.bf16 %v303_v2, %v285_v1 }
  0x80   :  { %4043 = vmatpush1.bf16.msra.mxu0 %v4042_v50  ;;  %v324_v8 = vld [vmem:[#allocation5 + $0x6d8] sm:$0xff]  ;;  %v342_v9 = vld [vmem:[#allocation5 + $0x768] sm:$0xff]  ;;  %v4178_v11 = vpack.c.bf16 %v305_v5, %v287_v3  ;;  %v4052_v12 = vpack.c.bf16 %v340_v7, %v322_v6  ;;  %v321_v13 = vld [vmem:[#allocation5 + $0x6c0] sm:$0xff] }
  0x81   :  { %4171 = vmatpush1.bf16.msra.mxu1 %v4170_v51  ;;  %4045 = vmatprep.subr.bf16.mxu0 %v4044_v52  ;;  %v339_v14 = vld [vmem:[#allocation5 + $0x750] sm:$0xff]  ;;  %v4180_v16 = vpack.c.bf16 %v342_v9, %v324_v8  ;;  %v341_v17 = vld [vmem:[#allocation5 + $0x760] sm:$0xff]  ;;  %v358_v18 = vld [vmem:[#allocation5 + $0x7e8] sm:$0xff] }
  0x82   :  { %4173 = vmatprep.subr.bf16.mxu1 %v4172_v56  ;;  %v323_v15 = vld [vmem:[#allocation5 + $0x6d0] sm:$0xff]  ;;  %v376_v19 = vld [vmem:[#allocation5 + $0x878] sm:$0xff]  ;;  %v378_v21 = vld [vmem:[#allocation5 + $0x888] sm:$0xff]  ;;  %v4054_v22 = vpack.c.bf16 %v339_v14, %v321_v13 }
  0x83   :  { %v360_v20 = vld [vmem:[#allocation5 + $0x7f8] sm:$0xff]  ;;  %v4182_v23 = vpack.c.bf16 %v341_v17, %v323_v15  ;;  %v4056_v24 = vpack.c.bf16 %v376_v19, %v358_v18  ;;  %v357_v25 = vld [vmem:[#allocation5 + $0x7e0] sm:$0xff]  ;;  %v375_v26 = vld [vmem:[#allocation5 + $0x870] sm:$0xff] }
  0x84   :  { %4047 = vmatpush1.bf16.msra.mxu0 %v4046_v62  ;;  %v359_v27 = vld [vmem:[#allocation5 + $0x7f0] sm:$0xff]  ;;  %v4184_v28 = vpack.c.bf16 %v378_v21, %v360_v20  ;;  %v377_v29 = vld [vmem:[#allocation5 + $0x880] sm:$0xff]  ;;  %v394_v30 = vld [vmem:[#allocation5 + $0x908] sm:$0xff]  ;;  %v4058_v34 = vpack.c.bf16 %v375_v26, %v357_v25 }
  0x85   :  { %4175 = vmatpush1.bf16.msra.mxu1 %v4174_v63  ;;  %4049 = vmatprep.subr.bf16.mxu0 %v4048_v0  ;;  %v412_v31 = vld [vmem:[#allocation5 + $0x998] sm:$0xff]  ;;  %v414_v33 = vld [vmem:[#allocation5 + $0x9a8] sm:$0xff]  ;;  %v4186_v35 = vpack.c.bf16 %v377_v29, %v359_v27  ;;  %v393_v37 = vld [vmem:[#allocation5 + $0x900] sm:$0xff] }
  0x86   :  { %4177 = vmatprep.subr.bf16.mxu1 %v4176_v4  ;;  %v396_v32 = vld [vmem:[#allocation5 + $0x918] sm:$0xff]  ;;  %v4060_v36 = vpack.c.bf16 %v412_v31, %v394_v30  ;;  %v411_v38 = vld [vmem:[#allocation5 + $0x990] sm:$0xff]  ;;  %v413_v41 = vld [vmem:[#allocation5 + $0x9a0] sm:$0xff] }
  0x87   :  { %v395_v39 = vld [vmem:[#allocation5 + $0x910] sm:$0xff]  ;;  %v4188_v40 = vpack.c.bf16 %v414_v33, %v396_v32  ;;  %v430_v42 = vld [vmem:[#allocation5 + $0xa28] sm:$0xff]  ;;  %v448_v43 = vld [vmem:[#allocation5 + $0xab8] sm:$0xff]  ;;  %v4062_v46 = vpack.c.bf16 %v411_v38, %v393_v37 }
  0x88   :  { %4051 = vmatpush1.bf16.msra.mxu0 %v4050_v10  ;;  %v432_v44 = vld [vmem:[#allocation5 + $0xa38] sm:$0xff]  ;;  %v450_v45 = vld [vmem:[#allocation5 + $0xac8] sm:$0xff]  ;;  %v4190_v47 = vpack.c.bf16 %v413_v41, %v395_v39  ;;  %v4064_v48 = vpack.c.bf16 %v448_v43, %v430_v42  ;;  %v429_v49 = vld [vmem:[#allocation5 + $0xa20] sm:$0xff] }
  0x89   :  { %4179 = vmatpush1.bf16.msra.mxu1 %v4178_v11  ;;  %4053 = vmatprep.subr.bf16.mxu0 %v4052_v12  ;;  %v447_v50 = vld [vmem:[#allocation5 + $0xab0] sm:$0xff]  ;;  %v4192_v52 = vpack.c.bf16 %v450_v45, %v432_v44  ;;  %v449_v53 = vld [vmem:[#allocation5 + $0xac0] sm:$0xff]  ;;  %v466_v54 = vld [vmem:[#allocation5 + $0xb48] sm:$0xff] }
  0x8a   :  { %4181 = vmatprep.subr.bf16.mxu1 %v4180_v16  ;;  %v431_v51 = vld [vmem:[#allocation5 + $0xa30] sm:$0xff]  ;;  %v484_v55 = vld [vmem:[#allocation5 + $0xbd8] sm:$0xff]  ;;  %v486_v57 = vld [vmem:[#allocation5 + $0xbe8] sm:$0xff]  ;;  %v4066_v58 = vpack.c.bf16 %v447_v50, %v429_v49 }
  0x8b   :  { %v468_v56 = vld [vmem:[#allocation5 + $0xb58] sm:$0xff]  ;;  %v4194_v59 = vpack.c.bf16 %v449_v53, %v431_v51  ;;  %v4068_v60 = vpack.c.bf16 %v484_v55, %v466_v54  ;;  %v465_v61 = vld [vmem:[#allocation5 + $0xb40] sm:$0xff]  ;;  %v483_v62 = vld [vmem:[#allocation5 + $0xbd0] sm:$0xff] }
  0x8c   :  { %4055 = vmatpush1.bf16.msra.mxu0 %v4054_v22  ;;  %v467_v63 = vld [vmem:[#allocation5 + $0xb50] sm:$0xff]  ;;  %v4196_v0 = vpack.c.bf16 %v486_v57, %v468_v56  ;;  %v485_v1 = vld [vmem:[#allocation5 + $0xbe0] sm:$0xff]  ;;  %v502_v2 = vld [vmem:[#allocation5 + $0xc68] sm:$0xff]  ;;  %v4070_v6 = vpack.c.bf16 %v483_v62, %v465_v61 }
  0x8d   :  { %4183 = vmatpush1.bf16.msra.mxu1 %v4182_v23  ;;  %4057 = vmatprep.subr.bf16.mxu0 %v4056_v24  ;;  %v520_v3 = vld [vmem:[#allocation5 + $0xcf8] sm:$0xff]  ;;  %v522_v5 = vld [vmem:[#allocation5 + $0xd08] sm:$0xff]  ;;  %v501_v7 = vld [vmem:[#allocation5 + $0xc60] sm:$0xff]  ;;  %v4198_v8 = vpack.c.bf16 %v485_v1, %v467_v63 }
  0x8e   :  { %4185 = vmatprep.subr.bf16.mxu1 %v4184_v28  ;;  %v504_v4 = vld [vmem:[#allocation5 + $0xc78] sm:$0xff]  ;;  %v4072_v9 = vpack.c.bf16 %v520_v3, %v502_v2  ;;  %v519_v10 = vld [vmem:[#allocation5 + $0xcf0] sm:$0xff]  ;;  %v521_v12 = vld [vmem:[#allocation5 + $0xd00] sm:$0xff] }
  0x8f   :  { %v503_v11 = vld [vmem:[#allocation5 + $0xc70] sm:$0xff]  ;;  %v4200_v13 = vpack.c.bf16 %v522_v5, %v504_v4  ;;  %v538_v14 = vld [vmem:[#allocation5 + $0xd88] sm:$0xff]  ;;  %v556_v15 = vld [vmem:[#allocation5 + $0xe18] sm:$0xff]  ;;  %v4074_v19 = vpack.c.bf16 %v519_v10, %v501_v7 }
  0x90   :  { %4059 = vmatpush1.bf16.msra.mxu0 %v4058_v34  ;;  %v5835_v16 = vld [vmem:[#allocation2 + $0x8] sm:$0xff]  ;;  %v540_v17 = vld [vmem:[#allocation5 + $0xd98] sm:$0xff]  ;;  %v4202_v20 = vpack.c.bf16 %v521_v12, %v503_v11  ;;  %v4076_v21 = vpack.c.bf16 %v556_v15, %v538_v14  ;;  %v537_v22 = vld [vmem:[#allocation5 + $0xd80] sm:$0xff] }
  0x91   :  { %4187 = vmatpush1.bf16.msra.mxu1 %v4186_v35  ;;  %4061 = vmatprep.subr.bf16.mxu0 %v4060_v36  ;;  %v558_v18 = vld [vmem:[#allocation5 + $0xe28] sm:$0xff]  ;;  %v555_v23 = vld [vmem:[#allocation5 + $0xe10] sm:$0xff]  ;;  %v557_v26 = vld [vmem:[#allocation5 + $0xe20] sm:$0xff] }
  0x92   :  { %4189 = vmatprep.subr.bf16.mxu1 %v4188_v40  ;;  %1417 = vmatprep.mubr.f32.mxu0 %v5835_v16  ;;  %v539_v24 = vld [vmem:[#allocation5 + $0xd90] sm:$0xff]  ;;  %v4204_v25 = vpack.c.bf16 %v558_v18, %v540_v17  ;;  %v574_v27 = vld [vmem:[#allocation5 + $0xea8] sm:$0xff]  ;;  %v592_v28 = vld [vmem:[#allocation5 + $0xf38] sm:$0xff]  ;;  %v4078_v31 = vpack.c.bf16 %v555_v23, %v537_v22 }
  0x93   :  { %1559 = vmatprep.mubr.f32.mxu1 %v5835_v16  ;;  %v576_v29 = vld [vmem:[#allocation5 + $0xeb8] sm:$0xff]  ;;  %v594_v30 = vld [vmem:[#allocation5 + $0xf48] sm:$0xff]  ;;  %v4206_v32 = vpack.c.bf16 %v557_v26, %v539_v24  ;;  %v4080_v33 = vpack.c.bf16 %v592_v28, %v574_v27  ;;  %v573_v34 = vld [vmem:[#allocation5 + $0xea0] sm:$0xff] }
  0x94   :  { %4063 = vmatpush1.bf16.msra.mxu0 %v4062_v46  ;;  %v591_v35 = vld [vmem:[#allocation5 + $0xf30] sm:$0xff]  ;;  %v4208_v37 = vpack.c.bf16 %v594_v30, %v576_v29  ;;  %v593_v38 = vld [vmem:[#allocation5 + $0xf40] sm:$0xff]  ;;  %v610_v39 = vld [vmem:[#allocation5 + $0xfc8] sm:$0xff] }
  0x95   :  { %4191 = vmatpush1.bf16.msra.mxu1 %v4190_v47  ;;  %4065 = vmatprep.subr.bf16.mxu0 %v4064_v48  ;;  %v575_v36 = vld [vmem:[#allocation5 + $0xeb0] sm:$0xff]  ;;  %v628_v40 = vld [vmem:[#allocation5 + $0x1058] sm:$0xff]  ;;  %v630_v42 = vld [vmem:[#allocation5 + $0x1068] sm:$0xff]  ;;  %v4082_v43 = vpack.c.bf16 %v591_v35, %v573_v34 }
  0x96   :  { %4193 = vmatprep.subr.bf16.mxu1 %v4192_v52  ;;  %v612_v41 = vld [vmem:[#allocation5 + $0xfd8] sm:$0xff]  ;;  %v4210_v44 = vpack.c.bf16 %v593_v38, %v575_v36  ;;  %v4084_v45 = vpack.c.bf16 %v628_v40, %v610_v39  ;;  %v609_v46 = vld [vmem:[#allocation5 + $0xfc0] sm:$0xff]  ;;  %v627_v47 = vld [vmem:[#allocation5 + $0x1050] sm:$0xff] }
  0x97   :  { %v611_v48 = vld [vmem:[#allocation5 + $0xfd0] sm:$0xff]  ;;  %v4212_v49 = vpack.c.bf16 %v630_v42, %v612_v41  ;;  %v629_v50 = vld [vmem:[#allocation5 + $0x1060] sm:$0xff]  ;;  %v646_v51 = vld [vmem:[#allocation5 + $0x10e8] sm:$0xff]  ;;  %v4086_v55 = vpack.c.bf16 %v627_v47, %v609_v46 }
  0x98   :  { %4067 = vmatpush1.bf16.msra.mxu0 %v4066_v58  ;;  %v664_v52 = vld [vmem:[#allocation5 + $0x1178] sm:$0xff]  ;;  %v666_v54 = vld [vmem:[#allocation5 + $0x1188] sm:$0xff]  ;;  %v4214_v56 = vpack.c.bf16 %v629_v50, %v611_v48  ;;  %v645_v58 = vld [vmem:[#allocation5 + $0x10e0] sm:$0xff] }
  0x99   :  { %4195 = vmatpush1.bf16.msra.mxu1 %v4194_v59  ;;  %4069 = vmatprep.subr.bf16.mxu0 %v4068_v60  ;;  %v648_v53 = vld [vmem:[#allocation5 + $0x10f8] sm:$0xff]  ;;  %v4088_v57 = vpack.c.bf16 %v664_v52, %v646_v51  ;;  %v663_v59 = vld [vmem:[#allocation5 + $0x1170] sm:$0xff]  ;;  %v665_v62 = vld [vmem:[#allocation5 + $0x1180] sm:$0xff] }
  0x9a   :  { %4197 = vmatprep.subr.bf16.mxu1 %v4196_v0  ;;  %v647_v60 = vld [vmem:[#allocation5 + $0x10f0] sm:$0xff]  ;;  %v4216_v61 = vpack.c.bf16 %v666_v54, %v648_v53  ;;  %v682_v63 = vld [vmem:[#allocation5 + $0x1208] sm:$0xff]  ;;  %v700_v0 = vld [vmem:[#allocation5 + $0x1298] sm:$0xff]  ;;  %v4090_v3 = vpack.c.bf16 %v663_v59, %v645_v58 }
  0x9b   :  { %v684_v1 = vld [vmem:[#allocation5 + $0x1218] sm:$0xff]  ;;  %v702_v2 = vld [vmem:[#allocation5 + $0x12a8] sm:$0xff]  ;;  %v4218_v4 = vpack.c.bf16 %v665_v62, %v647_v60  ;;  %v4092_v5 = vpack.c.bf16 %v700_v0, %v682_v63  ;;  %v699_v7 = vld [vmem:[#allocation5 + $0x1290] sm:$0xff] }
  0x9c   :  { %4071 = vmatpush1.bf16.msra.mxu0 %v4070_v6  ;;  %v681_v6 = vld [vmem:[#allocation5 + $0x1200] sm:$0xff]  ;;  %v718_v11 = vld [vmem:[#allocation5 + $0x1328] sm:$0xff]  ;;  %v736_v12 = vld [vmem:[#allocation5 + $0x13b8] sm:$0xff] }
  0x9d   :  { %4199 = vmatpush1.bf16.msra.mxu1 %v4198_v8  ;;  %4073 = vmatprep.subr.bf16.mxu0 %v4072_v9  ;;  %v683_v8 = vld [vmem:[#allocation5 + $0x1210] sm:$0xff]  ;;  %v4220_v9 = vpack.c.bf16 %v702_v2, %v684_v1  ;;  %v701_v10 = vld [vmem:[#allocation5 + $0x12a0] sm:$0xff]  ;;  %v738_v14 = vld [vmem:[#allocation5 + $0x13c8] sm:$0xff]  ;;  %v4094_v17 = vpack.c.bf16 %v699_v7, %v681_v6 }
  0x9e   :  { %4201 = vmatprep.subr.bf16.mxu1 %v4200_v13  ;;  %v720_v13 = vld [vmem:[#allocation5 + $0x1338] sm:$0xff]  ;;  %v101_v15 = vld [vmem:[#allocation2] sm:$0xff]  ;;  %v4222_v18 = vpack.c.bf16 %v701_v10, %v683_v8  ;;  %v719_v22 = vld [vmem:[#allocation5 + $0x1330] sm:$0xff] }
  0x9f   :  { %v4224_v23 = vpack.c.bf16 %v738_v14, %v720_v13  ;;  %v737_v24 = vld [vmem:[#allocation5 + $0x13c0] sm:$0xff]  ;;  %v772_v26 = vld [vmem:[#allocation5 + $0x14d8] sm:$0xff]  ;;  %v774_v28 = vld [vmem:[#allocation5 + $0x14e8] sm:$0xff] }
  0xa0   :  { %4075 = vmatpush1.bf16.msra.mxu0 %v4074_v19  ;;  %v4096_v19 = vpack.c.bf16 %v736_v12, %v718_v11  ;;  %v756_v27 = vld [vmem:[#allocation5 + $0x1458] sm:$0xff]  ;;  %v4226_v30 = vpack.c.bf16 %v737_v24, %v719_v22  ;;  %v755_v34 = vld [vmem:[#allocation5 + $0x1450] sm:$0xff]  ;;  %v773_v36 = vld [vmem:[#allocation5 + $0x14e0] sm:$0xff] }
  0xa1   :  { %4203 = vmatpush1.bf16.msra.mxu1 %v4202_v20  ;;  %4077 = vmatprep.subr.bf16.mxu0 %v4076_v21  ;;  %v717_v20 = vld [vmem:[#allocation5 + $0x1320] sm:$0xff]  ;;  %v735_v21 = vld [vmem:[#allocation5 + $0x13b0] sm:$0xff]  ;;  %v4228_v35 = vpack.c.bf16 %v774_v28, %v756_v27  ;;  %v808_v38 = vld [vmem:[#allocation5 + $0x15f8] sm:$0xff]  ;;  %v4230_v42 = vpack.c.bf16 %v773_v36, %v755_v34 }
  0xa2   :  { %4205 = vmatprep.subr.bf16.mxu1 %v4204_v25  ;;  %v754_v25 = vld [vmem:[#allocation5 + $0x1448] sm:$0xff]  ;;  %v4098_v29 = vpack.c.bf16 %v735_v21, %v717_v20  ;;  %v792_v39 = vld [vmem:[#allocation5 + $0x1578] sm:$0xff]  ;;  %v791_v46 = vld [vmem:[#allocation5 + $0x1570] sm:$0xff] }
  0xa3   :  { %v810_v40 = vld [vmem:[#allocation5 + $0x1608] sm:$0xff]  ;;  %v809_v48 = vld [vmem:[#allocation5 + $0x1600] sm:$0xff]  ;;  %v844_v50 = vld [vmem:[#allocation5 + $0x1718] sm:$0xff] }
  0xa4   :  { %4079 = vmatpush1.bf16.msra.mxu0 %v4078_v31  ;;  %v4100_v31 = vpack.c.bf16 %v772_v26, %v754_v25  ;;  %v4232_v47 = vpack.c.bf16 %v810_v40, %v792_v39  ;;  %v828_v51 = vld [vmem:[#allocation5 + $0x1698] sm:$0xff]  ;;  %v846_v52 = vld [vmem:[#allocation5 + $0x1728] sm:$0xff]  ;;  %v4234_v54 = vpack.c.bf16 %v809_v48, %v791_v46  ;;  %v827_v58 = vld [vmem:[#allocation5 + $0x1690] sm:$0xff] }
  0xa5   :  { %4207 = vmatpush1.bf16.msra.mxu1 %v4206_v32  ;;  %4081 = vmatprep.subr.bf16.mxu0 %v4080_v33  ;;  %v753_v32 = vld [vmem:[#allocation5 + $0x1440] sm:$0xff]  ;;  %v771_v33 = vld [vmem:[#allocation5 + $0x14d0] sm:$0xff]  ;;  %v4236_v59 = vpack.c.bf16 %v846_v52, %v828_v51  ;;  %v880_v62 = vld [vmem:[#allocation5 + $0x1838] sm:$0xff] }
  0xa6   :  { %4209 = vmatprep.subr.bf16.mxu1 %v4208_v37  ;;  %v790_v37 = vld [vmem:[#allocation5 + $0x1568] sm:$0xff]  ;;  %v4102_v41 = vpack.c.bf16 %v771_v33, %v753_v32  ;;  %v845_v60 = vld [vmem:[#allocation5 + $0x1720] sm:$0xff]  ;;  %v864_v63 = vld [vmem:[#allocation5 + $0x17b8] sm:$0xff] }
  0xa7   :  { %v882_v0 = vld [vmem:[#allocation5 + $0x1848] sm:$0xff]  ;;  %v4238_v2 = vpack.c.bf16 %v845_v60, %v827_v58  ;;  %v863_v6 = vld [vmem:[#allocation5 + $0x17b0] sm:$0xff]  ;;  %v881_v8 = vld [vmem:[#allocation5 + $0x1840] sm:$0xff] }
  0xa8   :  { %4083 = vmatpush1.bf16.msra.mxu0 %v4082_v43  ;;  %v4104_v43 = vpack.c.bf16 %v808_v38, %v790_v37  ;;  %v4240_v7 = vpack.c.bf16 %v882_v0, %v864_v63  ;;  %v916_v10 = vld [vmem:[#allocation5 + $0x1958] sm:$0xff]  ;;  %v918_v12 = vld [vmem:[#allocation5 + $0x1968] sm:$0xff]  ;;  %v897_v14 = vld [vmem:[#allocation5 + $0x18c0] sm:$0xff] }
  0xa9   :  { %4211 = vmatpush1.bf16.msra.mxu1 %v4210_v44  ;;  %4085 = vmatprep.subr.bf16.mxu0 %v4084_v45  ;;  %v789_v44 = vld [vmem:[#allocation5 + $0x1560] sm:$0xff]  ;;  %v807_v45 = vld [vmem:[#allocation5 + $0x15f0] sm:$0xff]  ;;  %v900_v11 = vld [vmem:[#allocation5 + $0x18d8] sm:$0xff] }
  0xaa   :  { %4213 = vmatprep.subr.bf16.mxu1 %v4212_v49  ;;  %v826_v49 = vld [vmem:[#allocation5 + $0x1688] sm:$0xff]  ;;  %v4106_v53 = vpack.c.bf16 %v807_v45, %v789_v44  ;;  %v917_v20 = vld [vmem:[#allocation5 + $0x1960] sm:$0xff]  ;;  %v4244_v21 = vpack.c.bf16 %v918_v12, %v900_v11  ;;  %v5839_v24 = vld [vmem:[#allocation2 + $0x18] sm:$0xff] }
  0xab   :  { %v934_v22 = vld [vmem:[#allocation5 + $0x19e8] sm:$0xff]  ;;  %v936_v25 = vld [vmem:[#allocation5 + $0x19f8] sm:$0xff]  ;;  %v935_v32 = vld [vmem:[#allocation5 + $0x19f0] sm:$0xff] }
  0xac   :  { %4087 = vmatpush1.bf16.msra.mxu0 %v4086_v55  ;;  %v4108_v55 = vpack.c.bf16 %v844_v50, %v826_v49  ;;  %v954_v26 = vld [vmem:[#allocation5 + $0x1a88] sm:$0xff]  ;;  %v953_v34 = vld [vmem:[#allocation5 + $0x1a80] sm:$0xff]  ;;  %v988_v36 = vld [vmem:[#allocation5 + $0x1b98] sm:$0xff] }
  0xad   :  { %4215 = vmatpush1.bf16.msra.mxu1 %v4214_v56  ;;  %4089 = vmatprep.subr.bf16.mxu0 %v4088_v57  ;;  %v825_v56 = vld [vmem:[#allocation5 + $0x1680] sm:$0xff]  ;;  %v843_v57 = vld [vmem:[#allocation5 + $0x1710] sm:$0xff]  ;;  %v4248_v33 = vpack.c.bf16 %v954_v26, %v936_v25  ;;  %v972_v37 = vld [vmem:[#allocation5 + $0x1b18] sm:$0xff]  ;;  %v4250_v40 = vpack.c.bf16 %v953_v34, %v935_v32 }
  0xae   :  { %4217 = vmatprep.subr.bf16.mxu1 %v4216_v61  ;;  %v862_v61 = vld [vmem:[#allocation5 + $0x17a8] sm:$0xff]  ;;  %v4110_v1 = vpack.c.bf16 %v843_v57, %v825_v56  ;;  %v971_v44 = vld [vmem:[#allocation5 + $0x1b10] sm:$0xff]  ;;  %v989_v46 = vld [vmem:[#allocation5 + $0x1ba0] sm:$0xff] }
  0xaf   :  { %v990_v38 = vld [vmem:[#allocation5 + $0x1ba8] sm:$0xff]  ;;  %v1024_v48 = vld [vmem:[#allocation5 + $0x1cb8] sm:$0xff]  ;;  %v4254_v52 = vpack.c.bf16 %v989_v46, %v971_v44  ;;  %v1007_v56 = vld [vmem:[#allocation5 + $0x1c30] sm:$0xff] }
  0xb0   :  { %4091 = vmatpush1.bf16.msra.mxu0 %v4090_v3  ;;  %v4112_v3 = vpack.c.bf16 %v880_v62, %v862_v61  ;;  %v4252_v45 = vpack.c.bf16 %v990_v38, %v972_v37  ;;  %v1008_v49 = vld [vmem:[#allocation5 + $0x1c38] sm:$0xff]  ;;  %v1026_v50 = vld [vmem:[#allocation5 + $0x1cc8] sm:$0xff]  ;;  %v1025_v58 = vld [vmem:[#allocation5 + $0x1cc0] sm:$0xff] }
  0xb1   :  { %4219 = vmatpush1.bf16.msra.mxu1 %v4218_v4  ;;  %4093 = vmatprep.subr.bf16.mxu0 %v4092_v5  ;;  %v861_v4 = vld [vmem:[#allocation5 + $0x17a0] sm:$0xff]  ;;  %v879_v5 = vld [vmem:[#allocation5 + $0x1830] sm:$0xff]  ;;  %v4256_v57 = vpack.c.bf16 %v1026_v50, %v1008_v49  ;;  %v1060_v60 = vld [vmem:[#allocation5 + $0x1dd8] sm:$0xff]  ;;  %v4258_v0 = vpack.c.bf16 %v1025_v58, %v1007_v56 }
  0xb2   :  { %4221 = vmatprep.subr.bf16.mxu1 %v4220_v9  ;;  %v898_v9 = vld [vmem:[#allocation5 + $0x18c8] sm:$0xff]  ;;  %v4114_v13 = vpack.c.bf16 %v879_v5, %v861_v4  ;;  %v1044_v61 = vld [vmem:[#allocation5 + $0x1d58] sm:$0xff]  ;;  %v1043_v4 = vld [vmem:[#allocation5 + $0x1d50] sm:$0xff] }
  0xb3   :  { %1418 = vmatmul.mubr.f32.vlgmr.msra.gmra.mrb[0].mxu0 %v101_v15  ;;  %v1062_v62 = vld [vmem:[#allocation5 + $0x1de8] sm:$0xff]  ;;  %v1133_v32 = vld [vmem:[#allocation5 + $0x2020] sm:$0xff]  ;;  %v1168_v34 = vld [vmem:[#allocation5 + $0x2138] sm:$0xff] }
  0xb4   :  { %4095 = vmatpush1.bf16.msra.mxu0 %v4094_v17  ;;  %1560 = vmatmul.mubr.f32.vlgmr.msra.gmra.mrb[0].mxu1 %v101_v15  ;;  %v4242_v15 = vpack.c.bf16 %v881_v8, %v863_v6  ;;  %v4116_v17 = vpack.c.bf16 %v916_v10, %v898_v9  ;;  %v4260_v5 = vpack.c.bf16 %v1062_v62, %v1044_v61  ;;  %v1061_v6 = vld [vmem:[#allocation5 + $0x1de0] sm:$0xff]  ;;  %v1096_v8 = vld [vmem:[#allocation5 + $0x1ef8] sm:$0xff]  ;;  %v1098_v10 = vld [vmem:[#allocation5 + $0x1f08] sm:$0xff] }
  0xb5   :  { %4223 = vmatpush1.bf16.msra.mxu1 %v4222_v18  ;;  %4097 = vmatprep.subr.bf16.mxu0 %v4096_v19  ;;  %v915_v18 = vld [vmem:[#allocation5 + $0x1950] sm:$0xff]  ;;  %v1080_v9 = vld [vmem:[#allocation5 + $0x1e78] sm:$0xff]  ;;  %v4262_v12 = vpack.c.bf16 %v1061_v6, %v1043_v4  ;;  %v1169_v44 = vld [vmem:[#allocation5 + $0x2140] sm:$0xff] }
  0xb6   :  { %4225 = vmatprep.subr.bf16.mxu1 %v4224_v23  ;;  %v899_v19 = vld [vmem:[#allocation5 + $0x18d0] sm:$0xff]  ;;  %v952_v23 = vld [vmem:[#allocation5 + $0x1a78] sm:$0xff]  ;;  %1488 = vmatprep.mubr.f32.mxu0 %v5839_v24  ;;  %v4118_v27 = vpack.c.bf16 %v915_v18, %v897_v14  ;;  %v1077_v14 = vld [vmem:[#allocation5 + $0x1e60] sm:$0xff]  ;;  %v4264_v18 = vpack.c.bf16 %v1098_v10, %v1080_v9 }
  0xb7   :  { %1630 = vmatprep.mubr.f32.mxu1 %v5839_v24  ;;  %v4246_v28 = vpack.c.bf16 %v917_v20, %v899_v19  ;;  %v1097_v19 = vld [vmem:[#allocation5 + $0x1f00] sm:$0xff]  ;;  %v1114_v20 = vld [vmem:[#allocation5 + $0x1f88] sm:$0xff]  ;;  %v1204_v46 = vld [vmem:[#allocation5 + $0x2258] sm:$0xff] }
  0xb8   :  { %4099 = vmatpush1.bf16.msra.mxu0 %v4098_v29  ;;  %v4120_v29 = vpack.c.bf16 %v952_v23, %v934_v22  ;;  %v1116_v22 = vld [vmem:[#allocation5 + $0x1f98] sm:$0xff]  ;;  %v1134_v23 = vld [vmem:[#allocation5 + $0x2028] sm:$0xff]  ;;  %v1205_v56 = vld [vmem:[#allocation5 + $0x2260] sm:$0xff] }
  0xb9   :  { %4227 = vmatpush1.bf16.msra.mxu1 %v4226_v30  ;;  %4101 = vmatprep.subr.bf16.mxu0 %v4100_v31  ;;  %v933_v30 = vld [vmem:[#allocation5 + $0x19e0] sm:$0xff]  ;;  %v951_v31 = vld [vmem:[#allocation5 + $0x1a70] sm:$0xff]  ;;  %v1240_v58 = vld [vmem:[#allocation5 + $0x2378] sm:$0xff] }
  0xba   :  { %4229 = vmatprep.subr.bf16.mxu1 %v4228_v35  ;;  %v970_v35 = vld [vmem:[#allocation5 + $0x1b08] sm:$0xff]  ;;  %v4122_v39 = vpack.c.bf16 %v951_v31, %v933_v30  ;;  %v1115_v30 = vld [vmem:[#allocation5 + $0x1f90] sm:$0xff]  ;;  %v4268_v31 = vpack.c.bf16 %v1134_v23, %v1116_v22  ;;  %v1241_v4 = vld [vmem:[#allocation5 + $0x2380] sm:$0xff] }
  0xbb   :  { %v4270_v38 = vpack.c.bf16 %v1133_v32, %v1115_v30  ;;  %v128_v6 = vld [vmem:[#allocation5 + $0xb8] sm:$0xff]  ;;  %v103_v22 = vld [vmem:[#allocation2 + $0x10] sm:$0xff]  ;;  %v182_v32 = vld [vmem:[#allocation5 + $0x268] sm:$0xff] }
  0xbc   :  { %4103 = vmatpush1.bf16.msra.mxu0 %v4102_v41  ;;  %v4124_v41 = vpack.c.bf16 %v988_v36, %v970_v35  ;;  %v1152_v35 = vld [vmem:[#allocation5 + $0x20b8] sm:$0xff]  ;;  %v1170_v36 = vld [vmem:[#allocation5 + $0x2148] sm:$0xff] }
  0xbd   :  { %4231 = vmatpush1.bf16.msra.mxu1 %v4230_v42  ;;  %4105 = vmatprep.subr.bf16.mxu0 %v4104_v43  ;;  %v969_v42 = vld [vmem:[#allocation5 + $0x1b00] sm:$0xff]  ;;  %v987_v43 = vld [vmem:[#allocation5 + $0x1b90] sm:$0xff] }
  0xbe   :  { %4233 = vmatprep.subr.bf16.mxu1 %v4232_v47  ;;  %v1006_v47 = vld [vmem:[#allocation5 + $0x1c28] sm:$0xff]  ;;  %v4126_v51 = vpack.c.bf16 %v987_v43, %v969_v42  ;;  %v1151_v42 = vld [vmem:[#allocation5 + $0x20b0] sm:$0xff]  ;;  %v4272_v43 = vpack.c.bf16 %v1170_v36, %v1152_v35 }
  0xbf   :  { %v4274_v50 = vpack.c.bf16 %v1169_v44, %v1151_v42  ;;  %v202_v35 = vld [vmem:[#allocation5 + $0x308] sm:$0xff] }
  0xc0   :  { %4107 = vmatpush1.bf16.msra.mxu0 %v4106_v53  ;;  %v4128_v53 = vpack.c.bf16 %v1024_v48, %v1006_v47  ;;  %v1188_v47 = vld [vmem:[#allocation5 + $0x21d8] sm:$0xff]  ;;  %v1206_v48 = vld [vmem:[#allocation5 + $0x2268] sm:$0xff] }
  0xc1   :  { %4235 = vmatpush1.bf16.msra.mxu1 %v4234_v54  ;;  %4109 = vmatprep.subr.bf16.mxu0 %v4108_v55  ;;  %v1005_v54 = vld [vmem:[#allocation5 + $0x1c20] sm:$0xff]  ;;  %v1023_v55 = vld [vmem:[#allocation5 + $0x1cb0] sm:$0xff]  ;;  %v218_v44 = vld [vmem:[#allocation5 + $0x388] sm:$0xff] }
  0xc2   :  { %4237 = vmatprep.subr.bf16.mxu1 %v4236_v59  ;;  %v1042_v59 = vld [vmem:[#allocation5 + $0x1d48] sm:$0xff]  ;;  %v4130_v63 = vpack.c.bf16 %v1023_v55, %v1005_v54  ;;  %v1187_v54 = vld [vmem:[#allocation5 + $0x21d0] sm:$0xff]  ;;  %v4276_v55 = vpack.c.bf16 %v1206_v48, %v1188_v47 }
  0xc3   :  { %v4278_v62 = vpack.c.bf16 %v1205_v56, %v1187_v54  ;;  %v238_v47 = vld [vmem:[#allocation5 + $0x428] sm:$0xff] }
  0xc4   :  { %4111 = vmatpush1.bf16.msra.mxu0 %v4110_v1  ;;  %v4132_v1 = vpack.c.bf16 %v1060_v60, %v1042_v59  ;;  %v1224_v59 = vld [vmem:[#allocation5 + $0x22f8] sm:$0xff]  ;;  %v1242_v60 = vld [vmem:[#allocation5 + $0x2388] sm:$0xff] }
  0xc5   :  { %4239 = vmatpush1.bf16.msra.mxu1 %v4238_v2  ;;  %4113 = vmatprep.subr.bf16.mxu0 %v4112_v3  ;;  %v1041_v2 = vld [vmem:[#allocation5 + $0x1d40] sm:$0xff]  ;;  %v1059_v3 = vld [vmem:[#allocation5 + $0x1dd0] sm:$0xff]  ;;  %v254_v56 = vld [vmem:[#allocation5 + $0x4a8] sm:$0xff] }
  0xc6   :  { %4241 = vmatprep.subr.bf16.mxu1 %v4240_v7  ;;  %v1078_v7 = vld [vmem:[#allocation5 + $0x1e68] sm:$0xff]  ;;  %v4134_v11 = vpack.c.bf16 %v1059_v3, %v1041_v2  ;;  %v1223_v2 = vld [vmem:[#allocation5 + $0x22f0] sm:$0xff]  ;;  %v4280_v3 = vpack.c.bf16 %v1242_v60, %v1224_v59 }
  0xc7   :  { %v4282_v10 = vpack.c.bf16 %v1241_v4, %v1223_v2  ;;  %v274_v59 = vld [vmem:[#allocation5 + $0x548] sm:$0xff]  ;;  %v273_v2 = vld [vmem:[#allocation5 + $0x540] sm:$0xff]  ;;  %v308_v4 = vld [vmem:[#allocation5 + $0x658] sm:$0xff] }
  0xc8   :  { %4115 = vmatpush1.bf16.msra.mxu0 %v4114_v13  ;;  %v4136_v13 = vpack.c.bf16 %v1096_v8, %v1078_v7  ;;  %v112_v7 = vld [vmem:[#allocation5 + $0x38] sm:$0xff]  ;;  %v130_v8 = vld [vmem:[#allocation5 + $0xc8] sm:$0xff] }
  0xc9   :  { %4243 = vmatpush1.bf16.msra.mxu1 %v4242_v15  ;;  %4117 = vmatprep.subr.bf16.mxu0 %v4116_v17  ;;  %v1095_v15 = vld [vmem:[#allocation5 + $0x1ef0] sm:$0xff] }
  0xca   :  { %4245 = vmatprep.subr.bf16.mxu1 %v4244_v21  ;;  %v1079_v17 = vld [vmem:[#allocation5 + $0x1e70] sm:$0xff]  ;;  %v1132_v21 = vld [vmem:[#allocation5 + $0x2018] sm:$0xff]  ;;  %v4138_v25 = vpack.c.bf16 %v1095_v15, %v1077_v14  ;;  %v4412_v15 = vpack.c.bf16 %v130_v8, %v112_v7 }
  0xcb   :  { %v4266_v26 = vpack.c.bf16 %v1097_v19, %v1079_v17  ;;  %v111_v14 = vld [vmem:[#allocation5 + $0x30] sm:$0xff]  ;;  %v129_v17 = vld [vmem:[#allocation5 + $0xc0] sm:$0xff]  ;;  %v164_v19 = vld [vmem:[#allocation5 + $0x1d8] sm:$0xff] }
  0xcc   :  { %4119 = vmatpush1.bf16.msra.mxu0 %v4118_v27  ;;  %v4140_v27 = vpack.c.bf16 %v1132_v21, %v1114_v20  ;;  %v148_v20 = vld [vmem:[#allocation5 + $0x158] sm:$0xff]  ;;  %v166_v21 = vld [vmem:[#allocation5 + $0x1e8] sm:$0xff] }
  0xcd   :  { %4247 = vmatpush1.bf16.msra.mxu1 %v4246_v28  ;;  %4121 = vmatprep.subr.bf16.mxu0 %v4120_v29  ;;  %v1113_v28 = vld [vmem:[#allocation5 + $0x1f80] sm:$0xff]  ;;  %v1131_v29 = vld [vmem:[#allocation5 + $0x2010] sm:$0xff]  ;;  %v4416_v30 = vpack.c.bf16 %v166_v21, %v148_v20 }
  0xce   :  { %4249 = vmatprep.subr.bf16.mxu1 %v4248_v33  ;;  %v1150_v33 = vld [vmem:[#allocation5 + $0x20a8] sm:$0xff]  ;;  %v4142_v37 = vpack.c.bf16 %v1131_v29, %v1113_v28  ;;  %v163_v28 = vld [vmem:[#allocation5 + $0x1d0] sm:$0xff] }
  0xcf   :  { %v147_v29 = vld [vmem:[#allocation5 + $0x150] sm:$0xff] }
  0xd0   :  { %4123 = vmatpush1.bf16.msra.mxu0 %v4122_v39  ;;  %v4144_v39 = vpack.c.bf16 %v1168_v34, %v1150_v33  ;;  %v200_v33 = vld [vmem:[#allocation5 + $0x2f8] sm:$0xff] }
  0xd1   :  { %4251 = vmatpush1.bf16.msra.mxu1 %v4250_v40  ;;  %4125 = vmatprep.subr.bf16.mxu0 %v4124_v41  ;;  %v1149_v40 = vld [vmem:[#allocation5 + $0x20a0] sm:$0xff]  ;;  %v1167_v41 = vld [vmem:[#allocation5 + $0x2130] sm:$0xff]  ;;  %v184_v34 = vld [vmem:[#allocation5 + $0x278] sm:$0xff] }
  0xd2   :  { %4253 = vmatprep.subr.bf16.mxu1 %v4252_v45  ;;  %v1186_v45 = vld [vmem:[#allocation5 + $0x21c8] sm:$0xff]  ;;  %v4146_v49 = vpack.c.bf16 %v1167_v41, %v1149_v40  ;;  %v199_v40 = vld [vmem:[#allocation5 + $0x2f0] sm:$0xff]  ;;  %v4420_v42 = vpack.c.bf16 %v202_v35, %v184_v34 }
  0xd3   :  { %v183_v41 = vld [vmem:[#allocation5 + $0x270] sm:$0xff] }
  0xd4   :  { %4127 = vmatpush1.bf16.msra.mxu0 %v4126_v51  ;;  %v4148_v51 = vpack.c.bf16 %v1204_v46, %v1186_v45  ;;  %v236_v45 = vld [vmem:[#allocation5 + $0x418] sm:$0xff] }
  0xd5   :  { %4255 = vmatpush1.bf16.msra.mxu1 %v4254_v52  ;;  %4129 = vmatprep.subr.bf16.mxu0 %v4128_v53  ;;  %v1185_v52 = vld [vmem:[#allocation5 + $0x21c0] sm:$0xff]  ;;  %v1203_v53 = vld [vmem:[#allocation5 + $0x2250] sm:$0xff]  ;;  %v220_v46 = vld [vmem:[#allocation5 + $0x398] sm:$0xff] }
  0xd6   :  { %4257 = vmatprep.subr.bf16.mxu1 %v4256_v57  ;;  %v1222_v57 = vld [vmem:[#allocation5 + $0x22e8] sm:$0xff]  ;;  %v4150_v61 = vpack.c.bf16 %v1203_v53, %v1185_v52  ;;  %v235_v52 = vld [vmem:[#allocation5 + $0x410] sm:$0xff]  ;;  %v4424_v54 = vpack.c.bf16 %v238_v47, %v220_v46 }
  0xd7   :  { %v219_v53 = vld [vmem:[#allocation5 + $0x390] sm:$0xff] }
  0xd8   :  { %4131 = vmatpush1.bf16.msra.mxu0 %v4130_v63  ;;  %v4152_v63 = vpack.c.bf16 %v1240_v58, %v1222_v57  ;;  %v272_v57 = vld [vmem:[#allocation5 + $0x538] sm:$0xff] }
  0xd9   :  { %4259 = vmatpush1.bf16.msra.mxu1 %v4258_v0  ;;  %4133 = vmatprep.subr.bf16.mxu0 %v4132_v1  ;;  %v1221_v0 = vld [vmem:[#allocation5 + $0x22e0] sm:$0xff]  ;;  %v1239_v1 = vld [vmem:[#allocation5 + $0x2370] sm:$0xff]  ;;  %v256_v58 = vld [vmem:[#allocation5 + $0x4b8] sm:$0xff] }
  0xda   :  { %4261 = vmatprep.subr.bf16.mxu1 %v4260_v5  ;;  %v110_v5 = vld [vmem:[#allocation5 + $0x28] sm:$0xff]  ;;  %v4154_v9 = vpack.c.bf16 %v1239_v1, %v1221_v0  ;;  %v255_v0 = vld [vmem:[#allocation5 + $0x4b0] sm:$0xff]  ;;  %v4428_v1 = vpack.c.bf16 %v274_v59, %v256_v58 }
  0xdb   :  { %v4430_v8 = vpack.c.bf16 %v273_v2, %v255_v0  ;;  %v470_v0 = vld [vmem:[#allocation5 + $0xb68] sm:$0xff]  ;;  %v472_v2 = vld [vmem:[#allocation5 + $0xb78] sm:$0xff] }
  0xdc   :  { %4135 = vmatpush1.bf16.msra.mxu0 %v4134_v11  ;;  %v4284_v11 = vpack.c.bf16 %v128_v6, %v110_v5  ;;  %v292_v5 = vld [vmem:[#allocation5 + $0x5d8] sm:$0xff]  ;;  %v310_v6 = vld [vmem:[#allocation5 + $0x668] sm:$0xff] }
  0xdd   :  { %4263 = vmatpush1.bf16.msra.mxu1 %v4262_v12  ;;  %4137 = vmatprep.subr.bf16.mxu0 %v4136_v13  ;;  %v109_v12 = vld [vmem:[#allocation5 + $0x20] sm:$0xff]  ;;  %v127_v13 = vld [vmem:[#allocation5 + $0xb0] sm:$0xff] }
  0xde   :  { %4265 = vmatprep.subr.bf16.mxu1 %v4264_v18  ;;  %v146_v18 = vld [vmem:[#allocation5 + $0x148] sm:$0xff]  ;;  %v4286_v23 = vpack.c.bf16 %v127_v13, %v109_v12  ;;  %v291_v12 = vld [vmem:[#allocation5 + $0x5d0] sm:$0xff]  ;;  %v4432_v13 = vpack.c.bf16 %v310_v6, %v292_v5 }
  0xe0   :  { %4139 = vmatpush1.bf16.msra.mxu0 %v4138_v25  ;;  %v4414_v25 = vpack.c.bf16 %v129_v17, %v111_v14  ;;  %v309_v14 = vld [vmem:[#allocation5 + $0x660] sm:$0xff]  ;;  %v344_v17 = vld [vmem:[#allocation5 + $0x778] sm:$0xff] }
  0xe1   :  { %4267 = vmatpush1.bf16.msra.mxu1 %v4266_v26  ;;  %4141 = vmatprep.subr.bf16.mxu0 %v4140_v27  ;;  %v4288_v26 = vpack.c.bf16 %v164_v19, %v146_v18  ;;  %v145_v27 = vld [vmem:[#allocation5 + $0x140] sm:$0xff]  ;;  %v328_v18 = vld [vmem:[#allocation5 + $0x6f8] sm:$0xff]  ;;  %v346_v19 = vld [vmem:[#allocation5 + $0x788] sm:$0xff]  ;;  %v4434_v21 = vpack.c.bf16 %v309_v14, %v291_v12 }
  0xe2   :  { %4269 = vmatprep.subr.bf16.mxu1 %v4268_v31  ;;  %v165_v31 = vld [vmem:[#allocation5 + $0x1e0] sm:$0xff]  ;;  %v4290_v36 = vpack.c.bf16 %v163_v28, %v145_v27  ;;  %v4436_v27 = vpack.c.bf16 %v346_v19, %v328_v18  ;;  %v506_v12 = vld [vmem:[#allocation5 + $0xc88] sm:$0xff]  ;;  %v508_v14 = vld [vmem:[#allocation5 + $0xc98] sm:$0xff] }
  0xe3   :  { %v345_v28 = vld [vmem:[#allocation5 + $0x780] sm:$0xff] }
  0xe4   :  { %4143 = vmatpush1.bf16.msra.mxu0 %v4142_v37  ;;  %v4418_v37 = vpack.c.bf16 %v165_v31, %v147_v29  ;;  %v362_v29 = vld [vmem:[#allocation5 + $0x808] sm:$0xff]  ;;  %v364_v31 = vld [vmem:[#allocation5 + $0x818] sm:$0xff] }
  0xe5   :  { %4271 = vmatpush1.bf16.msra.mxu1 %v4270_v38  ;;  %4145 = vmatprep.subr.bf16.mxu0 %v4144_v39  ;;  %v4292_v38 = vpack.c.bf16 %v200_v33, %v182_v32  ;;  %v181_v39 = vld [vmem:[#allocation5 + $0x260] sm:$0xff]  ;;  %v382_v32 = vld [vmem:[#allocation5 + $0x8a8] sm:$0xff] }
  0xe6   :  { %4273 = vmatprep.subr.bf16.mxu1 %v4272_v43  ;;  %v201_v43 = vld [vmem:[#allocation5 + $0x300] sm:$0xff]  ;;  %v4294_v48 = vpack.c.bf16 %v199_v40, %v181_v39  ;;  %v4440_v39 = vpack.c.bf16 %v382_v32, %v364_v31 }
  0xe7   :  { %v381_v40 = vld [vmem:[#allocation5 + $0x8a0] sm:$0xff] }
  0xe8   :  { %4147 = vmatpush1.bf16.msra.mxu0 %v4146_v49  ;;  %v4422_v49 = vpack.c.bf16 %v201_v43, %v183_v41  ;;  %v398_v41 = vld [vmem:[#allocation5 + $0x928] sm:$0xff]  ;;  %v400_v43 = vld [vmem:[#allocation5 + $0x938] sm:$0xff] }
  0xe9   :  { %4275 = vmatpush1.bf16.msra.mxu1 %v4274_v50  ;;  %4149 = vmatprep.subr.bf16.mxu0 %v4148_v51  ;;  %v4296_v50 = vpack.c.bf16 %v236_v45, %v218_v44  ;;  %v217_v51 = vld [vmem:[#allocation5 + $0x380] sm:$0xff]  ;;  %v418_v44 = vld [vmem:[#allocation5 + $0x9c8] sm:$0xff] }
  0xea   :  { %4277 = vmatprep.subr.bf16.mxu1 %v4276_v55  ;;  %v237_v55 = vld [vmem:[#allocation5 + $0x420] sm:$0xff]  ;;  %v4298_v60 = vpack.c.bf16 %v235_v52, %v217_v51  ;;  %v4444_v51 = vpack.c.bf16 %v418_v44, %v400_v43 }
  0xeb   :  { %v417_v52 = vld [vmem:[#allocation5 + $0x9c0] sm:$0xff] }
  0xec   :  { %4151 = vmatpush1.bf16.msra.mxu0 %v4150_v61  ;;  %v4300_v61 = vpack.c.bf16 %v272_v57, %v254_v56  ;;  %v454_v56 = vld [vmem:[#allocation5 + $0xae8] sm:$0xff] }
  0xed   :  { %4279 = vmatpush1.bf16.msra.mxu1 %v4278_v62  ;;  %4153 = vmatprep.subr.bf16.mxu0 %v4152_v63  ;;  %v253_v62 = vld [vmem:[#allocation5 + $0x4a0] sm:$0xff]  ;;  %v271_v63 = vld [vmem:[#allocation5 + $0x530] sm:$0xff] }
  0xee   :  { %4281 = vmatprep.subr.bf16.mxu1 %v4280_v3  ;;  %v290_v3 = vld [vmem:[#allocation5 + $0x5c8] sm:$0xff]  ;;  %v4302_v7 = vpack.c.bf16 %v271_v63, %v253_v62  ;;  %v453_v63 = vld [vmem:[#allocation5 + $0xae0] sm:$0xff] }
  0xf0   :  { %4155 = vmatpush1.bf16.msra.mxu0 %v4154_v9  ;;  %v4304_v9 = vpack.c.bf16 %v308_v4, %v290_v3  ;;  %v490_v3 = vld [vmem:[#allocation5 + $0xc08] sm:$0xff] }
  0xf1   :  { %4283 = vmatpush1.bf16.msra.mxu1 %v4282_v10  ;;  %4285 = vmatprep.subr.bf16.mxu0 %v4284_v11  ;;  %v289_v10 = vld [vmem:[#allocation5 + $0x5c0] sm:$0xff]  ;;  %v307_v11 = vld [vmem:[#allocation5 + $0x650] sm:$0xff] }
  0xf2   :  { %4413 = vmatprep.subr.bf16.mxu1 %v4412_v15  ;;  %v326_v15 = vld [vmem:[#allocation5 + $0x6e8] sm:$0xff]  ;;  %v4306_v20 = vpack.c.bf16 %v307_v11, %v289_v10  ;;  %v4452_v10 = vpack.c.bf16 %v490_v3, %v472_v2  ;;  %v489_v11 = vld [vmem:[#allocation5 + $0xc00] sm:$0xff] }
  0xf3   :  { %1489 = vmatmul.mubr.f32.vlgmr.msra.gmra.mrb[0].mxu0 %v103_v22 }
  0xf4   :  { %1631 = vmatmul.mubr.f32.vlgmr.msra.gmra.mrb[0].mxu1 %v103_v22  ;;  %4287 = vmatpush1.bf16.msra.mxu0 %v4286_v23  ;;  %v4308_v22 = vpack.c.bf16 %v344_v17, %v326_v15  ;;  %v325_v23 = vld [vmem:[#allocation5 + $0x6e0] sm:$0xff]  ;;  %v526_v15 = vld [vmem:[#allocation5 + $0xd28] sm:$0xff] }
  0xf5   :  { %4415 = vmatpush1.bf16.msra.mxu1 %v4414_v25  ;;  %4289 = vmatprep.subr.bf16.mxu0 %v4288_v26  ;;  %v343_v25 = vld [vmem:[#allocation5 + $0x770] sm:$0xff] }
  0xf6   :  { %4417 = vmatprep.subr.bf16.mxu1 %v4416_v30  ;;  %1701 = vmatprep.mubr.f32.mxu0 %v5835_v16  ;;  %v327_v26 = vld [vmem:[#allocation5 + $0x6f0] sm:$0xff]  ;;  %v380_v30 = vld [vmem:[#allocation5 + $0x898] sm:$0xff]  ;;  %v4310_v33 = vpack.c.bf16 %v343_v25, %v325_v23  ;;  %v4456_v23 = vpack.c.bf16 %v526_v15, %v508_v14  ;;  %v525_v25 = vld [vmem:[#allocation5 + $0xd20] sm:$0xff] }
  0xf7   :  { %1843 = vmatprep.mubr.f32.mxu1 %v5835_v16  ;;  %v4426_v16 = vpack.c.bf16 %v237_v55, %v219_v53  ;;  %v4438_v34 = vpack.c.bf16 %v345_v28, %v327_v26  ;;  %v4312_v35 = vpack.c.bf16 %v380_v30, %v362_v29  ;;  %v434_v53 = vld [vmem:[#allocation5 + $0xa48] sm:$0xff]  ;;  %v436_v55 = vld [vmem:[#allocation5 + $0xa58] sm:$0xff] }
  0xf8   :  { %4291 = vmatpush1.bf16.msra.mxu0 %v4290_v36  ;;  %v361_v36 = vld [vmem:[#allocation5 + $0x800] sm:$0xff]  ;;  %v4448_v62 = vpack.c.bf16 %v454_v56, %v436_v55  ;;  %v542_v26 = vld [vmem:[#allocation5 + $0xda8] sm:$0xff]  ;;  %v544_v28 = vld [vmem:[#allocation5 + $0xdb8] sm:$0xff] }
  0xf9   :  { %4419 = vmatpush1.bf16.msra.mxu1 %v4418_v37  ;;  %4293 = vmatprep.subr.bf16.mxu0 %v4292_v38  ;;  %v379_v37 = vld [vmem:[#allocation5 + $0x890] sm:$0xff]  ;;  %v562_v29 = vld [vmem:[#allocation5 + $0xe48] sm:$0xff] }
  0xfa   :  { %4421 = vmatprep.subr.bf16.mxu1 %v4420_v42  ;;  %v363_v38 = vld [vmem:[#allocation5 + $0x810] sm:$0xff]  ;;  %v416_v42 = vld [vmem:[#allocation5 + $0x9b8] sm:$0xff]  ;;  %v4314_v45 = vpack.c.bf16 %v379_v37, %v361_v36  ;;  %v4460_v36 = vpack.c.bf16 %v562_v29, %v544_v28  ;;  %v561_v37 = vld [vmem:[#allocation5 + $0xe40] sm:$0xff] }
  0xfb   :  { %v4442_v46 = vpack.c.bf16 %v381_v40, %v363_v38  ;;  %v4316_v47 = vpack.c.bf16 %v416_v42, %v398_v41  ;;  %v578_v38 = vld [vmem:[#allocation5 + $0xec8] sm:$0xff]  ;;  %v580_v40 = vld [vmem:[#allocation5 + $0xed8] sm:$0xff] }
  0xfc   :  { %4295 = vmatpush1.bf16.msra.mxu0 %v4294_v48  ;;  %v397_v48 = vld [vmem:[#allocation5 + $0x920] sm:$0xff]  ;;  %v598_v41 = vld [vmem:[#allocation5 + $0xf68] sm:$0xff] }
  0xfd   :  { %4423 = vmatpush1.bf16.msra.mxu1 %v4422_v49  ;;  %4297 = vmatprep.subr.bf16.mxu0 %v4296_v50  ;;  %v415_v49 = vld [vmem:[#allocation5 + $0x9b0] sm:$0xff] }
  0xfe   :  { %4425 = vmatprep.subr.bf16.mxu1 %v4424_v54  ;;  %v399_v50 = vld [vmem:[#allocation5 + $0x930] sm:$0xff]  ;;  %v452_v54 = vld [vmem:[#allocation5 + $0xad8] sm:$0xff]  ;;  %v4318_v57 = vpack.c.bf16 %v415_v49, %v397_v48  ;;  %v4464_v48 = vpack.c.bf16 %v598_v41, %v580_v40  ;;  %v597_v49 = vld [vmem:[#allocation5 + $0xf60] sm:$0xff] }
  0xff   :  { %v4446_v58 = vpack.c.bf16 %v417_v52, %v399_v50  ;;  %v4320_v59 = vpack.c.bf16 %v452_v54, %v434_v53  ;;  %v614_v50 = vld [vmem:[#allocation5 + $0xfe8] sm:$0xff]  ;;  %v616_v52 = vld [vmem:[#allocation5 + $0xff8] sm:$0xff] }
 0x100   :  { %4299 = vmatpush1.bf16.msra.mxu0 %v4298_v60  ;;  %v433_v60 = vld [vmem:[#allocation5 + $0xa40] sm:$0xff]  ;;  %v634_v53 = vld [vmem:[#allocation5 + $0x1088] sm:$0xff] }
 0x101   :  { %4427 = vmatpush1.bf16.msra.mxu1 %v4426_v16  ;;  %4301 = vmatprep.subr.bf16.mxu0 %v4300_v61  ;;  %v451_v16 = vld [vmem:[#allocation5 + $0xad0] sm:$0xff] }
 0x102   :  { %4429 = vmatprep.subr.bf16.mxu1 %v4428_v1  ;;  %v435_v61 = vld [vmem:[#allocation5 + $0xa50] sm:$0xff]  ;;  %v488_v1 = vld [vmem:[#allocation5 + $0xbf8] sm:$0xff]  ;;  %v4322_v4 = vpack.c.bf16 %v451_v16, %v433_v60  ;;  %v4468_v60 = vpack.c.bf16 %v634_v53, %v616_v52  ;;  %v633_v16 = vld [vmem:[#allocation5 + $0x1080] sm:$0xff] }
 0x103   :  { %v4450_v5 = vpack.c.bf16 %v453_v63, %v435_v61  ;;  %v4324_v6 = vpack.c.bf16 %v488_v1, %v470_v0  ;;  %v650_v61 = vld [vmem:[#allocation5 + $0x1108] sm:$0xff]  ;;  %v652_v63 = vld [vmem:[#allocation5 + $0x1118] sm:$0xff] }
 0x104   :  { %4303 = vmatpush1.bf16.msra.mxu0 %v4302_v7  ;;  %v469_v7 = vld [vmem:[#allocation5 + $0xb60] sm:$0xff]  ;;  %v670_v0 = vld [vmem:[#allocation5 + $0x11a8] sm:$0xff] }
 0x105   :  { %4431 = vmatpush1.bf16.msra.mxu1 %v4430_v8  ;;  %4305 = vmatprep.subr.bf16.mxu0 %v4304_v9  ;;  %v487_v8 = vld [vmem:[#allocation5 + $0xbf0] sm:$0xff] }
 0x106   :  { %4433 = vmatprep.subr.bf16.mxu1 %v4432_v13  ;;  %v471_v9 = vld [vmem:[#allocation5 + $0xb70] sm:$0xff]  ;;  %v524_v13 = vld [vmem:[#allocation5 + $0xd18] sm:$0xff]  ;;  %v4326_v17 = vpack.c.bf16 %v487_v8, %v469_v7  ;;  %v4472_v7 = vpack.c.bf16 %v670_v0, %v652_v63  ;;  %v669_v8 = vld [vmem:[#allocation5 + $0x11a0] sm:$0xff] }
 0x107   :  { %v4454_v18 = vpack.c.bf16 %v489_v11, %v471_v9  ;;  %v4328_v19 = vpack.c.bf16 %v524_v13, %v506_v12  ;;  %v686_v9 = vld [vmem:[#allocation5 + $0x1228] sm:$0xff]  ;;  %v688_v11 = vld [vmem:[#allocation5 + $0x1238] sm:$0xff] }
 0x108   :  { %4307 = vmatpush1.bf16.msra.mxu0 %v4306_v20  ;;  %v505_v20 = vld [vmem:[#allocation5 + $0xc80] sm:$0xff]  ;;  %v706_v12 = vld [vmem:[#allocation5 + $0x12c8] sm:$0xff] }
 0x109   :  { %4435 = vmatpush1.bf16.msra.mxu1 %v4434_v21  ;;  %4309 = vmatprep.subr.bf16.mxu0 %v4308_v22  ;;  %v523_v21 = vld [vmem:[#allocation5 + $0xd10] sm:$0xff] }
 0x10a   :  { %4437 = vmatprep.subr.bf16.mxu1 %v4436_v27  ;;  %v507_v22 = vld [vmem:[#allocation5 + $0xc90] sm:$0xff]  ;;  %v560_v27 = vld [vmem:[#allocation5 + $0xe38] sm:$0xff]  ;;  %v4330_v30 = vpack.c.bf16 %v523_v21, %v505_v20  ;;  %v4476_v20 = vpack.c.bf16 %v706_v12, %v688_v11  ;;  %v705_v21 = vld [vmem:[#allocation5 + $0x12c0] sm:$0xff] }
 0x10b   :  { %v4458_v31 = vpack.c.bf16 %v525_v25, %v507_v22  ;;  %v4332_v32 = vpack.c.bf16 %v560_v27, %v542_v26  ;;  %v722_v22 = vld [vmem:[#allocation5 + $0x1348] sm:$0xff]  ;;  %v724_v25 = vld [vmem:[#allocation5 + $0x1358] sm:$0xff] }
 0x10c   :  { %4311 = vmatpush1.bf16.msra.mxu0 %v4310_v33  ;;  %v541_v33 = vld [vmem:[#allocation5 + $0xda0] sm:$0xff]  ;;  %v742_v26 = vld [vmem:[#allocation5 + $0x13e8] sm:$0xff] }
 0x10d   :  { %4439 = vmatpush1.bf16.msra.mxu1 %v4438_v34  ;;  %4313 = vmatprep.subr.bf16.mxu0 %v4312_v35  ;;  %v559_v34 = vld [vmem:[#allocation5 + $0xe30] sm:$0xff] }
 0x10e   :  { %4441 = vmatprep.subr.bf16.mxu1 %v4440_v39  ;;  %v543_v35 = vld [vmem:[#allocation5 + $0xdb0] sm:$0xff]  ;;  %v596_v39 = vld [vmem:[#allocation5 + $0xf58] sm:$0xff]  ;;  %v4334_v42 = vpack.c.bf16 %v559_v34, %v541_v33  ;;  %v4480_v33 = vpack.c.bf16 %v742_v26, %v724_v25  ;;  %v741_v34 = vld [vmem:[#allocation5 + $0x13e0] sm:$0xff] }
 0x10f   :  { %v4462_v43 = vpack.c.bf16 %v561_v37, %v543_v35  ;;  %v4336_v44 = vpack.c.bf16 %v596_v39, %v578_v38  ;;  %v758_v35 = vld [vmem:[#allocation5 + $0x1468] sm:$0xff]  ;;  %v5530_v37 = vld [vmem:[#allocation2] sm:$0xff]  ;;  %v760_v38 = vld [vmem:[#allocation5 + $0x1478] sm:$0xff] }
 0x110   :  { %4315 = vmatpush1.bf16.msra.mxu0 %v4314_v45  ;;  %v577_v45 = vld [vmem:[#allocation5 + $0xec0] sm:$0xff]  ;;  %v778_v39 = vld [vmem:[#allocation5 + $0x1508] sm:$0xff] }
 0x111   :  { %4443 = vmatpush1.bf16.msra.mxu1 %v4442_v46  ;;  %4317 = vmatprep.subr.bf16.mxu0 %v4316_v47  ;;  %v595_v46 = vld [vmem:[#allocation5 + $0xf50] sm:$0xff] }
 0x112   :  { %4445 = vmatprep.subr.bf16.mxu1 %v4444_v51  ;;  %v579_v47 = vld [vmem:[#allocation5 + $0xed0] sm:$0xff]  ;;  %v632_v51 = vld [vmem:[#allocation5 + $0x1078] sm:$0xff]  ;;  %v4338_v54 = vpack.c.bf16 %v595_v46, %v577_v45  ;;  %v4484_v46 = vpack.c.bf16 %v778_v39, %v760_v38  ;;  %v937_v39 = vld [vmem:[#allocation5 + $0x1a00] sm:$0xff] }
 0x113   :  { %v4466_v55 = vpack.c.bf16 %v597_v49, %v579_v47  ;;  %v4340_v56 = vpack.c.bf16 %v632_v51, %v614_v50  ;;  %v759_v45 = vld [vmem:[#allocation5 + $0x1470] sm:$0xff]  ;;  %v777_v47 = vld [vmem:[#allocation5 + $0x1500] sm:$0xff]  ;;  %v812_v49 = vld [vmem:[#allocation5 + $0x1618] sm:$0xff] }
 0x114   :  { %4319 = vmatpush1.bf16.msra.mxu0 %v4318_v57  ;;  %v613_v57 = vld [vmem:[#allocation5 + $0xfe0] sm:$0xff]  ;;  %v796_v50 = vld [vmem:[#allocation5 + $0x1598] sm:$0xff]  ;;  %v814_v51 = vld [vmem:[#allocation5 + $0x1628] sm:$0xff]  ;;  %v4486_v53 = vpack.c.bf16 %v777_v47, %v759_v45 }
 0x115   :  { %4447 = vmatpush1.bf16.msra.mxu1 %v4446_v58  ;;  %4321 = vmatprep.subr.bf16.mxu0 %v4320_v59  ;;  %v631_v58 = vld [vmem:[#allocation5 + $0x1070] sm:$0xff]  ;;  %v992_v45 = vld [vmem:[#allocation5 + $0x1bb8] sm:$0xff]  ;;  %v994_v47 = vld [vmem:[#allocation5 + $0x1bc8] sm:$0xff] }
 0x116   :  { %4449 = vmatprep.subr.bf16.mxu1 %v4448_v62  ;;  %v615_v59 = vld [vmem:[#allocation5 + $0xff0] sm:$0xff]  ;;  %v668_v62 = vld [vmem:[#allocation5 + $0x1198] sm:$0xff]  ;;  %v4342_v1 = vpack.c.bf16 %v631_v58, %v613_v57  ;;  %v4488_v58 = vpack.c.bf16 %v814_v51, %v796_v50  ;;  %v973_v51 = vld [vmem:[#allocation5 + $0x1b20] sm:$0xff] }
 0x117   :  { %v4470_v2 = vpack.c.bf16 %v633_v16, %v615_v59  ;;  %v4344_v3 = vpack.c.bf16 %v668_v62, %v650_v61  ;;  %v795_v57 = vld [vmem:[#allocation5 + $0x1590] sm:$0xff]  ;;  %v813_v59 = vld [vmem:[#allocation5 + $0x1620] sm:$0xff]  ;;  %v848_v16 = vld [vmem:[#allocation5 + $0x1738] sm:$0xff] }
 0x118   :  { %4323 = vmatpush1.bf16.msra.mxu0 %v4322_v4  ;;  %v649_v4 = vld [vmem:[#allocation5 + $0x1100] sm:$0xff]  ;;  %v832_v61 = vld [vmem:[#allocation5 + $0x16b8] sm:$0xff]  ;;  %v850_v62 = vld [vmem:[#allocation5 + $0x1748] sm:$0xff] }
 0x119   :  { %4451 = vmatpush1.bf16.msra.mxu1 %v4450_v5  ;;  %4325 = vmatprep.subr.bf16.mxu0 %v4324_v6  ;;  %v667_v5 = vld [vmem:[#allocation5 + $0x1190] sm:$0xff] }
 0x11a   :  { %4453 = vmatprep.subr.bf16.mxu1 %v4452_v10  ;;  %v651_v6 = vld [vmem:[#allocation5 + $0x1110] sm:$0xff]  ;;  %v704_v10 = vld [vmem:[#allocation5 + $0x12b8] sm:$0xff]  ;;  %v4346_v13 = vpack.c.bf16 %v667_v5, %v649_v4  ;;  %v4492_v4 = vpack.c.bf16 %v850_v62, %v832_v61  ;;  %v849_v5 = vld [vmem:[#allocation5 + $0x1740] sm:$0xff] }
 0x11b   :  { %v4474_v14 = vpack.c.bf16 %v669_v8, %v651_v6  ;;  %v4348_v15 = vpack.c.bf16 %v704_v10, %v686_v9  ;;  %v866_v6 = vld [vmem:[#allocation5 + $0x17c8] sm:$0xff]  ;;  %v868_v8 = vld [vmem:[#allocation5 + $0x17d8] sm:$0xff]  ;;  %v1009_v62 = vld [vmem:[#allocation5 + $0x1c40] sm:$0xff] }
 0x11c   :  { %4327 = vmatpush1.bf16.msra.mxu0 %v4326_v17  ;;  %v685_v17 = vld [vmem:[#allocation5 + $0x1220] sm:$0xff]  ;;  %v886_v9 = vld [vmem:[#allocation5 + $0x1868] sm:$0xff] }
 0x11d   :  { %4455 = vmatpush1.bf16.msra.mxu1 %v4454_v18  ;;  %4329 = vmatprep.subr.bf16.mxu0 %v4328_v19  ;;  %v703_v18 = vld [vmem:[#allocation5 + $0x12b0] sm:$0xff] }
 0x11e   :  { %4457 = vmatprep.subr.bf16.mxu1 %v4456_v23  ;;  %v687_v19 = vld [vmem:[#allocation5 + $0x1230] sm:$0xff]  ;;  %v740_v23 = vld [vmem:[#allocation5 + $0x13d8] sm:$0xff]  ;;  %v4350_v27 = vpack.c.bf16 %v703_v18, %v685_v17  ;;  %v4496_v17 = vpack.c.bf16 %v886_v9, %v868_v8  ;;  %v885_v18 = vld [vmem:[#allocation5 + $0x1860] sm:$0xff] }
 0x11f   :  { %v4478_v28 = vpack.c.bf16 %v705_v21, %v687_v19  ;;  %v4352_v29 = vpack.c.bf16 %v740_v23, %v722_v22  ;;  %v902_v19 = vld [vmem:[#allocation5 + $0x18e8] sm:$0xff]  ;;  %v904_v21 = vld [vmem:[#allocation5 + $0x18f8] sm:$0xff]  ;;  %v1045_v9 = vld [vmem:[#allocation5 + $0x1d60] sm:$0xff] }
 0x120   :  { %4331 = vmatpush1.bf16.msra.mxu0 %v4330_v30  ;;  %v721_v30 = vld [vmem:[#allocation5 + $0x1340] sm:$0xff]  ;;  %v922_v22 = vld [vmem:[#allocation5 + $0x1988] sm:$0xff] }
 0x121   :  { %4459 = vmatpush1.bf16.msra.mxu1 %v4458_v31  ;;  %4333 = vmatprep.subr.bf16.mxu0 %v4332_v32  ;;  %v739_v31 = vld [vmem:[#allocation5 + $0x13d0] sm:$0xff] }
 0x122   :  { %4461 = vmatprep.subr.bf16.mxu1 %v4460_v36  ;;  %v723_v32 = vld [vmem:[#allocation5 + $0x1350] sm:$0xff]  ;;  %v776_v36 = vld [vmem:[#allocation5 + $0x14f8] sm:$0xff]  ;;  %v4354_v40 = vpack.c.bf16 %v739_v31, %v721_v30  ;;  %v4500_v30 = vpack.c.bf16 %v922_v22, %v904_v21  ;;  %v921_v31 = vld [vmem:[#allocation5 + $0x1980] sm:$0xff] }
 0x123   :  { %v4482_v41 = vpack.c.bf16 %v741_v34, %v723_v32  ;;  %v938_v32 = vld [vmem:[#allocation5 + $0x1a08] sm:$0xff]  ;;  %v940_v34 = vld [vmem:[#allocation5 + $0x1a18] sm:$0xff]  ;;  %v1081_v22 = vld [vmem:[#allocation5 + $0x1e80] sm:$0xff] }
 0x124   :  { %4335 = vmatpush1.bf16.msra.mxu0 %v4334_v42  ;;  %v4356_v42 = vpack.c.bf16 %v776_v36, %v758_v35  ;;  %v958_v35 = vld [vmem:[#allocation5 + $0x1aa8] sm:$0xff] }
 0x125   :  { %4463 = vmatpush1.bf16.msra.mxu1 %v4462_v43  ;;  %4337 = vmatprep.subr.bf16.mxu0 %v4336_v44  ;;  %v757_v43 = vld [vmem:[#allocation5 + $0x1460] sm:$0xff]  ;;  %v775_v44 = vld [vmem:[#allocation5 + $0x14f0] sm:$0xff] }
 0x126   :  { %4465 = vmatprep.subr.bf16.mxu1 %v4464_v48  ;;  %v794_v48 = vld [vmem:[#allocation5 + $0x1588] sm:$0xff]  ;;  %v4358_v52 = vpack.c.bf16 %v775_v44, %v757_v43  ;;  %v957_v43 = vld [vmem:[#allocation5 + $0x1aa0] sm:$0xff] }
 0x127   :  { %v974_v44 = vld [vmem:[#allocation5 + $0x1b28] sm:$0xff] }
 0x128   :  { %4339 = vmatpush1.bf16.msra.mxu0 %v4338_v54  ;;  %v4360_v54 = vpack.c.bf16 %v812_v49, %v794_v48  ;;  %v4380_v50 = vpack.c.bf16 %v992_v45, %v974_v44 }
 0x129   :  { %4467 = vmatpush1.bf16.msra.mxu1 %v4466_v55  ;;  %4341 = vmatprep.subr.bf16.mxu0 %v4340_v56  ;;  %v793_v55 = vld [vmem:[#allocation5 + $0x1580] sm:$0xff]  ;;  %v811_v56 = vld [vmem:[#allocation5 + $0x1610] sm:$0xff] }
 0x12a   :  { %4469 = vmatprep.subr.bf16.mxu1 %v4468_v60  ;;  %v830_v60 = vld [vmem:[#allocation5 + $0x16a8] sm:$0xff]  ;;  %v4362_v63 = vpack.c.bf16 %v811_v56, %v793_v55  ;;  %v993_v55 = vld [vmem:[#allocation5 + $0x1bc0] sm:$0xff] }
 0x12b   :  { %v4364_v0 = vpack.c.bf16 %v848_v16, %v830_v60  ;;  %v1010_v56 = vld [vmem:[#allocation5 + $0x1c48] sm:$0xff] }
 0x12c   :  { %4343 = vmatpush1.bf16.msra.mxu0 %v4342_v1  ;;  %v829_v1 = vld [vmem:[#allocation5 + $0x16a0] sm:$0xff] }
 0x12d   :  { %4471 = vmatpush1.bf16.msra.mxu1 %v4470_v2  ;;  %4345 = vmatprep.subr.bf16.mxu0 %v4344_v3  ;;  %v847_v2 = vld [vmem:[#allocation5 + $0x1730] sm:$0xff] }
 0x12e   :  { %4473 = vmatprep.subr.bf16.mxu1 %v4472_v7  ;;  %v831_v3 = vld [vmem:[#allocation5 + $0x16b0] sm:$0xff]  ;;  %v884_v7 = vld [vmem:[#allocation5 + $0x1858] sm:$0xff]  ;;  %v4366_v10 = vpack.c.bf16 %v847_v2, %v829_v1  ;;  %v1029_v1 = vld [vmem:[#allocation5 + $0x1ce0] sm:$0xff] }
 0x12f   :  { %v4494_v11 = vpack.c.bf16 %v849_v5, %v831_v3  ;;  %v4368_v12 = vpack.c.bf16 %v884_v7, %v866_v6  ;;  %v1046_v2 = vld [vmem:[#allocation5 + $0x1d68] sm:$0xff]  ;;  %v1064_v3 = vld [vmem:[#allocation5 + $0x1df8] sm:$0xff] }
 0x130   :  { %4347 = vmatpush1.bf16.msra.mxu0 %v4346_v13  ;;  %v865_v13 = vld [vmem:[#allocation5 + $0x17c0] sm:$0xff]  ;;  %v1066_v5 = vld [vmem:[#allocation5 + $0x1e08] sm:$0xff]  ;;  %v4388_v8 = vpack.c.bf16 %v1064_v3, %v1046_v2 }
 0x131   :  { %4475 = vmatpush1.bf16.msra.mxu1 %v4474_v14  ;;  %4349 = vmatprep.subr.bf16.mxu0 %v4348_v15  ;;  %v883_v14 = vld [vmem:[#allocation5 + $0x1850] sm:$0xff] }
 0x132   :  { %4477 = vmatprep.subr.bf16.mxu1 %v4476_v20  ;;  %v867_v15 = vld [vmem:[#allocation5 + $0x17d0] sm:$0xff]  ;;  %v920_v20 = vld [vmem:[#allocation5 + $0x1978] sm:$0xff]  ;;  %v4370_v23 = vpack.c.bf16 %v883_v14, %v865_v13  ;;  %v1065_v13 = vld [vmem:[#allocation5 + $0x1e00] sm:$0xff] }
 0x133   :  { %1702 = vmatmul.mubr.f32.vlgmr.msra.gmra.mrb[2].mxu0 %v5530_v37  ;;  %v4498_v25 = vpack.c.bf16 %v885_v18, %v867_v15  ;;  %v4372_v26 = vpack.c.bf16 %v920_v20, %v902_v19  ;;  %v1082_v14 = vld [vmem:[#allocation5 + $0x1e88] sm:$0xff]  ;;  %v1100_v15 = vld [vmem:[#allocation5 + $0x1f18] sm:$0xff] }
 0x134   :  { %4351 = vmatpush1.bf16.msra.mxu0 %v4350_v27  ;;  %1844 = vmatmul.mubr.f32.vlgmr.msra.gmra.mrb[2].mxu1 %v5530_v37  ;;  %v901_v27 = vld [vmem:[#allocation5 + $0x18e0] sm:$0xff]  ;;  %v1102_v18 = vld [vmem:[#allocation5 + $0x1f28] sm:$0xff]  ;;  %v4392_v21 = vpack.c.bf16 %v1100_v15, %v1082_v14 }
 0x135   :  { %4479 = vmatpush1.bf16.msra.mxu1 %v4478_v28  ;;  %4353 = vmatprep.subr.bf16.mxu0 %v4352_v29  ;;  %v919_v28 = vld [vmem:[#allocation5 + $0x1970] sm:$0xff] }
 0x136   :  { %4481 = vmatprep.subr.bf16.mxu1 %v4480_v33  ;;  %1772 = vmatprep.mubr.f32.mxu0 %v5839_v24  ;;  %v903_v29 = vld [vmem:[#allocation5 + $0x18f0] sm:$0xff]  ;;  %v956_v33 = vld [vmem:[#allocation5 + $0x1a98] sm:$0xff]  ;;  %v4374_v36 = vpack.c.bf16 %v919_v28, %v901_v27  ;;  %v1101_v27 = vld [vmem:[#allocation5 + $0x1f20] sm:$0xff] }
 0x137   :  { %1914 = vmatprep.mubr.f32.mxu1 %v5839_v24  ;;  %v4490_v24 = vpack.c.bf16 %v813_v59, %v795_v57  ;;  %v4502_v37 = vpack.c.bf16 %v921_v31, %v903_v29  ;;  %v4376_v38 = vpack.c.bf16 %v956_v33, %v938_v32  ;;  %v1028_v57 = vld [vmem:[#allocation5 + $0x1cd8] sm:$0xff]  ;;  %v1030_v59 = vld [vmem:[#allocation5 + $0x1ce8] sm:$0xff] }
 0x138   :  { %4355 = vmatpush1.bf16.msra.mxu0 %v4354_v40  ;;  %v955_v40 = vld [vmem:[#allocation5 + $0x1a90] sm:$0xff]  ;;  %v4384_v61 = vpack.c.bf16 %v1028_v57, %v1010_v56  ;;  %v1118_v28 = vld [vmem:[#allocation5 + $0x1fa8] sm:$0xff]  ;;  %v1136_v29 = vld [vmem:[#allocation5 + $0x2038] sm:$0xff] }
 0x139   :  { %4483 = vmatpush1.bf16.msra.mxu1 %v4482_v41  ;;  %4357 = vmatprep.subr.bf16.mxu0 %v4356_v42  ;;  %v939_v41 = vld [vmem:[#allocation5 + $0x1a10] sm:$0xff]  ;;  %v4504_v42 = vpack.c.bf16 %v958_v35, %v940_v34  ;;  %v4378_v48 = vpack.c.bf16 %v955_v40, %v937_v39  ;;  %v1138_v31 = vld [vmem:[#allocation5 + $0x2048] sm:$0xff]  ;;  %v4396_v34 = vpack.c.bf16 %v1136_v29, %v1118_v28  ;;  %v1117_v35 = vld [vmem:[#allocation5 + $0x1fa0] sm:$0xff] }
 0x13a   :  { %4485 = vmatprep.subr.bf16.mxu1 %v4484_v46  ;;  %v976_v46 = vld [vmem:[#allocation5 + $0x1b38] sm:$0xff]  ;;  %v4506_v49 = vpack.c.bf16 %v957_v43, %v939_v41  ;;  %v1137_v39 = vld [vmem:[#allocation5 + $0x2040] sm:$0xff]  ;;  %v1154_v40 = vld [vmem:[#allocation5 + $0x20c8] sm:$0xff] }
 0x13b   :  { %v1172_v41 = vld [vmem:[#allocation5 + $0x2158] sm:$0xff]  ;;  %v1174_v43 = vld [vmem:[#allocation5 + $0x2168] sm:$0xff] }
 0x13c   :  { %4359 = vmatpush1.bf16.msra.mxu0 %v4358_v52  ;;  %v991_v52 = vld [vmem:[#allocation5 + $0x1bb0] sm:$0xff] }
 0x13d   :  { %4487 = vmatpush1.bf16.msra.mxu1 %v4486_v53  ;;  %4361 = vmatprep.subr.bf16.mxu0 %v4360_v54  ;;  %v975_v53 = vld [vmem:[#allocation5 + $0x1b30] sm:$0xff]  ;;  %v4508_v54 = vpack.c.bf16 %v994_v47, %v976_v46  ;;  %v4382_v60 = vpack.c.bf16 %v991_v52, %v973_v51  ;;  %v4400_v46 = vpack.c.bf16 %v1172_v41, %v1154_v40  ;;  %v1153_v47 = vld [vmem:[#allocation5 + $0x20c0] sm:$0xff]  ;;  %v1190_v52 = vld [vmem:[#allocation5 + $0x21e8] sm:$0xff] }
 0x13e   :  { %4489 = vmatprep.subr.bf16.mxu1 %v4488_v58  ;;  %v1012_v58 = vld [vmem:[#allocation5 + $0x1c58] sm:$0xff]  ;;  %v4510_v16 = vpack.c.bf16 %v993_v55, %v975_v53  ;;  %v1173_v51 = vld [vmem:[#allocation5 + $0x2160] sm:$0xff]  ;;  %v1210_v55 = vld [vmem:[#allocation5 + $0x2288] sm:$0xff] }
 0x13f   :  { %v1208_v53 = vld [vmem:[#allocation5 + $0x2278] sm:$0xff]  ;;  %v206_v40 = vld [vmem:[#allocation5 + $0x328] sm:$0xff] }
 0x140   :  { %4363 = vmatpush1.bf16.msra.mxu0 %v4362_v63  ;;  %v1027_v63 = vld [vmem:[#allocation5 + $0x1cd0] sm:$0xff] }
 0x141   :  { %4491 = vmatpush1.bf16.msra.mxu1 %v4490_v24  ;;  %4365 = vmatprep.subr.bf16.mxu0 %v4364_v0  ;;  %v1011_v24 = vld [vmem:[#allocation5 + $0x1c50] sm:$0xff]  ;;  %v4512_v0 = vpack.c.bf16 %v1030_v59, %v1012_v58  ;;  %v4386_v6 = vpack.c.bf16 %v1027_v63, %v1009_v62  ;;  %v4404_v58 = vpack.c.bf16 %v1208_v53, %v1190_v52  ;;  %v1189_v59 = vld [vmem:[#allocation5 + $0x21e0] sm:$0xff]  ;;  %v1226_v63 = vld [vmem:[#allocation5 + $0x2308] sm:$0xff] }
 0x142   :  { %4493 = vmatprep.subr.bf16.mxu1 %v4492_v4  ;;  %v1048_v4 = vld [vmem:[#allocation5 + $0x1d78] sm:$0xff]  ;;  %v4514_v7 = vpack.c.bf16 %v1029_v1, %v1011_v24  ;;  %v1209_v62 = vld [vmem:[#allocation5 + $0x2280] sm:$0xff]  ;;  %v1246_v1 = vld [vmem:[#allocation5 + $0x23a8] sm:$0xff] }
 0x143   :  { %v1244_v24 = vld [vmem:[#allocation5 + $0x2398] sm:$0xff]  ;;  %v242_v53 = vld [vmem:[#allocation5 + $0x448] sm:$0xff] }
 0x144   :  { %4367 = vmatpush1.bf16.msra.mxu0 %v4366_v10  ;;  %v1063_v10 = vld [vmem:[#allocation5 + $0x1df0] sm:$0xff]  ;;  %v224_v52 = vld [vmem:[#allocation5 + $0x3b8] sm:$0xff] }
 0x145   :  { %4495 = vmatpush1.bf16.msra.mxu1 %v4494_v11  ;;  %4369 = vmatprep.subr.bf16.mxu0 %v4368_v12  ;;  %v1047_v11 = vld [vmem:[#allocation5 + $0x1d70] sm:$0xff]  ;;  %v4516_v12 = vpack.c.bf16 %v1066_v5, %v1048_v4  ;;  %v4390_v19 = vpack.c.bf16 %v1063_v10, %v1045_v9  ;;  %v4408_v4 = vpack.c.bf16 %v1244_v24, %v1226_v63  ;;  %v1225_v5 = vld [vmem:[#allocation5 + $0x2300] sm:$0xff]  ;;  %v114_v10 = vld [vmem:[#allocation5 + $0x48] sm:$0xff] }
 0x146   :  { %4497 = vmatprep.subr.bf16.mxu1 %v4496_v17  ;;  %v1084_v17 = vld [vmem:[#allocation5 + $0x1e98] sm:$0xff]  ;;  %v4518_v20 = vpack.c.bf16 %v1065_v13, %v1047_v11  ;;  %v1245_v9 = vld [vmem:[#allocation5 + $0x23a0] sm:$0xff]  ;;  %v134_v13 = vld [vmem:[#allocation5 + $0xe8] sm:$0xff] }
 0x147   :  { %v132_v11 = vld [vmem:[#allocation5 + $0xd8] sm:$0xff]  ;;  %v278_v24 = vld [vmem:[#allocation5 + $0x568] sm:$0xff] }
 0x148   :  { %4371 = vmatpush1.bf16.msra.mxu0 %v4370_v23  ;;  %v1099_v23 = vld [vmem:[#allocation5 + $0x1f10] sm:$0xff]  ;;  %v260_v63 = vld [vmem:[#allocation5 + $0x4d8] sm:$0xff] }
 0x149   :  { %4499 = vmatpush1.bf16.msra.mxu1 %v4498_v25  ;;  %4373 = vmatprep.subr.bf16.mxu0 %v4372_v26  ;;  %v1083_v25 = vld [vmem:[#allocation5 + $0x1e90] sm:$0xff]  ;;  %v4520_v26 = vpack.c.bf16 %v1102_v18, %v1084_v17  ;;  %v4394_v32 = vpack.c.bf16 %v1099_v23, %v1081_v22  ;;  %v4540_v17 = vpack.c.bf16 %v132_v11, %v114_v10  ;;  %v113_v18 = vld [vmem:[#allocation5 + $0x40] sm:$0xff]  ;;  %v150_v23 = vld [vmem:[#allocation5 + $0x168] sm:$0xff] }
 0x14a   :  { %4501 = vmatprep.subr.bf16.mxu1 %v4500_v30  ;;  %v1120_v30 = vld [vmem:[#allocation5 + $0x1fb8] sm:$0xff]  ;;  %v4522_v33 = vpack.c.bf16 %v1101_v27, %v1083_v25  ;;  %v133_v22 = vld [vmem:[#allocation5 + $0xe0] sm:$0xff]  ;;  %v170_v27 = vld [vmem:[#allocation5 + $0x208] sm:$0xff] }
 0x14b   :  { %v168_v25 = vld [vmem:[#allocation5 + $0x1f8] sm:$0xff]  ;;  %v314_v11 = vld [vmem:[#allocation5 + $0x688] sm:$0xff] }
 0x14c   :  { %4375 = vmatpush1.bf16.msra.mxu0 %v4374_v36  ;;  %v1135_v36 = vld [vmem:[#allocation5 + $0x2030] sm:$0xff]  ;;  %v296_v10 = vld [vmem:[#allocation5 + $0x5f8] sm:$0xff] }
 0x14d   :  { %4503 = vmatpush1.bf16.msra.mxu1 %v4502_v37  ;;  %4377 = vmatprep.subr.bf16.mxu0 %v4376_v38  ;;  %v1119_v37 = vld [vmem:[#allocation5 + $0x1fb0] sm:$0xff]  ;;  %v4524_v38 = vpack.c.bf16 %v1138_v31, %v1120_v30  ;;  %v4398_v44 = vpack.c.bf16 %v1135_v36, %v1117_v35  ;;  %v4544_v30 = vpack.c.bf16 %v168_v25, %v150_v23  ;;  %v149_v31 = vld [vmem:[#allocation5 + $0x160] sm:$0xff]  ;;  %v186_v36 = vld [vmem:[#allocation5 + $0x288] sm:$0xff] }
 0x14e   :  { %4505 = vmatprep.subr.bf16.mxu1 %v4504_v42  ;;  %v1156_v42 = vld [vmem:[#allocation5 + $0x20d8] sm:$0xff]  ;;  %v4526_v45 = vpack.c.bf16 %v1137_v39, %v1119_v37  ;;  %v169_v35 = vld [vmem:[#allocation5 + $0x200] sm:$0xff]  ;;  %v350_v25 = vld [vmem:[#allocation5 + $0x7a8] sm:$0xff] }
 0x14f   :  { %v204_v37 = vld [vmem:[#allocation5 + $0x318] sm:$0xff] }
 0x150   :  { %4379 = vmatpush1.bf16.msra.mxu0 %v4378_v48  ;;  %v1171_v48 = vld [vmem:[#allocation5 + $0x2150] sm:$0xff]  ;;  %v188_v39 = vld [vmem:[#allocation5 + $0x298] sm:$0xff] }
 0x151   :  { %4507 = vmatpush1.bf16.msra.mxu1 %v4506_v49  ;;  %4381 = vmatprep.subr.bf16.mxu0 %v4380_v50  ;;  %v1155_v49 = vld [vmem:[#allocation5 + $0x20d0] sm:$0xff]  ;;  %v4528_v50 = vpack.c.bf16 %v1174_v43, %v1156_v42  ;;  %v4402_v56 = vpack.c.bf16 %v1171_v48, %v1153_v47  ;;  %v4548_v43 = vpack.c.bf16 %v204_v37, %v186_v36  ;;  %v205_v48 = vld [vmem:[#allocation5 + $0x320] sm:$0xff]  ;;  %v332_v23 = vld [vmem:[#allocation5 + $0x718] sm:$0xff] }
 0x152   :  { %4509 = vmatprep.subr.bf16.mxu1 %v4508_v54  ;;  %v1192_v54 = vld [vmem:[#allocation5 + $0x21f8] sm:$0xff]  ;;  %v4530_v57 = vpack.c.bf16 %v1173_v51, %v1155_v49  ;;  %v4676_v47 = vpack.c.bf16 %v206_v40, %v188_v39  ;;  %v222_v49 = vld [vmem:[#allocation5 + $0x3a8] sm:$0xff] }
 0x153   :  { %v5532_v51 = vld [vmem:[#allocation2 + $0x8] sm:$0xff]  ;;  %v368_v36 = vld [vmem:[#allocation5 + $0x838] sm:$0xff] }
 0x154   :  { %4383 = vmatpush1.bf16.msra.mxu0 %v4382_v60  ;;  %v1207_v60 = vld [vmem:[#allocation5 + $0x2270] sm:$0xff]  ;;  %v386_v37 = vld [vmem:[#allocation5 + $0x8c8] sm:$0xff] }
 0x155   :  { %4511 = vmatpush1.bf16.msra.mxu1 %v4510_v16  ;;  %4385 = vmatprep.subr.bf16.mxu0 %v4384_v61  ;;  %v1191_v16 = vld [vmem:[#allocation5 + $0x21f0] sm:$0xff]  ;;  %v4532_v61 = vpack.c.bf16 %v1210_v55, %v1192_v54  ;;  %v4406_v2 = vpack.c.bf16 %v1207_v60, %v1189_v59  ;;  %v4680_v60 = vpack.c.bf16 %v242_v53, %v224_v52  ;;  %v401_v53 = vld [vmem:[#allocation5 + $0x940] sm:$0xff] }
 0x156   :  { %4513 = vmatprep.subr.bf16.mxu1 %v4512_v0  ;;  %v1228_v0 = vld [vmem:[#allocation5 + $0x2318] sm:$0xff]  ;;  %v4534_v3 = vpack.c.bf16 %v1209_v62, %v1191_v16  ;;  %v223_v59 = vld [vmem:[#allocation5 + $0x3b0] sm:$0xff]  ;;  %v241_v16 = vld [vmem:[#allocation5 + $0x440] sm:$0xff] }
 0x157   :  { %v276_v62 = vld [vmem:[#allocation5 + $0x558] sm:$0xff] }
 0x158   :  { %4387 = vmatpush1.bf16.msra.mxu0 %v4386_v6  ;;  %v1243_v6 = vld [vmem:[#allocation5 + $0x2390] sm:$0xff] }
 0x159   :  { %4515 = vmatpush1.bf16.msra.mxu1 %v4514_v7  ;;  %4389 = vmatprep.subr.bf16.mxu0 %v4388_v8  ;;  %v1227_v7 = vld [vmem:[#allocation5 + $0x2310] sm:$0xff]  ;;  %v4536_v8 = vpack.c.bf16 %v1246_v1, %v1228_v0  ;;  %v4410_v14 = vpack.c.bf16 %v1243_v6, %v1225_v5  ;;  %v4682_v1 = vpack.c.bf16 %v241_v16, %v223_v59  ;;  %v456_v59 = vld [vmem:[#allocation5 + $0xaf8] sm:$0xff]  ;;  %v458_v16 = vld [vmem:[#allocation5 + $0xb08] sm:$0xff] }
 0x15a   :  { %4517 = vmatprep.subr.bf16.mxu1 %v4516_v12  ;;  %v116_v12 = vld [vmem:[#allocation5 + $0x58] sm:$0xff]  ;;  %v4538_v15 = vpack.c.bf16 %v1245_v9, %v1227_v7  ;;  %v259_v5 = vld [vmem:[#allocation5 + $0x4d0] sm:$0xff]  ;;  %v4684_v6 = vpack.c.bf16 %v278_v24, %v260_v63  ;;  %v277_v7 = vld [vmem:[#allocation5 + $0x560] sm:$0xff] }
 0x15b   :  { %v312_v9 = vld [vmem:[#allocation5 + $0x678] sm:$0xff]  ;;  %v437_v24 = vld [vmem:[#allocation5 + $0xa60] sm:$0xff] }
 0x15c   :  { %4391 = vmatpush1.bf16.msra.mxu0 %v4390_v19  ;;  %v131_v19 = vld [vmem:[#allocation5 + $0xd0] sm:$0xff] }
 0x15d   :  { %4519 = vmatpush1.bf16.msra.mxu1 %v4518_v20  ;;  %4393 = vmatprep.subr.bf16.mxu0 %v4392_v21  ;;  %v115_v20 = vld [vmem:[#allocation5 + $0x50] sm:$0xff]  ;;  %v4668_v21 = vpack.c.bf16 %v134_v13, %v116_v12  ;;  %v4542_v28 = vpack.c.bf16 %v131_v19, %v113_v18  ;;  %v4686_v13 = vpack.c.bf16 %v277_v7, %v259_v5  ;;  %v492_v5 = vld [vmem:[#allocation5 + $0xc18] sm:$0xff]  ;;  %v494_v7 = vld [vmem:[#allocation5 + $0xc28] sm:$0xff] }
 0x15e   :  { %4521 = vmatprep.subr.bf16.mxu1 %v4520_v26  ;;  %v152_v26 = vld [vmem:[#allocation5 + $0x178] sm:$0xff]  ;;  %v4670_v29 = vpack.c.bf16 %v133_v22, %v115_v20  ;;  %v295_v18 = vld [vmem:[#allocation5 + $0x5f0] sm:$0xff]  ;;  %v4688_v19 = vpack.c.bf16 %v314_v11, %v296_v10  ;;  %v313_v20 = vld [vmem:[#allocation5 + $0x680] sm:$0xff] }
 0x15f   :  { %v348_v22 = vld [vmem:[#allocation5 + $0x798] sm:$0xff]  ;;  %v473_v11 = vld [vmem:[#allocation5 + $0xb80] sm:$0xff] }
 0x160   :  { %4395 = vmatpush1.bf16.msra.mxu0 %v4394_v32  ;;  %v167_v32 = vld [vmem:[#allocation5 + $0x1f0] sm:$0xff] }
 0x161   :  { %4523 = vmatpush1.bf16.msra.mxu1 %v4522_v33  ;;  %4397 = vmatprep.subr.bf16.mxu0 %v4396_v34  ;;  %v151_v33 = vld [vmem:[#allocation5 + $0x170] sm:$0xff]  ;;  %v4672_v34 = vpack.c.bf16 %v170_v27, %v152_v26  ;;  %v4546_v41 = vpack.c.bf16 %v167_v32, %v149_v31  ;;  %v4690_v27 = vpack.c.bf16 %v313_v20, %v295_v18  ;;  %v528_v18 = vld [vmem:[#allocation5 + $0xd38] sm:$0xff]  ;;  %v530_v20 = vld [vmem:[#allocation5 + $0xd48] sm:$0xff] }
 0x162   :  { %4525 = vmatprep.subr.bf16.mxu1 %v4524_v38  ;;  %v5531_v38 = vld [vmem:[#allocation2 + $0x10] sm:$0xff]  ;;  %v4674_v42 = vpack.c.bf16 %v169_v35, %v151_v33  ;;  %v4692_v32 = vpack.c.bf16 %v350_v25, %v332_v23  ;;  %v349_v33 = vld [vmem:[#allocation5 + $0x7a0] sm:$0xff]  ;;  %v384_v35 = vld [vmem:[#allocation5 + $0x8b8] sm:$0xff] }
 0x163   :  { %v331_v31 = vld [vmem:[#allocation5 + $0x710] sm:$0xff]  ;;  %v509_v25 = vld [vmem:[#allocation5 + $0xca0] sm:$0xff] }
 0x164   :  { %4399 = vmatpush1.bf16.msra.mxu0 %v4398_v44  ;;  %v185_v44 = vld [vmem:[#allocation5 + $0x280] sm:$0xff]  ;;  %v4694_v39 = vpack.c.bf16 %v349_v33, %v331_v31  ;;  %v564_v31 = vld [vmem:[#allocation5 + $0xe58] sm:$0xff]  ;;  %v566_v33 = vld [vmem:[#allocation5 + $0xe68] sm:$0xff] }
 0x165   :  { %4527 = vmatpush1.bf16.msra.mxu1 %v4526_v45  ;;  %4401 = vmatprep.subr.bf16.mxu0 %v4400_v46  ;;  %v203_v45 = vld [vmem:[#allocation5 + $0x310] sm:$0xff] }
 0x166   :  { %4529 = vmatprep.subr.bf16.mxu1 %v4528_v50  ;;  %v187_v46 = vld [vmem:[#allocation5 + $0x290] sm:$0xff]  ;;  %v240_v50 = vld [vmem:[#allocation5 + $0x438] sm:$0xff]  ;;  %v4550_v54 = vpack.c.bf16 %v203_v45, %v185_v44  ;;  %v4696_v44 = vpack.c.bf16 %v386_v37, %v368_v36  ;;  %v385_v45 = vld [vmem:[#allocation5 + $0x8c0] sm:$0xff] }
 0x167   :  { %v4678_v55 = vpack.c.bf16 %v205_v48, %v187_v46  ;;  %v402_v46 = vld [vmem:[#allocation5 + $0x948] sm:$0xff]  ;;  %v404_v48 = vld [vmem:[#allocation5 + $0x958] sm:$0xff]  ;;  %v545_v37 = vld [vmem:[#allocation5 + $0xdc0] sm:$0xff] }
 0x168   :  { %4403 = vmatpush1.bf16.msra.mxu0 %v4402_v56  ;;  %v4552_v56 = vpack.c.bf16 %v240_v50, %v222_v49  ;;  %v422_v49 = vld [vmem:[#allocation5 + $0x9e8] sm:$0xff] }
 0x169   :  { %4531 = vmatpush1.bf16.msra.mxu1 %v4530_v57  ;;  %4405 = vmatprep.subr.bf16.mxu0 %v4404_v58  ;;  %v221_v57 = vld [vmem:[#allocation5 + $0x3a0] sm:$0xff]  ;;  %v239_v58 = vld [vmem:[#allocation5 + $0x430] sm:$0xff] }
 0x16a   :  { %4533 = vmatprep.subr.bf16.mxu1 %v4532_v61  ;;  %v258_v61 = vld [vmem:[#allocation5 + $0x4c8] sm:$0xff]  ;;  %v4554_v0 = vpack.c.bf16 %v239_v58, %v221_v57  ;;  %v421_v57 = vld [vmem:[#allocation5 + $0x9e0] sm:$0xff] }
 0x16b   :  { %v438_v58 = vld [vmem:[#allocation5 + $0xa68] sm:$0xff] }
 0x16c   :  { %4407 = vmatpush1.bf16.msra.mxu0 %v4406_v2  ;;  %v4556_v2 = vpack.c.bf16 %v276_v62, %v258_v61  ;;  %v4576_v63 = vpack.c.bf16 %v456_v59, %v438_v58 }
 0x16d   :  { %4535 = vmatpush1.bf16.msra.mxu1 %v4534_v3  ;;  %4409 = vmatprep.subr.bf16.mxu0 %v4408_v4  ;;  %v257_v3 = vld [vmem:[#allocation5 + $0x4c0] sm:$0xff]  ;;  %v275_v4 = vld [vmem:[#allocation5 + $0x550] sm:$0xff] }
 0x16e   :  { %4537 = vmatprep.subr.bf16.mxu1 %v4536_v8  ;;  %v294_v8 = vld [vmem:[#allocation5 + $0x5e8] sm:$0xff]  ;;  %v4558_v12 = vpack.c.bf16 %v275_v4, %v257_v3  ;;  %v457_v3 = vld [vmem:[#allocation5 + $0xb00] sm:$0xff] }
 0x16f   :  { %v474_v4 = vld [vmem:[#allocation5 + $0xb88] sm:$0xff] }
 0x170   :  { %4411 = vmatpush1.bf16.msra.mxu0 %v4410_v14  ;;  %v4560_v14 = vpack.c.bf16 %v312_v9, %v294_v8  ;;  %v4580_v10 = vpack.c.bf16 %v492_v5, %v474_v4 }
 0x171   :  { %4539 = vmatpush1.bf16.msra.mxu1 %v4538_v15  ;;  %4541 = vmatprep.subr.bf16.mxu0 %v4540_v17  ;;  %v293_v15 = vld [vmem:[#allocation5 + $0x5e0] sm:$0xff]  ;;  %v311_v17 = vld [vmem:[#allocation5 + $0x670] sm:$0xff] }
 0x172   :  { %4669 = vmatprep.subr.bf16.mxu1 %v4668_v21  ;;  %v330_v21 = vld [vmem:[#allocation5 + $0x708] sm:$0xff]  ;;  %v4562_v26 = vpack.c.bf16 %v311_v17, %v293_v15  ;;  %v493_v15 = vld [vmem:[#allocation5 + $0xc20] sm:$0xff] }
 0x173   :  { %1773 = vmatmul.mubr.f32.vlgmr.msra.gmra.mrb[2].mxu0 %v5531_v38  ;;  %v510_v17 = vld [vmem:[#allocation5 + $0xca8] sm:$0xff] }
 0x174   :  { %1915 = vmatmul.mubr.f32.vlgmr.msra.gmra.mrb[2].mxu1 %v5531_v38  ;;  %4543 = vmatpush1.bf16.msra.mxu0 %v4542_v28  ;;  %v4564_v28 = vpack.c.bf16 %v348_v22, %v330_v21  ;;  %v4584_v23 = vpack.c.bf16 %v528_v18, %v510_v17 }
 0x175   :  { %4671 = vmatpush1.bf16.msra.mxu1 %v4670_v29  ;;  %4545 = vmatprep.subr.bf16.mxu0 %v4544_v30  ;;  %v329_v29 = vld [vmem:[#allocation5 + $0x700] sm:$0xff]  ;;  %v347_v30 = vld [vmem:[#allocation5 + $0x790] sm:$0xff] }
 0x176   :  { %4673 = vmatprep.subr.bf16.mxu1 %v4672_v34  ;;  %1985 = vmatprep.mubr.f32.mxu0 %v5532_v51  ;;  %v366_v34 = vld [vmem:[#allocation5 + $0x828] sm:$0xff]  ;;  %v4566_v38 = vpack.c.bf16 %v347_v30, %v329_v29  ;;  %v529_v29 = vld [vmem:[#allocation5 + $0xd40] sm:$0xff] }
 0x177   :  { %2127 = vmatprep.mubr.f32.mxu1 %v5532_v51  ;;  %v4568_v40 = vpack.c.bf16 %v384_v35, %v366_v34  ;;  %v546_v30 = vld [vmem:[#allocation5 + $0xdc8] sm:$0xff] }
 0x178   :  { %4547 = vmatpush1.bf16.msra.mxu0 %v4546_v41  ;;  %v365_v41 = vld [vmem:[#allocation5 + $0x820] sm:$0xff]  ;;  %v4588_v36 = vpack.c.bf16 %v564_v31, %v546_v30 }
 0x179   :  { %4675 = vmatpush1.bf16.msra.mxu1 %v4674_v42  ;;  %4549 = vmatprep.subr.bf16.mxu0 %v4548_v43  ;;  %v383_v42 = vld [vmem:[#allocation5 + $0x8b0] sm:$0xff] }
 0x17a   :  { %4677 = vmatprep.subr.bf16.mxu1 %v4676_v47  ;;  %v367_v43 = vld [vmem:[#allocation5 + $0x830] sm:$0xff]  ;;  %v420_v47 = vld [vmem:[#allocation5 + $0x9d8] sm:$0xff]  ;;  %v4570_v50 = vpack.c.bf16 %v383_v42, %v365_v41  ;;  %v565_v41 = vld [vmem:[#allocation5 + $0xe60] sm:$0xff] }
 0x17b   :  { %v4698_v51 = vpack.c.bf16 %v385_v45, %v367_v43  ;;  %v4572_v52 = vpack.c.bf16 %v420_v47, %v402_v46  ;;  %v582_v42 = vld [vmem:[#allocation5 + $0xee8] sm:$0xff]  ;;  %v600_v43 = vld [vmem:[#allocation5 + $0xf78] sm:$0xff] }
 0x17c   :  { %4551 = vmatpush1.bf16.msra.mxu0 %v4550_v54  ;;  %v419_v54 = vld [vmem:[#allocation5 + $0x9d0] sm:$0xff]  ;;  %v602_v45 = vld [vmem:[#allocation5 + $0xf88] sm:$0xff] }
 0x17d   :  { %4679 = vmatpush1.bf16.msra.mxu1 %v4678_v55  ;;  %4553 = vmatprep.subr.bf16.mxu0 %v4552_v56  ;;  %v403_v55 = vld [vmem:[#allocation5 + $0x950] sm:$0xff]  ;;  %v4700_v56 = vpack.c.bf16 %v422_v49, %v404_v48  ;;  %v4574_v61 = vpack.c.bf16 %v419_v54, %v401_v53  ;;  %v4592_v48 = vpack.c.bf16 %v600_v43, %v582_v42  ;;  %v581_v49 = vld [vmem:[#allocation5 + $0xee0] sm:$0xff]  ;;  %v618_v54 = vld [vmem:[#allocation5 + $0x1008] sm:$0xff] }
 0x17e   :  { %4681 = vmatprep.subr.bf16.mxu1 %v4680_v60  ;;  %v440_v60 = vld [vmem:[#allocation5 + $0xa78] sm:$0xff]  ;;  %v4702_v62 = vpack.c.bf16 %v421_v57, %v403_v55  ;;  %v601_v53 = vld [vmem:[#allocation5 + $0xf80] sm:$0xff]  ;;  %v638_v57 = vld [vmem:[#allocation5 + $0x10a8] sm:$0xff] }
 0x17f   :  { %v636_v55 = vld [vmem:[#allocation5 + $0x1098] sm:$0xff]  ;;  %v782_v42 = vld [vmem:[#allocation5 + $0x1528] sm:$0xff] }
 0x180   :  { %4555 = vmatpush1.bf16.msra.mxu0 %v4554_v0  ;;  %v455_v0 = vld [vmem:[#allocation5 + $0xaf0] sm:$0xff] }
 0x181   :  { %4683 = vmatpush1.bf16.msra.mxu1 %v4682_v1  ;;  %4557 = vmatprep.subr.bf16.mxu0 %v4556_v2  ;;  %v439_v1 = vld [vmem:[#allocation5 + $0xa70] sm:$0xff]  ;;  %v4704_v2 = vpack.c.bf16 %v458_v16, %v440_v60  ;;  %v4578_v8 = vpack.c.bf16 %v455_v0, %v437_v24  ;;  %v4596_v60 = vpack.c.bf16 %v636_v55, %v618_v54  ;;  %v617_v16 = vld [vmem:[#allocation5 + $0x1000] sm:$0xff]  ;;  %v654_v0 = vld [vmem:[#allocation5 + $0x1128] sm:$0xff] }
 0x182   :  { %4685 = vmatprep.subr.bf16.mxu1 %v4684_v6  ;;  %v476_v6 = vld [vmem:[#allocation5 + $0xb98] sm:$0xff]  ;;  %v4706_v9 = vpack.c.bf16 %v457_v3, %v439_v1  ;;  %v637_v24 = vld [vmem:[#allocation5 + $0x10a0] sm:$0xff]  ;;  %v674_v3 = vld [vmem:[#allocation5 + $0x11c8] sm:$0xff] }
 0x183   :  { %v672_v1 = vld [vmem:[#allocation5 + $0x11b8] sm:$0xff]  ;;  %v818_v55 = vld [vmem:[#allocation5 + $0x1648] sm:$0xff] }
 0x184   :  { %4559 = vmatpush1.bf16.msra.mxu0 %v4558_v12  ;;  %v491_v12 = vld [vmem:[#allocation5 + $0xc10] sm:$0xff]  ;;  %v800_v54 = vld [vmem:[#allocation5 + $0x15b8] sm:$0xff] }
 0x185   :  { %4687 = vmatpush1.bf16.msra.mxu1 %v4686_v13  ;;  %4561 = vmatprep.subr.bf16.mxu0 %v4560_v14  ;;  %v475_v13 = vld [vmem:[#allocation5 + $0xb90] sm:$0xff]  ;;  %v4708_v14 = vpack.c.bf16 %v494_v7, %v476_v6  ;;  %v4582_v21 = vpack.c.bf16 %v491_v12, %v473_v11  ;;  %v4600_v6 = vpack.c.bf16 %v672_v1, %v654_v0  ;;  %v653_v7 = vld [vmem:[#allocation5 + $0x1120] sm:$0xff]  ;;  %v690_v12 = vld [vmem:[#allocation5 + $0x1248] sm:$0xff] }
 0x186   :  { %4689 = vmatprep.subr.bf16.mxu1 %v4688_v19  ;;  %v512_v19 = vld [vmem:[#allocation5 + $0xcb8] sm:$0xff]  ;;  %v4710_v22 = vpack.c.bf16 %v493_v15, %v475_v13  ;;  %v673_v11 = vld [vmem:[#allocation5 + $0x11c0] sm:$0xff]  ;;  %v710_v15 = vld [vmem:[#allocation5 + $0x12e8] sm:$0xff] }
 0x187   :  { %v708_v13 = vld [vmem:[#allocation5 + $0x12d8] sm:$0xff]  ;;  %v854_v1 = vld [vmem:[#allocation5 + $0x1768] sm:$0xff] }
 0x188   :  { %4563 = vmatpush1.bf16.msra.mxu0 %v4562_v26  ;;  %v527_v26 = vld [vmem:[#allocation5 + $0xd30] sm:$0xff]  ;;  %v836_v0 = vld [vmem:[#allocation5 + $0x16d8] sm:$0xff] }
 0x189   :  { %4691 = vmatpush1.bf16.msra.mxu1 %v4690_v27  ;;  %4565 = vmatprep.subr.bf16.mxu0 %v4564_v28  ;;  %v511_v27 = vld [vmem:[#allocation5 + $0xcb0] sm:$0xff]  ;;  %v4712_v28 = vpack.c.bf16 %v530_v20, %v512_v19  ;;  %v4586_v34 = vpack.c.bf16 %v527_v26, %v509_v25  ;;  %v4604_v19 = vpack.c.bf16 %v708_v13, %v690_v12  ;;  %v689_v20 = vld [vmem:[#allocation5 + $0x1240] sm:$0xff]  ;;  %v726_v26 = vld [vmem:[#allocation5 + $0x1368] sm:$0xff] }
 0x18a   :  { %4693 = vmatprep.subr.bf16.mxu1 %v4692_v32  ;;  %v548_v32 = vld [vmem:[#allocation5 + $0xdd8] sm:$0xff]  ;;  %v4714_v35 = vpack.c.bf16 %v529_v29, %v511_v27  ;;  %v709_v25 = vld [vmem:[#allocation5 + $0x12e0] sm:$0xff]  ;;  %v746_v29 = vld [vmem:[#allocation5 + $0x1408] sm:$0xff] }
 0x18b   :  { %v744_v27 = vld [vmem:[#allocation5 + $0x13f8] sm:$0xff]  ;;  %v890_v13 = vld [vmem:[#allocation5 + $0x1888] sm:$0xff] }
 0x18c   :  { %4567 = vmatpush1.bf16.msra.mxu0 %v4566_v38  ;;  %v563_v38 = vld [vmem:[#allocation5 + $0xe50] sm:$0xff]  ;;  %v872_v12 = vld [vmem:[#allocation5 + $0x17f8] sm:$0xff] }
 0x18d   :  { %4695 = vmatpush1.bf16.msra.mxu1 %v4694_v39  ;;  %4569 = vmatprep.subr.bf16.mxu0 %v4568_v40  ;;  %v547_v39 = vld [vmem:[#allocation5 + $0xdd0] sm:$0xff]  ;;  %v4716_v40 = vpack.c.bf16 %v566_v33, %v548_v32  ;;  %v4590_v46 = vpack.c.bf16 %v563_v38, %v545_v37  ;;  %v4608_v32 = vpack.c.bf16 %v744_v27, %v726_v26  ;;  %v725_v33 = vld [vmem:[#allocation5 + $0x1360] sm:$0xff]  ;;  %v762_v38 = vld [vmem:[#allocation5 + $0x1488] sm:$0xff] }
 0x18e   :  { %4697 = vmatprep.subr.bf16.mxu1 %v4696_v44  ;;  %v584_v44 = vld [vmem:[#allocation5 + $0xef8] sm:$0xff]  ;;  %v4718_v47 = vpack.c.bf16 %v565_v41, %v547_v39  ;;  %v745_v37 = vld [vmem:[#allocation5 + $0x1400] sm:$0xff]  ;;  %v926_v27 = vld [vmem:[#allocation5 + $0x19a8] sm:$0xff] }
 0x18f   :  { %v780_v39 = vld [vmem:[#allocation5 + $0x1518] sm:$0xff] }
 0x190   :  { %4571 = vmatpush1.bf16.msra.mxu0 %v4570_v50  ;;  %v599_v50 = vld [vmem:[#allocation5 + $0xf70] sm:$0xff]  ;;  %v764_v41 = vld [vmem:[#allocation5 + $0x1498] sm:$0xff] }
 0x191   :  { %4699 = vmatpush1.bf16.msra.mxu1 %v4698_v51  ;;  %4573 = vmatprep.subr.bf16.mxu0 %v4572_v52  ;;  %v583_v51 = vld [vmem:[#allocation5 + $0xef0] sm:$0xff]  ;;  %v4720_v52 = vpack.c.bf16 %v602_v45, %v584_v44  ;;  %v4594_v58 = vpack.c.bf16 %v599_v50, %v581_v49  ;;  %v4612_v45 = vpack.c.bf16 %v780_v39, %v762_v38  ;;  %v781_v50 = vld [vmem:[#allocation5 + $0x1520] sm:$0xff]  ;;  %v908_v26 = vld [vmem:[#allocation5 + $0x1918] sm:$0xff] }
 0x192   :  { %4701 = vmatprep.subr.bf16.mxu1 %v4700_v56  ;;  %v620_v56 = vld [vmem:[#allocation5 + $0x1018] sm:$0xff]  ;;  %v4722_v59 = vpack.c.bf16 %v601_v53, %v583_v51  ;;  %v4740_v49 = vpack.c.bf16 %v782_v42, %v764_v41  ;;  %v798_v51 = vld [vmem:[#allocation5 + $0x15a8] sm:$0xff] }
 0x193   :  { %v5534_v53 = vld [vmem:[#allocation2 + $0x18] sm:$0xff]  ;;  %v962_v41 = vld [vmem:[#allocation5 + $0x1ac8] sm:$0xff] }
 0x194   :  { %4575 = vmatpush1.bf16.msra.mxu0 %v4574_v61  ;;  %v635_v61 = vld [vmem:[#allocation5 + $0x1090] sm:$0xff]  ;;  %v960_v38 = vld [vmem:[#allocation5 + $0x1ab8] sm:$0xff] }
 0x195   :  { %4703 = vmatpush1.bf16.msra.mxu1 %v4702_v62  ;;  %4577 = vmatprep.subr.bf16.mxu0 %v4576_v63  ;;  %v619_v62 = vld [vmem:[#allocation5 + $0x1010] sm:$0xff]  ;;  %v4724_v63 = vpack.c.bf16 %v638_v57, %v620_v56  ;;  %v4598_v4 = vpack.c.bf16 %v635_v61, %v617_v16  ;;  %v4744_v61 = vpack.c.bf16 %v818_v55, %v800_v54  ;;  %v980_v54 = vld [vmem:[#allocation5 + $0x1b58] sm:$0xff]  ;;  %v998_v55 = vld [vmem:[#allocation5 + $0x1be8] sm:$0xff] }
 0x196   :  { %4705 = vmatprep.subr.bf16.mxu1 %v4704_v2  ;;  %v656_v2 = vld [vmem:[#allocation5 + $0x1138] sm:$0xff]  ;;  %v4726_v5 = vpack.c.bf16 %v637_v24, %v619_v62  ;;  %v799_v16 = vld [vmem:[#allocation5 + $0x15b0] sm:$0xff]  ;;  %v817_v62 = vld [vmem:[#allocation5 + $0x1640] sm:$0xff] }
 0x197   :  { %v852_v24 = vld [vmem:[#allocation5 + $0x1758] sm:$0xff] }
 0x198   :  { %4579 = vmatpush1.bf16.msra.mxu0 %v4578_v8  ;;  %v671_v8 = vld [vmem:[#allocation5 + $0x11b0] sm:$0xff] }
 0x199   :  { %4707 = vmatpush1.bf16.msra.mxu1 %v4706_v9  ;;  %4581 = vmatprep.subr.bf16.mxu0 %v4580_v10  ;;  %v655_v9 = vld [vmem:[#allocation5 + $0x1130] sm:$0xff]  ;;  %v4728_v10 = vpack.c.bf16 %v674_v3, %v656_v2  ;;  %v4602_v17 = vpack.c.bf16 %v671_v8, %v653_v7  ;;  %v4746_v3 = vpack.c.bf16 %v817_v62, %v799_v16  ;;  %v997_v62 = vld [vmem:[#allocation5 + $0x1be0] sm:$0xff] }
 0x19a   :  { %4709 = vmatprep.subr.bf16.mxu1 %v4708_v14  ;;  %v692_v14 = vld [vmem:[#allocation5 + $0x1258] sm:$0xff]  ;;  %v4730_v18 = vpack.c.bf16 %v673_v11, %v655_v9  ;;  %v835_v7 = vld [vmem:[#allocation5 + $0x16d0] sm:$0xff]  ;;  %v4748_v8 = vpack.c.bf16 %v854_v1, %v836_v0  ;;  %v853_v9 = vld [vmem:[#allocation5 + $0x1760] sm:$0xff] }
 0x19b   :  { %v888_v11 = vld [vmem:[#allocation5 + $0x1878] sm:$0xff]  ;;  %v979_v16 = vld [vmem:[#allocation5 + $0x1b50] sm:$0xff]  ;;  %v1034_v1 = vld [vmem:[#allocation5 + $0x1d08] sm:$0xff] }
 0x19c   :  { %4583 = vmatpush1.bf16.msra.mxu0 %v4582_v21  ;;  %v707_v21 = vld [vmem:[#allocation5 + $0x12d0] sm:$0xff]  ;;  %v1016_v0 = vld [vmem:[#allocation5 + $0x1c78] sm:$0xff] }
 0x19d   :  { %4711 = vmatpush1.bf16.msra.mxu1 %v4710_v22  ;;  %4585 = vmatprep.subr.bf16.mxu0 %v4584_v23  ;;  %v691_v22 = vld [vmem:[#allocation5 + $0x1250] sm:$0xff]  ;;  %v4732_v23 = vpack.c.bf16 %v710_v15, %v692_v14  ;;  %v4606_v30 = vpack.c.bf16 %v707_v21, %v689_v20  ;;  %v4750_v15 = vpack.c.bf16 %v853_v9, %v835_v7  ;;  %v1033_v9 = vld [vmem:[#allocation5 + $0x1d00] sm:$0xff] }
 0x19e   :  { %4713 = vmatprep.subr.bf16.mxu1 %v4712_v28  ;;  %v728_v28 = vld [vmem:[#allocation5 + $0x1378] sm:$0xff]  ;;  %v4734_v31 = vpack.c.bf16 %v709_v25, %v691_v22  ;;  %v871_v20 = vld [vmem:[#allocation5 + $0x17f0] sm:$0xff]  ;;  %v4752_v21 = vpack.c.bf16 %v890_v13, %v872_v12  ;;  %v889_v22 = vld [vmem:[#allocation5 + $0x1880] sm:$0xff] }
 0x19f   :  { %v924_v25 = vld [vmem:[#allocation5 + $0x1998] sm:$0xff]  ;;  %v1015_v7 = vld [vmem:[#allocation5 + $0x1c70] sm:$0xff]  ;;  %v1070_v13 = vld [vmem:[#allocation5 + $0x1e28] sm:$0xff] }
 0x1a0   :  { %4587 = vmatpush1.bf16.msra.mxu0 %v4586_v34  ;;  %v743_v34 = vld [vmem:[#allocation5 + $0x13f0] sm:$0xff]  ;;  %v1052_v12 = vld [vmem:[#allocation5 + $0x1d98] sm:$0xff] }
 0x1a1   :  { %4715 = vmatpush1.bf16.msra.mxu1 %v4714_v35  ;;  %4589 = vmatprep.subr.bf16.mxu0 %v4588_v36  ;;  %v727_v35 = vld [vmem:[#allocation5 + $0x1370] sm:$0xff]  ;;  %v4736_v36 = vpack.c.bf16 %v746_v29, %v728_v28  ;;  %v4610_v43 = vpack.c.bf16 %v743_v34, %v725_v33  ;;  %v4754_v29 = vpack.c.bf16 %v889_v22, %v871_v20  ;;  %v1069_v22 = vld [vmem:[#allocation5 + $0x1e20] sm:$0xff] }
 0x1a2   :  { %4717 = vmatprep.subr.bf16.mxu1 %v4716_v40  ;;  %v5533_v40 = vld [vmem:[#allocation2] sm:$0xff]  ;;  %v4738_v44 = vpack.c.bf16 %v745_v37, %v727_v35  ;;  %v907_v33 = vld [vmem:[#allocation5 + $0x1910] sm:$0xff]  ;;  %v4756_v35 = vpack.c.bf16 %v926_v27, %v908_v26  ;;  %v942_v37 = vld [vmem:[#allocation5 + $0x1a28] sm:$0xff] }
 0x1a3   :  { %v1051_v20 = vld [vmem:[#allocation5 + $0x1d90] sm:$0xff]  ;;  %v1088_v26 = vld [vmem:[#allocation5 + $0x1eb8] sm:$0xff]  ;;  %v1106_v27 = vld [vmem:[#allocation5 + $0x1f48] sm:$0xff] }
 0x1a4   :  { %4591 = vmatpush1.bf16.msra.mxu0 %v4590_v46  ;;  %v761_v46 = vld [vmem:[#allocation5 + $0x1480] sm:$0xff] }
 0x1a5   :  { %4719 = vmatpush1.bf16.msra.mxu1 %v4718_v47  ;;  %4593 = vmatprep.subr.bf16.mxu0 %v4592_v48  ;;  %v779_v47 = vld [vmem:[#allocation5 + $0x1510] sm:$0xff] }
 0x1a6   :  { %4721 = vmatprep.subr.bf16.mxu1 %v4720_v52  ;;  %v763_v48 = vld [vmem:[#allocation5 + $0x1490] sm:$0xff]  ;;  %v816_v52 = vld [vmem:[#allocation5 + $0x1638] sm:$0xff]  ;;  %v4614_v56 = vpack.c.bf16 %v779_v47, %v761_v46  ;;  %v4632_v46 = vpack.c.bf16 %v960_v38, %v942_v37  ;;  %v941_v47 = vld [vmem:[#allocation5 + $0x1a20] sm:$0xff] }
 0x1a7   :  { %v4742_v57 = vpack.c.bf16 %v781_v50, %v763_v48  ;;  %v959_v48 = vld [vmem:[#allocation5 + $0x1ab0] sm:$0xff]  ;;  %v1122_v37 = vld [vmem:[#allocation5 + $0x1fc8] sm:$0xff]  ;;  %v1140_v38 = vld [vmem:[#allocation5 + $0x2058] sm:$0xff] }
 0x1a8   :  { %4595 = vmatpush1.bf16.msra.mxu0 %v4594_v58  ;;  %v4616_v58 = vpack.c.bf16 %v816_v52, %v798_v51  ;;  %v961_v51 = vld [vmem:[#allocation5 + $0x1ac0] sm:$0xff]  ;;  %v978_v52 = vld [vmem:[#allocation5 + $0x1b48] sm:$0xff] }
 0x1a9   :  { %4723 = vmatpush1.bf16.msra.mxu1 %v4722_v59  ;;  %4597 = vmatprep.subr.bf16.mxu0 %v4596_v60  ;;  %v797_v59 = vld [vmem:[#allocation5 + $0x15a0] sm:$0xff]  ;;  %v815_v60 = vld [vmem:[#allocation5 + $0x1630] sm:$0xff] }
 0x1aa   :  { %4725 = vmatprep.subr.bf16.mxu1 %v4724_v63  ;;  %v834_v63 = vld [vmem:[#allocation5 + $0x16c8] sm:$0xff]  ;;  %v4618_v2 = vpack.c.bf16 %v815_v60, %v797_v59  ;;  %v977_v59 = vld [vmem:[#allocation5 + $0x1b40] sm:$0xff]  ;;  %v995_v60 = vld [vmem:[#allocation5 + $0x1bd0] sm:$0xff] }
 0x1ac   :  { %4599 = vmatpush1.bf16.msra.mxu0 %v4598_v4  ;;  %v4620_v4 = vpack.c.bf16 %v852_v24, %v834_v63  ;;  %v1014_v63 = vld [vmem:[#allocation5 + $0x1c68] sm:$0xff]  ;;  %v1032_v24 = vld [vmem:[#allocation5 + $0x1cf8] sm:$0xff] }
 0x1ad   :  { %4727 = vmatpush1.bf16.msra.mxu1 %v4726_v5  ;;  %4601 = vmatprep.subr.bf16.mxu0 %v4600_v6  ;;  %v833_v5 = vld [vmem:[#allocation5 + $0x16c0] sm:$0xff]  ;;  %v851_v6 = vld [vmem:[#allocation5 + $0x1750] sm:$0xff] }
 0x1ae   :  { %4729 = vmatprep.subr.bf16.mxu1 %v4728_v10  ;;  %v870_v10 = vld [vmem:[#allocation5 + $0x17e8] sm:$0xff]  ;;  %v4622_v14 = vpack.c.bf16 %v851_v6, %v833_v5  ;;  %v1013_v5 = vld [vmem:[#allocation5 + $0x1c60] sm:$0xff]  ;;  %v1031_v6 = vld [vmem:[#allocation5 + $0x1cf0] sm:$0xff] }
 0x1b0   :  { %4603 = vmatpush1.bf16.msra.mxu0 %v4602_v17  ;;  %v4624_v17 = vpack.c.bf16 %v888_v11, %v870_v10  ;;  %v1050_v10 = vld [vmem:[#allocation5 + $0x1d88] sm:$0xff]  ;;  %v1068_v11 = vld [vmem:[#allocation5 + $0x1e18] sm:$0xff] }
 0x1b1   :  { %4731 = vmatpush1.bf16.msra.mxu1 %v4730_v18  ;;  %4605 = vmatprep.subr.bf16.mxu0 %v4604_v19  ;;  %v869_v18 = vld [vmem:[#allocation5 + $0x17e0] sm:$0xff]  ;;  %v887_v19 = vld [vmem:[#allocation5 + $0x1870] sm:$0xff] }
 0x1b2   :  { %4733 = vmatprep.subr.bf16.mxu1 %v4732_v23  ;;  %v906_v23 = vld [vmem:[#allocation5 + $0x1908] sm:$0xff]  ;;  %v4626_v28 = vpack.c.bf16 %v887_v19, %v869_v18  ;;  %v1049_v18 = vld [vmem:[#allocation5 + $0x1d80] sm:$0xff]  ;;  %v1067_v19 = vld [vmem:[#allocation5 + $0x1e10] sm:$0xff] }
 0x1b3   :  { %1986 = vmatmul.mubr.f32.vlgmr.msra.gmra.mrb[4].mxu0 %v5533_v40 }
 0x1b4   :  { %4607 = vmatpush1.bf16.msra.mxu0 %v4606_v30  ;;  %2128 = vmatmul.mubr.f32.vlgmr.msra.gmra.mrb[4].mxu1 %v5533_v40  ;;  %v4628_v30 = vpack.c.bf16 %v924_v25, %v906_v23  ;;  %v944_v40 = vld [vmem:[#allocation5 + $0x1a38] sm:$0xff]  ;;  %v1086_v23 = vld [vmem:[#allocation5 + $0x1ea8] sm:$0xff] }
 0x1b5   :  { %4735 = vmatpush1.bf16.msra.mxu1 %v4734_v31  ;;  %4609 = vmatprep.subr.bf16.mxu0 %v4608_v32  ;;  %v905_v31 = vld [vmem:[#allocation5 + $0x1900] sm:$0xff]  ;;  %v923_v32 = vld [vmem:[#allocation5 + $0x1990] sm:$0xff]  ;;  %v4760_v50 = vpack.c.bf16 %v962_v41, %v944_v40  ;;  %v1104_v25 = vld [vmem:[#allocation5 + $0x1f38] sm:$0xff] }
 0x1b6   :  { %4737 = vmatprep.subr.bf16.mxu1 %v4736_v36  ;;  %2056 = vmatprep.mubr.f32.mxu0 %v5534_v53  ;;  %v925_v36 = vld [vmem:[#allocation5 + $0x19a0] sm:$0xff]  ;;  %v1124_v40 = vld [vmem:[#allocation5 + $0x1fd8] sm:$0xff]  ;;  %v1142_v41 = vld [vmem:[#allocation5 + $0x2068] sm:$0xff] }
 0x1b7   :  { %2198 = vmatprep.mubr.f32.mxu1 %v5534_v53  ;;  %v996_v53 = vld [vmem:[#allocation5 + $0x1bd8] sm:$0xff] }
 0x1b8   :  { %4611 = vmatpush1.bf16.msra.mxu0 %v4610_v43  ;;  %v4630_v43 = vpack.c.bf16 %v923_v32, %v905_v31  ;;  %v1085_v31 = vld [vmem:[#allocation5 + $0x1ea0] sm:$0xff]  ;;  %v1103_v32 = vld [vmem:[#allocation5 + $0x1f30] sm:$0xff] }
 0x1b9   :  { %4739 = vmatpush1.bf16.msra.mxu1 %v4738_v44  ;;  %4613 = vmatprep.subr.bf16.mxu0 %v4612_v45  ;;  %v4758_v45 = vpack.c.bf16 %v925_v36, %v907_v33  ;;  %v1087_v33 = vld [vmem:[#allocation5 + $0x1eb0] sm:$0xff]  ;;  %v1105_v36 = vld [vmem:[#allocation5 + $0x1f40] sm:$0xff] }
 0x1ba   :  { %4741 = vmatprep.subr.bf16.mxu1 %v4740_v49  ;;  %v943_v49 = vld [vmem:[#allocation5 + $0x1a30] sm:$0xff] }
 0x1bc   :  { %4615 = vmatpush1.bf16.msra.mxu0 %v4614_v56  ;;  %v4634_v56 = vpack.c.bf16 %v959_v48, %v941_v47  ;;  %v1121_v47 = vld [vmem:[#allocation5 + $0x1fc0] sm:$0xff]  ;;  %v1139_v48 = vld [vmem:[#allocation5 + $0x2050] sm:$0xff] }
 0x1bd   :  { %4743 = vmatpush1.bf16.msra.mxu1 %v4742_v57  ;;  %4617 = vmatprep.subr.bf16.mxu0 %v4616_v58  ;;  %v4762_v57 = vpack.c.bf16 %v961_v51, %v943_v49  ;;  %v4636_v58 = vpack.c.bf16 %v996_v53, %v978_v52  ;;  %v1123_v49 = vld [vmem:[#allocation5 + $0x1fd0] sm:$0xff]  ;;  %v1141_v51 = vld [vmem:[#allocation5 + $0x2060] sm:$0xff]  ;;  %v1158_v52 = vld [vmem:[#allocation5 + $0x20e8] sm:$0xff] }
 0x1be   :  { %4745 = vmatprep.subr.bf16.mxu1 %v4744_v61  ;;  %v4764_v61 = vpack.c.bf16 %v998_v55, %v980_v54  ;;  %v1176_v53 = vld [vmem:[#allocation5 + $0x2178] sm:$0xff]  ;;  %v1178_v55 = vld [vmem:[#allocation5 + $0x2188] sm:$0xff] }
 0x1bf   :  { %v1160_v54 = vld [vmem:[#allocation5 + $0x20f8] sm:$0xff] }
 0x1c0   :  { %4619 = vmatpush1.bf16.msra.mxu0 %v4618_v2  ;;  %v4638_v2 = vpack.c.bf16 %v995_v60, %v977_v59  ;;  %v1157_v59 = vld [vmem:[#allocation5 + $0x20e0] sm:$0xff]  ;;  %v1175_v60 = vld [vmem:[#allocation5 + $0x2170] sm:$0xff] }
 0x1c1   :  { %4747 = vmatpush1.bf16.msra.mxu1 %v4746_v3  ;;  %4621 = vmatprep.subr.bf16.mxu0 %v4620_v4  ;;  %v4766_v3 = vpack.c.bf16 %v997_v62, %v979_v16  ;;  %v4640_v4 = vpack.c.bf16 %v1032_v24, %v1014_v63  ;;  %v1159_v16 = vld [vmem:[#allocation5 + $0x20f0] sm:$0xff]  ;;  %v1177_v62 = vld [vmem:[#allocation5 + $0x2180] sm:$0xff]  ;;  %v1194_v63 = vld [vmem:[#allocation5 + $0x2208] sm:$0xff] }
 0x1c2   :  { %4749 = vmatprep.subr.bf16.mxu1 %v4748_v8  ;;  %v4768_v8 = vpack.c.bf16 %v1034_v1, %v1016_v0  ;;  %v1212_v24 = vld [vmem:[#allocation5 + $0x2298] sm:$0xff]  ;;  %v1214_v1 = vld [vmem:[#allocation5 + $0x22a8] sm:$0xff] }
 0x1c3   :  { %v1196_v0 = vld [vmem:[#allocation5 + $0x2218] sm:$0xff] }
 0x1c4   :  { %4623 = vmatpush1.bf16.msra.mxu0 %v4622_v14  ;;  %v4642_v14 = vpack.c.bf16 %v1031_v6, %v1013_v5  ;;  %v1193_v5 = vld [vmem:[#allocation5 + $0x2200] sm:$0xff]  ;;  %v1211_v6 = vld [vmem:[#allocation5 + $0x2290] sm:$0xff] }
 0x1c5   :  { %4751 = vmatpush1.bf16.msra.mxu1 %v4750_v15  ;;  %4625 = vmatprep.subr.bf16.mxu0 %v4624_v17  ;;  %v4770_v15 = vpack.c.bf16 %v1033_v9, %v1015_v7  ;;  %v4644_v17 = vpack.c.bf16 %v1068_v11, %v1050_v10  ;;  %v1195_v7 = vld [vmem:[#allocation5 + $0x2210] sm:$0xff]  ;;  %v1213_v9 = vld [vmem:[#allocation5 + $0x22a0] sm:$0xff]  ;;  %v1230_v10 = vld [vmem:[#allocation5 + $0x2328] sm:$0xff] }
 0x1c6   :  { %v5847_v34 = vpop.f32.mrb[0].mxu0  ;;  %4753 = vmatprep.subr.bf16.mxu1 %v4752_v21  ;;  %v4772_v21 = vpack.c.bf16 %v1070_v13, %v1052_v12  ;;  %v1248_v11 = vld [vmem:[#allocation5 + $0x23b8] sm:$0xff]  ;;  %v1250_v13 = vld [vmem:[#allocation5 + $0x23c8] sm:$0xff] }
 0x1c7   :  { %v5849_v39 = vpop.f32.mrb[1].mxu0  ;;  %v5851_v42 = vpop.f32.mrb[0].mxu1  ;;  %v1232_v12 = vld [vmem:[#allocation5 + $0x2338] sm:$0xff] }
 0x1c8   :  { %4627 = vmatpush1.bf16.msra.mxu0 %v4626_v28  ;;  %v5853_v44 = vpop.f32.mrb[1].mxu1  ;;  %v4646_v28 = vpack.c.bf16 %v1067_v19, %v1049_v18  ;;  %v1229_v18 = vld [vmem:[#allocation5 + $0x2320] sm:$0xff]  ;;  %v1247_v19 = vld [vmem:[#allocation5 + $0x23b0] sm:$0xff] }
 0x1c9   :  { %4755 = vmatpush1.bf16.msra.mxu1 %v4754_v29  ;;  %4629 = vmatprep.subr.bf16.mxu0 %v4628_v30  ;;  %v4774_v29 = vpack.c.bf16 %v1069_v22, %v1051_v20  ;;  %v4648_v30 = vpack.c.bf16 %v1104_v25, %v1086_v23  ;;  %v1231_v20 = vld [vmem:[#allocation5 + $0x2330] sm:$0xff]  ;;  %v1249_v22 = vld [vmem:[#allocation5 + $0x23c0] sm:$0xff]  ;;  %v118_v23 = vld [vmem:[#allocation5 + $0x68] sm:$0xff] }
 0x1ca   :  { %4757 = vmatprep.subr.bf16.mxu1 %v4756_v35  ;;  %v4776_v35 = vpack.c.bf16 %v1106_v27, %v1088_v26  ;;  %v136_v25 = vld [vmem:[#allocation5 + $0xf8] sm:$0xff]  ;;  %v138_v27 = vld [vmem:[#allocation5 + $0x108] sm:$0xff] }
 0x1cb   :  { %v120_v26 = vld [vmem:[#allocation5 + $0x78] sm:$0xff] }
 0x1cc   :  { %4631 = vmatpush1.bf16.msra.mxu0 %v4630_v43  ;;  %v4650_v43 = vpack.c.bf16 %v1103_v32, %v1085_v31  ;;  %v117_v31 = vld [vmem:[#allocation5 + $0x60] sm:$0xff]  ;;  %v135_v32 = vld [vmem:[#allocation5 + $0xf0] sm:$0xff] }
 0x1cd   :  { %4759 = vmatpush1.bf16.msra.mxu1 %v4758_v45  ;;  %4633 = vmatprep.subr.bf16.mxu0 %v4632_v46  ;;  %v4778_v45 = vpack.c.bf16 %v1105_v36, %v1087_v33  ;;  %v4652_v46 = vpack.c.bf16 %v1140_v38, %v1122_v37  ;;  %v119_v33 = vld [vmem:[#allocation5 + $0x70] sm:$0xff]  ;;  %v137_v36 = vld [vmem:[#allocation5 + $0x100] sm:$0xff]  ;;  %v154_v37 = vld [vmem:[#allocation5 + $0x188] sm:$0xff] }
 0x1ce   :  { %4761 = vmatprep.subr.bf16.mxu1 %v4760_v50  ;;  %v4780_v50 = vpack.c.bf16 %v1142_v41, %v1124_v40  ;;  %v172_v38 = vld [vmem:[#allocation5 + $0x218] sm:$0xff]  ;;  %v174_v41 = vld [vmem:[#allocation5 + $0x228] sm:$0xff] }
 0x1cf   :  { %v156_v40 = vld [vmem:[#allocation5 + $0x198] sm:$0xff] }
 0x1d0   :  { %4635 = vmatpush1.bf16.msra.mxu0 %v4634_v56  ;;  %v4654_v56 = vpack.c.bf16 %v1139_v48, %v1121_v47  ;;  %v153_v47 = vld [vmem:[#allocation5 + $0x180] sm:$0xff]  ;;  %v171_v48 = vld [vmem:[#allocation5 + $0x210] sm:$0xff] }
 0x1d1   :  { %4763 = vmatpush1.bf16.msra.mxu1 %v4762_v57  ;;  %4637 = vmatprep.subr.bf16.mxu0 %v4636_v58  ;;  %v4782_v57 = vpack.c.bf16 %v1141_v51, %v1123_v49  ;;  %v4656_v58 = vpack.c.bf16 %v1176_v53, %v1158_v52  ;;  %v155_v49 = vld [vmem:[#allocation5 + $0x190] sm:$0xff]  ;;  %v173_v51 = vld [vmem:[#allocation5 + $0x220] sm:$0xff]  ;;  %v190_v52 = vld [vmem:[#allocation5 + $0x2a8] sm:$0xff] }
 0x1d2   :  { %4765 = vmatprep.subr.bf16.mxu1 %v4764_v61  ;;  %v4784_v61 = vpack.c.bf16 %v1178_v55, %v1160_v54  ;;  %v208_v53 = vld [vmem:[#allocation5 + $0x338] sm:$0xff]  ;;  %v5535_v54 = vld [vmem:[#allocation2 + $0x10] sm:$0xff] }
 0x1d3   :  { %v192_v55 = vld [vmem:[#allocation5 + $0x2b8] sm:$0xff] }
 0x1d4   :  { %4639 = vmatpush1.bf16.msra.mxu0 %v4638_v2  ;;  %v4658_v2 = vpack.c.bf16 %v1175_v60, %v1157_v59  ;;  %v4804_v59 = vpack.c.bf16 %v208_v53, %v190_v52  ;;  %v189_v60 = vld [vmem:[#allocation5 + $0x2a0] sm:$0xff] }
 0x1d5   :  { %4767 = vmatpush1.bf16.msra.mxu1 %v4766_v3  ;;  %4641 = vmatprep.subr.bf16.mxu0 %v4640_v4  ;;  %v4786_v3 = vpack.c.bf16 %v1177_v62, %v1159_v16  ;;  %v4660_v4 = vpack.c.bf16 %v1212_v24, %v1194_v63  ;;  %v207_v16 = vld [vmem:[#allocation5 + $0x330] sm:$0xff]  ;;  %v209_v63 = vld [vmem:[#allocation5 + $0x340] sm:$0xff]  ;;  %v226_v24 = vld [vmem:[#allocation5 + $0x3c8] sm:$0xff] }
 0x1d6   :  { %4769 = vmatprep.subr.bf16.mxu1 %v4768_v8  ;;  %v4788_v8 = vpack.c.bf16 %v1214_v1, %v1196_v0  ;;  %v244_v0 = vld [vmem:[#allocation5 + $0x458] sm:$0xff]  ;;  %v5536_v1 = vld [vmem:[#allocation2 + $0x8] sm:$0xff]  ;;  %v353_v53 = vld [vmem:[#allocation5 + $0x7c0] sm:$0xff] }
 0x1d8   :  { %4643 = vmatpush1.bf16.msra.mxu0 %v4642_v14  ;;  %v4662_v14 = vpack.c.bf16 %v1211_v6, %v1193_v5  ;;  %v4808_v6 = vpack.c.bf16 %v244_v0, %v226_v24  ;;  %v389_v24 = vld [vmem:[#allocation5 + $0x8e0] sm:$0xff]  ;;  %v406_v0 = vld [vmem:[#allocation5 + $0x968] sm:$0xff] }
 0x1d9   :  { %4771 = vmatpush1.bf16.msra.mxu1 %v4770_v15  ;;  %4645 = vmatprep.subr.bf16.mxu0 %v4644_v17  ;;  %v4790_v15 = vpack.c.bf16 %v1213_v9, %v1195_v7  ;;  %v4664_v17 = vpack.c.bf16 %v1248_v11, %v1230_v10  ;;  %v225_v7 = vld [vmem:[#allocation5 + $0x3c0] sm:$0xff]  ;;  %v227_v9 = vld [vmem:[#allocation5 + $0x3d0] sm:$0xff] }
 0x1da   :  { %4773 = vmatprep.subr.bf16.mxu1 %v4772_v21  ;;  %v4792_v21 = vpack.c.bf16 %v1250_v13, %v1232_v12  ;;  %v245_v11 = vld [vmem:[#allocation5 + $0x460] sm:$0xff]  ;;  %v262_v12 = vld [vmem:[#allocation5 + $0x4e8] sm:$0xff]  ;;  %v280_v13 = vld [vmem:[#allocation5 + $0x578] sm:$0xff] }
 0x1dc   :  { %4647 = vmatpush1.bf16.msra.mxu0 %v4646_v28  ;;  %v4666_v28 = vpack.c.bf16 %v1247_v19, %v1229_v18  ;;  %v4938_v18 = vpack.c.bf16 %v245_v11, %v227_v9  ;;  %v4812_v19 = vpack.c.bf16 %v280_v13, %v262_v12  ;;  %v407_v9 = vld [vmem:[#allocation5 + $0x970] sm:$0xff]  ;;  %v425_v11 = vld [vmem:[#allocation5 + $0xa00] sm:$0xff]  ;;  %v442_v12 = vld [vmem:[#allocation5 + $0xa88] sm:$0xff] }
 0x1dd   :  { %4775 = vmatpush1.bf16.msra.mxu1 %v4774_v29  ;;  %4649 = vmatprep.subr.bf16.mxu0 %v4648_v30  ;;  %v4794_v29 = vpack.c.bf16 %v1249_v22, %v1231_v20  ;;  %v4796_v30 = vpack.c.bf16 %v136_v25, %v118_v23  ;;  %v261_v20 = vld [vmem:[#allocation5 + $0x4e0] sm:$0xff]  ;;  %v263_v22 = vld [vmem:[#allocation5 + $0x4f0] sm:$0xff]  ;;  %v460_v13 = vld [vmem:[#allocation5 + $0xb18] sm:$0xff] }
 0x1de   :  { %4777 = vmatprep.subr.bf16.mxu1 %v4776_v35  ;;  %v4924_v35 = vpack.c.bf16 %v138_v27, %v120_v26  ;;  %v281_v25 = vld [vmem:[#allocation5 + $0x580] sm:$0xff]  ;;  %v298_v26 = vld [vmem:[#allocation5 + $0x608] sm:$0xff]  ;;  %v316_v27 = vld [vmem:[#allocation5 + $0x698] sm:$0xff] }
 0x1e0   :  { %4651 = vmatpush1.bf16.msra.mxu0 %v4650_v43  ;;  %v4798_v43 = vpack.c.bf16 %v135_v32, %v117_v31  ;;  %v4942_v31 = vpack.c.bf16 %v281_v25, %v263_v22  ;;  %v4816_v32 = vpack.c.bf16 %v316_v27, %v298_v26  ;;  %v443_v22 = vld [vmem:[#allocation5 + $0xa90] sm:$0xff]  ;;  %v461_v25 = vld [vmem:[#allocation5 + $0xb20] sm:$0xff]  ;;  %v478_v26 = vld [vmem:[#allocation5 + $0xba8] sm:$0xff] }
 0x1e1   :  { %4779 = vmatpush1.bf16.msra.mxu1 %v4778_v45  ;;  %4653 = vmatprep.subr.bf16.mxu0 %v4652_v46  ;;  %v4926_v45 = vpack.c.bf16 %v137_v36, %v119_v33  ;;  %v4800_v46 = vpack.c.bf16 %v172_v38, %v154_v37  ;;  %v297_v33 = vld [vmem:[#allocation5 + $0x600] sm:$0xff]  ;;  %v299_v36 = vld [vmem:[#allocation5 + $0x610] sm:$0xff]  ;;  %v496_v27 = vld [vmem:[#allocation5 + $0xc38] sm:$0xff] }
 0x1e2   :  { %4781 = vmatprep.subr.bf16.mxu1 %v4780_v50  ;;  %v4928_v50 = vpack.c.bf16 %v174_v41, %v156_v40  ;;  %v317_v38 = vld [vmem:[#allocation5 + $0x6a0] sm:$0xff]  ;;  %v334_v40 = vld [vmem:[#allocation5 + $0x728] sm:$0xff]  ;;  %v352_v41 = vld [vmem:[#allocation5 + $0x7b8] sm:$0xff] }
 0x1e4   :  { %4655 = vmatpush1.bf16.msra.mxu0 %v4654_v56  ;;  %v210_v56 = vld [vmem:[#allocation5 + $0x348] sm:$0xff] }
 0x1e5   :  { %4783 = vmatpush1.bf16.msra.mxu1 %v4782_v57  ;;  %4657 = vmatprep.subr.bf16.mxu0 %v4656_v58  ;;  %v4802_v57 = vpack.c.bf16 %v171_v48, %v153_v47  ;;  %v4930_v58 = vpack.c.bf16 %v173_v51, %v155_v49  ;;  %v4932_v62 = vpack.c.bf16 %v210_v56, %v192_v55  ;;  %v333_v49 = vld [vmem:[#allocation5 + $0x720] sm:$0xff]  ;;  %v335_v51 = vld [vmem:[#allocation5 + $0x730] sm:$0xff]  ;;  %v388_v55 = vld [vmem:[#allocation5 + $0x8d8] sm:$0xff] }
 0x1e6   :  { %4785 = vmatprep.subr.bf16.mxu1 %v4784_v61  ;;  %v191_v61 = vld [vmem:[#allocation5 + $0x2b0] sm:$0xff]  ;;  %v4946_v47 = vpack.c.bf16 %v317_v38, %v299_v36  ;;  %v4820_v48 = vpack.c.bf16 %v352_v41, %v334_v40  ;;  %v372_v56 = vld [vmem:[#allocation5 + $0x858] sm:$0xff]  ;;  %v497_v38 = vld [vmem:[#allocation5 + $0xc40] sm:$0xff] }
 0x1e7   :  { %v4934_v5 = vpack.c.bf16 %v209_v63, %v191_v61  ;;  %v387_v61 = vld [vmem:[#allocation5 + $0x8d0] sm:$0xff]  ;;  %v514_v40 = vld [vmem:[#allocation5 + $0xcc8] sm:$0xff]  ;;  %v532_v41 = vld [vmem:[#allocation5 + $0xd58] sm:$0xff] }
 0x1e8   :  { %4659 = vmatpush1.bf16.msra.mxu0 %v4658_v2  ;;  %v228_v2 = vld [vmem:[#allocation5 + $0x3d8] sm:$0xff]  ;;  %v479_v36 = vld [vmem:[#allocation5 + $0xbb0] sm:$0xff] }
 0x1e9   :  { %4787 = vmatpush1.bf16.msra.mxu1 %v4786_v3  ;;  %4661 = vmatprep.subr.bf16.mxu0 %v4660_v4  ;;  %v246_v3 = vld [vmem:[#allocation5 + $0x468] sm:$0xff]  ;;  %v4806_v4 = vpack.c.bf16 %v207_v16, %v189_v60  ;;  %v369_v16 = vld [vmem:[#allocation5 + $0x840] sm:$0xff] }
 0x1ea   :  { %4789 = vmatprep.subr.bf16.mxu1 %v4788_v8  ;;  %v243_v8 = vld [vmem:[#allocation5 + $0x450] sm:$0xff]  ;;  %v4936_v10 = vpack.c.bf16 %v246_v3, %v228_v2  ;;  %v408_v2 = vld [vmem:[#allocation5 + $0x978] sm:$0xff]  ;;  %v426_v3 = vld [vmem:[#allocation5 + $0xa08] sm:$0xff] }
 0x1ec   :  { %4663 = vmatpush1.bf16.msra.mxu0 %v4662_v14  ;;  %v264_v14 = vld [vmem:[#allocation5 + $0x4f8] sm:$0xff] }
 0x1ed   :  { %4791 = vmatpush1.bf16.msra.mxu1 %v4790_v15  ;;  %4665 = vmatprep.subr.bf16.mxu0 %v4664_v17  ;;  %v282_v15 = vld [vmem:[#allocation5 + $0x588] sm:$0xff]  ;;  %v4810_v17 = vpack.c.bf16 %v243_v8, %v225_v7  ;;  %v405_v7 = vld [vmem:[#allocation5 + $0x960] sm:$0xff]  ;;  %v423_v8 = vld [vmem:[#allocation5 + $0x9f0] sm:$0xff] }
 0x1ee   :  { %4793 = vmatprep.subr.bf16.mxu1 %v4792_v21  ;;  %v279_v21 = vld [vmem:[#allocation5 + $0x570] sm:$0xff]  ;;  %v4940_v23 = vpack.c.bf16 %v282_v15, %v264_v14  ;;  %v444_v14 = vld [vmem:[#allocation5 + $0xa98] sm:$0xff]  ;;  %v462_v15 = vld [vmem:[#allocation5 + $0xb28] sm:$0xff] }
 0x1f0   :  { %4667 = vmatpush1.bf16.msra.mxu0 %v4666_v28  ;;  %v300_v28 = vld [vmem:[#allocation5 + $0x618] sm:$0xff] }
 0x1f1   :  { %4795 = vmatpush1.bf16.msra.mxu1 %v4794_v29  ;;  %4797 = vmatprep.subr.bf16.mxu0 %v4796_v30  ;;  %v318_v29 = vld [vmem:[#allocation5 + $0x6a8] sm:$0xff]  ;;  %v4814_v30 = vpack.c.bf16 %v279_v21, %v261_v20  ;;  %v441_v20 = vld [vmem:[#allocation5 + $0xa80] sm:$0xff]  ;;  %v459_v21 = vld [vmem:[#allocation5 + $0xb10] sm:$0xff] }
 0x1f2   :  { %4925 = vmatprep.subr.bf16.mxu1 %v4924_v35  ;;  %v315_v35 = vld [vmem:[#allocation5 + $0x690] sm:$0xff]  ;;  %v4944_v37 = vpack.c.bf16 %v318_v29, %v300_v28  ;;  %v480_v28 = vld [vmem:[#allocation5 + $0xbb8] sm:$0xff]  ;;  %v498_v29 = vld [vmem:[#allocation5 + $0xc48] sm:$0xff] }
 0x1f3   :  { %2057 = vmatmul.mubr.f32.vlgmr.msra.gmra.mrb[4].mxu0 %v5535_v54 }
 0x1f4   :  { %2199 = vmatmul.mubr.f32.vlgmr.msra.gmra.mrb[4].mxu1 %v5535_v54  ;;  %4799 = vmatpush1.bf16.msra.mxu0 %v4798_v43  ;;  %v336_v43 = vld [vmem:[#allocation5 + $0x738] sm:$0xff]  ;;  %v370_v54 = vld [vmem:[#allocation5 + $0x848] sm:$0xff] }
 0x1f5   :  { %4927 = vmatpush1.bf16.msra.mxu1 %v4926_v45  ;;  %4801 = vmatprep.subr.bf16.mxu0 %v4800_v46  ;;  %v354_v45 = vld [vmem:[#allocation5 + $0x7c8] sm:$0xff]  ;;  %v4818_v46 = vpack.c.bf16 %v315_v35, %v297_v33  ;;  %v4824_v60 = vpack.c.bf16 %v388_v55, %v370_v54  ;;  %v477_v33 = vld [vmem:[#allocation5 + $0xba0] sm:$0xff]  ;;  %v495_v35 = vld [vmem:[#allocation5 + $0xc30] sm:$0xff] }
 0x1f6   :  { %4929 = vmatprep.subr.bf16.mxu1 %v4928_v50  ;;  %2269 = vmatprep.mubr.f32.mxu0 %v5536_v1  ;;  %v351_v50 = vld [vmem:[#allocation5 + $0x7b0] sm:$0xff]  ;;  %v4948_v52 = vpack.c.bf16 %v354_v45, %v336_v43  ;;  %v516_v43 = vld [vmem:[#allocation5 + $0xcd8] sm:$0xff]  ;;  %v534_v45 = vld [vmem:[#allocation5 + $0xd68] sm:$0xff] }
 0x1f7   :  { %2411 = vmatprep.mubr.f32.mxu1 %v5536_v1  ;;  %v424_v1 = vld [vmem:[#allocation5 + $0x9f8] sm:$0xff]  ;;  %v550_v54 = vld [vmem:[#allocation5 + $0xde8] sm:$0xff] }
 0x1f8   :  { %4803 = vmatpush1.bf16.msra.mxu0 %v4802_v57  ;;  %v390_v57 = vld [vmem:[#allocation5 + $0x8e8] sm:$0xff]  ;;  %v568_v55 = vld [vmem:[#allocation5 + $0xe78] sm:$0xff] }
 0x1f9   :  { %4931 = vmatpush1.bf16.msra.mxu1 %v4930_v58  ;;  %4805 = vmatprep.subr.bf16.mxu0 %v4804_v59  ;;  %v4822_v58 = vpack.c.bf16 %v351_v50, %v333_v49  ;;  %v4950_v59 = vpack.c.bf16 %v353_v53, %v335_v51  ;;  %v4952_v63 = vpack.c.bf16 %v390_v57, %v372_v56  ;;  %v513_v49 = vld [vmem:[#allocation5 + $0xcc0] sm:$0xff]  ;;  %v531_v50 = vld [vmem:[#allocation5 + $0xd50] sm:$0xff]  ;;  %v552_v56 = vld [vmem:[#allocation5 + $0xdf8] sm:$0xff] }
 0x1fa   :  { %4933 = vmatprep.subr.bf16.mxu1 %v4932_v62  ;;  %v371_v62 = vld [vmem:[#allocation5 + $0x850] sm:$0xff]  ;;  %v533_v53 = vld [vmem:[#allocation5 + $0xd60] sm:$0xff]  ;;  %v570_v57 = vld [vmem:[#allocation5 + $0xe88] sm:$0xff] }
 0x1fb   :  { %v515_v51 = vld [vmem:[#allocation5 + $0xcd0] sm:$0xff] }
 0x1fc   :  { %4807 = vmatpush1.bf16.msra.mxu0 %v4806_v4  ;;  %v4826_v4 = vpack.c.bf16 %v387_v61, %v369_v16  ;;  %v549_v16 = vld [vmem:[#allocation5 + $0xde0] sm:$0xff]  ;;  %v567_v61 = vld [vmem:[#allocation5 + $0xe70] sm:$0xff] }
 0x1fd   :  { %4935 = vmatpush1.bf16.msra.mxu1 %v4934_v5  ;;  %4809 = vmatprep.subr.bf16.mxu0 %v4808_v6  ;;  %v4954_v5 = vpack.c.bf16 %v389_v24, %v371_v62  ;;  %v4828_v6 = vpack.c.bf16 %v424_v1, %v406_v0  ;;  %v551_v62 = vld [vmem:[#allocation5 + $0xdf0] sm:$0xff]  ;;  %v569_v24 = vld [vmem:[#allocation5 + $0xe80] sm:$0xff]  ;;  %v586_v0 = vld [vmem:[#allocation5 + $0xf08] sm:$0xff] }
 0x1fe   :  { %4937 = vmatprep.subr.bf16.mxu1 %v4936_v10  ;;  %v4956_v10 = vpack.c.bf16 %v426_v3, %v408_v2  ;;  %v604_v1 = vld [vmem:[#allocation5 + $0xf98] sm:$0xff]  ;;  %v606_v3 = vld [vmem:[#allocation5 + $0xfa8] sm:$0xff] }
 0x1ff   :  { %v588_v2 = vld [vmem:[#allocation5 + $0xf18] sm:$0xff] }
 0x200   :  { %4811 = vmatpush1.bf16.msra.mxu0 %v4810_v17  ;;  %v4830_v17 = vpack.c.bf16 %v423_v8, %v405_v7  ;;  %v585_v7 = vld [vmem:[#allocation5 + $0xf00] sm:$0xff]  ;;  %v603_v8 = vld [vmem:[#allocation5 + $0xf90] sm:$0xff] }
 0x201   :  { %4939 = vmatpush1.bf16.msra.mxu1 %v4938_v18  ;;  %4813 = vmatprep.subr.bf16.mxu0 %v4812_v19  ;;  %v4958_v18 = vpack.c.bf16 %v425_v11, %v407_v9  ;;  %v4832_v19 = vpack.c.bf16 %v460_v13, %v442_v12  ;;  %v587_v9 = vld [vmem:[#allocation5 + $0xf10] sm:$0xff]  ;;  %v605_v11 = vld [vmem:[#allocation5 + $0xfa0] sm:$0xff]  ;;  %v622_v12 = vld [vmem:[#allocation5 + $0x1028] sm:$0xff] }
 0x202   :  { %4941 = vmatprep.subr.bf16.mxu1 %v4940_v23  ;;  %v4960_v23 = vpack.c.bf16 %v462_v15, %v444_v14  ;;  %v640_v13 = vld [vmem:[#allocation5 + $0x10b8] sm:$0xff]  ;;  %v642_v15 = vld [vmem:[#allocation5 + $0x10c8] sm:$0xff] }
 0x203   :  { %v624_v14 = vld [vmem:[#allocation5 + $0x1038] sm:$0xff] }
 0x204   :  { %4815 = vmatpush1.bf16.msra.mxu0 %v4814_v30  ;;  %v4834_v30 = vpack.c.bf16 %v459_v21, %v441_v20  ;;  %v621_v20 = vld [vmem:[#allocation5 + $0x1020] sm:$0xff]  ;;  %v639_v21 = vld [vmem:[#allocation5 + $0x10b0] sm:$0xff] }
 0x205   :  { %4943 = vmatpush1.bf16.msra.mxu1 %v4942_v31  ;;  %4817 = vmatprep.subr.bf16.mxu0 %v4816_v32  ;;  %v4962_v31 = vpack.c.bf16 %v461_v25, %v443_v22  ;;  %v4836_v32 = vpack.c.bf16 %v496_v27, %v478_v26  ;;  %v623_v22 = vld [vmem:[#allocation5 + $0x1030] sm:$0xff]  ;;  %v641_v25 = vld [vmem:[#allocation5 + $0x10c0] sm:$0xff]  ;;  %v658_v26 = vld [vmem:[#allocation5 + $0x1148] sm:$0xff] }
 0x206   :  { %4945 = vmatprep.subr.bf16.mxu1 %v4944_v37  ;;  %v4964_v37 = vpack.c.bf16 %v498_v29, %v480_v28  ;;  %v676_v27 = vld [vmem:[#allocation5 + $0x11d8] sm:$0xff]  ;;  %v678_v29 = vld [vmem:[#allocation5 + $0x11e8] sm:$0xff] }
 0x207   :  { %v660_v28 = vld [vmem:[#allocation5 + $0x1158] sm:$0xff] }
 0x208   :  { %4819 = vmatpush1.bf16.msra.mxu0 %v4818_v46  ;;  %v4838_v46 = vpack.c.bf16 %v495_v35, %v477_v33  ;;  %v657_v33 = vld [vmem:[#allocation5 + $0x1140] sm:$0xff]  ;;  %v675_v35 = vld [vmem:[#allocation5 + $0x11d0] sm:$0xff] }
 0x209   :  { %4947 = vmatpush1.bf16.msra.mxu1 %v4946_v47  ;;  %4821 = vmatprep.subr.bf16.mxu0 %v4820_v48  ;;  %v4966_v47 = vpack.c.bf16 %v497_v38, %v479_v36  ;;  %v4840_v48 = vpack.c.bf16 %v532_v41, %v514_v40  ;;  %v659_v36 = vld [vmem:[#allocation5 + $0x1150] sm:$0xff]  ;;  %v677_v38 = vld [vmem:[#allocation5 + $0x11e0] sm:$0xff]  ;;  %v694_v40 = vld [vmem:[#allocation5 + $0x1268] sm:$0xff] }
 0x20a   :  { %4949 = vmatprep.subr.bf16.mxu1 %v4948_v52  ;;  %v4968_v52 = vpack.c.bf16 %v534_v45, %v516_v43  ;;  %v712_v41 = vld [vmem:[#allocation5 + $0x12f8] sm:$0xff]  ;;  %v714_v45 = vld [vmem:[#allocation5 + $0x1308] sm:$0xff] }
 0x20b   :  { %v696_v43 = vld [vmem:[#allocation5 + $0x1278] sm:$0xff] }
 0x20c   :  { %4823 = vmatpush1.bf16.msra.mxu0 %v4822_v58  ;;  %v4842_v58 = vpack.c.bf16 %v531_v50, %v513_v49  ;;  %v693_v49 = vld [vmem:[#allocation5 + $0x1260] sm:$0xff]  ;;  %v711_v50 = vld [vmem:[#allocation5 + $0x12f0] sm:$0xff] }
 0x20d   :  { %4951 = vmatpush1.bf16.msra.mxu1 %v4950_v59  ;;  %4825 = vmatprep.subr.bf16.mxu0 %v4824_v60  ;;  %v4970_v59 = vpack.c.bf16 %v533_v53, %v515_v51  ;;  %v4844_v60 = vpack.c.bf16 %v568_v55, %v550_v54  ;;  %v695_v51 = vld [vmem:[#allocation5 + $0x1270] sm:$0xff]  ;;  %v713_v53 = vld [vmem:[#allocation5 + $0x1300] sm:$0xff]  ;;  %v730_v54 = vld [vmem:[#allocation5 + $0x1388] sm:$0xff] }
 0x20e   :  { %4953 = vmatprep.subr.bf16.mxu1 %v4952_v63  ;;  %v4972_v63 = vpack.c.bf16 %v570_v57, %v552_v56  ;;  %v748_v55 = vld [vmem:[#allocation5 + $0x1418] sm:$0xff]  ;;  %v750_v57 = vld [vmem:[#allocation5 + $0x1428] sm:$0xff] }
 0x20f   :  { %v732_v56 = vld [vmem:[#allocation5 + $0x1398] sm:$0xff] }
 0x210   :  { %4827 = vmatpush1.bf16.msra.mxu0 %v4826_v4  ;;  %v4846_v4 = vpack.c.bf16 %v567_v61, %v549_v16  ;;  %v729_v16 = vld [vmem:[#allocation5 + $0x1380] sm:$0xff]  ;;  %v747_v61 = vld [vmem:[#allocation5 + $0x1410] sm:$0xff] }
 0x211   :  { %4955 = vmatpush1.bf16.msra.mxu1 %v4954_v5  ;;  %4829 = vmatprep.subr.bf16.mxu0 %v4828_v6  ;;  %v4974_v5 = vpack.c.bf16 %v569_v24, %v551_v62  ;;  %v4848_v6 = vpack.c.bf16 %v604_v1, %v586_v0  ;;  %v731_v62 = vld [vmem:[#allocation5 + $0x1390] sm:$0xff]  ;;  %v749_v24 = vld [vmem:[#allocation5 + $0x1420] sm:$0xff]  ;;  %v766_v0 = vld [vmem:[#allocation5 + $0x14a8] sm:$0xff] }
 0x212   :  { %4957 = vmatprep.subr.bf16.mxu1 %v4956_v10  ;;  %v4976_v10 = vpack.c.bf16 %v606_v3, %v588_v2  ;;  %v784_v1 = vld [vmem:[#allocation5 + $0x1538] sm:$0xff]  ;;  %v5537_v2 = vld [vmem:[#allocation2] sm:$0xff] }
 0x213   :  { %v768_v3 = vld [vmem:[#allocation5 + $0x14b8] sm:$0xff] }
 0x214   :  { %4831 = vmatpush1.bf16.msra.mxu0 %v4830_v17  ;;  %v4850_v17 = vpack.c.bf16 %v603_v8, %v585_v7  ;;  %v4868_v7 = vpack.c.bf16 %v784_v1, %v766_v0  ;;  %v765_v8 = vld [vmem:[#allocation5 + $0x14a0] sm:$0xff] }
 0x215   :  { %4959 = vmatpush1.bf16.msra.mxu1 %v4958_v18  ;;  %4833 = vmatprep.subr.bf16.mxu0 %v4832_v19  ;;  %v4978_v18 = vpack.c.bf16 %v605_v11, %v587_v9  ;;  %v4852_v19 = vpack.c.bf16 %v640_v13, %v622_v12  ;;  %v783_v9 = vld [vmem:[#allocation5 + $0x1530] sm:$0xff]  ;;  %v785_v12 = vld [vmem:[#allocation5 + $0x1540] sm:$0xff]  ;;  %v802_v13 = vld [vmem:[#allocation5 + $0x15c8] sm:$0xff] }
 0x216   :  { %4961 = vmatprep.subr.bf16.mxu1 %v4960_v23  ;;  %v4980_v23 = vpack.c.bf16 %v642_v15, %v624_v14  ;;  %v820_v14 = vld [vmem:[#allocation5 + $0x1658] sm:$0xff] }
 0x217   :  { %v5538_v15 = vld [vmem:[#allocation2 + $0x18] sm:$0xff] }
 0x218   :  { %4835 = vmatpush1.bf16.msra.mxu0 %v4834_v30  ;;  %v4854_v30 = vpack.c.bf16 %v639_v21, %v621_v20  ;;  %v4872_v21 = vpack.c.bf16 %v820_v14, %v802_v13  ;;  %v945_v13 = vld [vmem:[#allocation5 + $0x1a40] sm:$0xff]  ;;  %v963_v14 = vld [vmem:[#allocation5 + $0x1ad0] sm:$0xff] }
 0x219   :  { %4963 = vmatpush1.bf16.msra.mxu1 %v4962_v31  ;;  %4837 = vmatprep.subr.bf16.mxu0 %v4836_v32  ;;  %v4982_v31 = vpack.c.bf16 %v641_v25, %v623_v22  ;;  %v4856_v32 = vpack.c.bf16 %v676_v27, %v658_v26  ;;  %v801_v22 = vld [vmem:[#allocation5 + $0x15c0] sm:$0xff]  ;;  %v803_v25 = vld [vmem:[#allocation5 + $0x15d0] sm:$0xff] }
 0x21a   :  { %4965 = vmatprep.subr.bf16.mxu1 %v4964_v37  ;;  %v4984_v37 = vpack.c.bf16 %v678_v29, %v660_v28  ;;  %v821_v27 = vld [vmem:[#allocation5 + $0x1660] sm:$0xff]  ;;  %v838_v28 = vld [vmem:[#allocation5 + $0x16e8] sm:$0xff]  ;;  %v856_v29 = vld [vmem:[#allocation5 + $0x1778] sm:$0xff] }
 0x21c   :  { %4839 = vmatpush1.bf16.msra.mxu0 %v4838_v46  ;;  %v4858_v46 = vpack.c.bf16 %v675_v35, %v657_v33  ;;  %v5002_v33 = vpack.c.bf16 %v821_v27, %v803_v25  ;;  %v4876_v35 = vpack.c.bf16 %v856_v29, %v838_v28  ;;  %v981_v27 = vld [vmem:[#allocation5 + $0x1b60] sm:$0xff]  ;;  %v999_v28 = vld [vmem:[#allocation5 + $0x1bf0] sm:$0xff] }
 0x21d   :  { %4967 = vmatpush1.bf16.msra.mxu1 %v4966_v47  ;;  %4841 = vmatprep.subr.bf16.mxu0 %v4840_v48  ;;  %v4986_v47 = vpack.c.bf16 %v677_v38, %v659_v36  ;;  %v4860_v48 = vpack.c.bf16 %v712_v41, %v694_v40  ;;  %v837_v36 = vld [vmem:[#allocation5 + $0x16e0] sm:$0xff]  ;;  %v839_v38 = vld [vmem:[#allocation5 + $0x16f0] sm:$0xff] }
 0x21e   :  { %4969 = vmatprep.subr.bf16.mxu1 %v4968_v52  ;;  %v4988_v52 = vpack.c.bf16 %v714_v45, %v696_v43  ;;  %v857_v41 = vld [vmem:[#allocation5 + $0x1780] sm:$0xff]  ;;  %v874_v43 = vld [vmem:[#allocation5 + $0x1808] sm:$0xff]  ;;  %v892_v45 = vld [vmem:[#allocation5 + $0x1898] sm:$0xff] }
 0x21f   :  { %v983_v29 = vld [vmem:[#allocation5 + $0x1b70] sm:$0xff] }
 0x220   :  { %4843 = vmatpush1.bf16.msra.mxu0 %v4842_v58  ;;  %v4862_v58 = vpack.c.bf16 %v711_v50, %v693_v49  ;;  %v5006_v49 = vpack.c.bf16 %v857_v41, %v839_v38  ;;  %v4880_v50 = vpack.c.bf16 %v892_v45, %v874_v43  ;;  %v1017_v41 = vld [vmem:[#allocation5 + $0x1c80] sm:$0xff]  ;;  %v1035_v43 = vld [vmem:[#allocation5 + $0x1d10] sm:$0xff] }
 0x221   :  { %4971 = vmatpush1.bf16.msra.mxu1 %v4970_v59  ;;  %4845 = vmatprep.subr.bf16.mxu0 %v4844_v60  ;;  %v4990_v59 = vpack.c.bf16 %v713_v53, %v695_v51  ;;  %v4864_v60 = vpack.c.bf16 %v748_v55, %v730_v54  ;;  %v873_v51 = vld [vmem:[#allocation5 + $0x1800] sm:$0xff]  ;;  %v875_v53 = vld [vmem:[#allocation5 + $0x1810] sm:$0xff] }
 0x222   :  { %4973 = vmatprep.subr.bf16.mxu1 %v4972_v63  ;;  %v4992_v63 = vpack.c.bf16 %v750_v57, %v732_v56  ;;  %v893_v55 = vld [vmem:[#allocation5 + $0x18a0] sm:$0xff]  ;;  %v910_v56 = vld [vmem:[#allocation5 + $0x1928] sm:$0xff]  ;;  %v928_v57 = vld [vmem:[#allocation5 + $0x19b8] sm:$0xff] }
 0x223   :  { %v1019_v45 = vld [vmem:[#allocation5 + $0x1c90] sm:$0xff] }
 0x224   :  { %4847 = vmatpush1.bf16.msra.mxu0 %v4846_v4  ;;  %v786_v4 = vld [vmem:[#allocation5 + $0x1548] sm:$0xff] }
 0x225   :  { %4975 = vmatpush1.bf16.msra.mxu1 %v4974_v5  ;;  %4849 = vmatprep.subr.bf16.mxu0 %v4848_v6  ;;  %v4866_v5 = vpack.c.bf16 %v747_v61, %v729_v16  ;;  %v4994_v6 = vpack.c.bf16 %v749_v24, %v731_v62  ;;  %v4996_v11 = vpack.c.bf16 %v786_v4, %v768_v3  ;;  %v909_v62 = vld [vmem:[#allocation5 + $0x1920] sm:$0xff]  ;;  %v911_v24 = vld [vmem:[#allocation5 + $0x1930] sm:$0xff]  ;;  %v946_v3 = vld [vmem:[#allocation5 + $0x1a48] sm:$0xff] }
 0x226   :  { %4977 = vmatprep.subr.bf16.mxu1 %v4976_v10  ;;  %v767_v10 = vld [vmem:[#allocation5 + $0x14b0] sm:$0xff]  ;;  %v5010_v16 = vpack.c.bf16 %v893_v55, %v875_v53  ;;  %v4884_v61 = vpack.c.bf16 %v928_v57, %v910_v56  ;;  %v964_v4 = vld [vmem:[#allocation5 + $0x1ad8] sm:$0xff]  ;;  %v1053_v55 = vld [vmem:[#allocation5 + $0x1da0] sm:$0xff] }
 0x227   :  { %v4998_v20 = vpack.c.bf16 %v785_v12, %v767_v10  ;;  %v4888_v12 = vpack.c.bf16 %v964_v4, %v946_v3  ;;  %v1071_v56 = vld [vmem:[#allocation5 + $0x1e30] sm:$0xff] }
 0x228   :  { %4851 = vmatpush1.bf16.msra.mxu0 %v4850_v17  ;;  %v804_v17 = vld [vmem:[#allocation5 + $0x15d8] sm:$0xff]  ;;  %v1055_v57 = vld [vmem:[#allocation5 + $0x1db0] sm:$0xff] }
 0x229   :  { %4979 = vmatpush1.bf16.msra.mxu1 %v4978_v18  ;;  %4853 = vmatprep.subr.bf16.mxu0 %v4852_v19  ;;  %v822_v18 = vld [vmem:[#allocation5 + $0x1668] sm:$0xff]  ;;  %v4870_v19 = vpack.c.bf16 %v783_v9, %v765_v8  ;;  %v1107_v3 = vld [vmem:[#allocation5 + $0x1f50] sm:$0xff] }
 0x22a   :  { %4981 = vmatprep.subr.bf16.mxu1 %v4980_v23  ;;  %v819_v23 = vld [vmem:[#allocation5 + $0x1650] sm:$0xff]  ;;  %v5000_v26 = vpack.c.bf16 %v822_v18, %v804_v17  ;;  %v965_v18 = vld [vmem:[#allocation5 + $0x1ae0] sm:$0xff] }
 0x22b   :  { %v1091_v4 = vld [vmem:[#allocation5 + $0x1ed0] sm:$0xff] }
 0x22c   :  { %4855 = vmatpush1.bf16.msra.mxu0 %v4854_v30  ;;  %v840_v30 = vld [vmem:[#allocation5 + $0x16f8] sm:$0xff] }
 0x22d   :  { %4983 = vmatpush1.bf16.msra.mxu1 %v4982_v31  ;;  %4857 = vmatprep.subr.bf16.mxu0 %v4856_v32  ;;  %v858_v31 = vld [vmem:[#allocation5 + $0x1788] sm:$0xff]  ;;  %v4874_v32 = vpack.c.bf16 %v819_v23, %v801_v22  ;;  %v4890_v23 = vpack.c.bf16 %v963_v14, %v945_v13 }
 0x22e   :  { %4985 = vmatprep.subr.bf16.mxu1 %v4984_v37  ;;  %v855_v37 = vld [vmem:[#allocation5 + $0x1770] sm:$0xff]  ;;  %v5004_v40 = vpack.c.bf16 %v858_v31, %v840_v30  ;;  %v1002_v22 = vld [vmem:[#allocation5 + $0x1c08] sm:$0xff]  ;;  %v1001_v31 = vld [vmem:[#allocation5 + $0x1c00] sm:$0xff] }
 0x22f   :  { %v5022_v38 = vpack.c.bf16 %v1001_v31, %v983_v29  ;;  %v1146_v13 = vld [vmem:[#allocation5 + $0x2088] sm:$0xff] }
 0x230   :  { %4859 = vmatpush1.bf16.msra.mxu0 %v4858_v46  ;;  %v876_v46 = vld [vmem:[#allocation5 + $0x1818] sm:$0xff] }
 0x231   :  { %4987 = vmatpush1.bf16.msra.mxu1 %v4986_v47  ;;  %4861 = vmatprep.subr.bf16.mxu0 %v4860_v48  ;;  %v894_v47 = vld [vmem:[#allocation5 + $0x18a8] sm:$0xff]  ;;  %v4878_v48 = vpack.c.bf16 %v855_v37, %v837_v36  ;;  %v4894_v37 = vpack.c.bf16 %v999_v28, %v981_v27  ;;  %v1164_v27 = vld [vmem:[#allocation5 + $0x2118] sm:$0xff] }
 0x232   :  { %4989 = vmatprep.subr.bf16.mxu1 %v4988_v52  ;;  %v891_v52 = vld [vmem:[#allocation5 + $0x1890] sm:$0xff]  ;;  %v5008_v54 = vpack.c.bf16 %v894_v47, %v876_v46  ;;  %v1038_v36 = vld [vmem:[#allocation5 + $0x1d28] sm:$0xff]  ;;  %v1037_v47 = vld [vmem:[#allocation5 + $0x1d20] sm:$0xff] }
 0x233   :  { %2270 = vmatmul.mubr.f32.vlgmr.msra.gmra.mrb[6].mxu0 %v5537_v2  ;;  %v5026_v53 = vpack.c.bf16 %v1037_v47, %v1019_v45  ;;  %v1182_v28 = vld [vmem:[#allocation5 + $0x21a8] sm:$0xff] }
 0x234   :  { %4863 = vmatpush1.bf16.msra.mxu0 %v4862_v58  ;;  %2412 = vmatmul.mubr.f32.vlgmr.msra.gmra.mrb[6].mxu1 %v5537_v2  ;;  %v912_v58 = vld [vmem:[#allocation5 + $0x1938] sm:$0xff]  ;;  %v929_v2 = vld [vmem:[#allocation5 + $0x19c0] sm:$0xff]  ;;  %v1218_v45 = vld [vmem:[#allocation5 + $0x22c8] sm:$0xff] }
 0x235   :  { %4991 = vmatpush1.bf16.msra.mxu1 %v4990_v59  ;;  %4865 = vmatprep.subr.bf16.mxu0 %v4864_v60  ;;  %v930_v59 = vld [vmem:[#allocation5 + $0x19c8] sm:$0xff]  ;;  %v4882_v60 = vpack.c.bf16 %v891_v52, %v873_v51  ;;  %v4898_v52 = vpack.c.bf16 %v1035_v43, %v1017_v41  ;;  %v1200_v43 = vld [vmem:[#allocation5 + $0x2238] sm:$0xff] }
 0x236   :  { %4993 = vmatprep.subr.bf16.mxu1 %v4992_v63  ;;  %2340 = vmatprep.mubr.f32.mxu0 %v5538_v15  ;;  %v927_v63 = vld [vmem:[#allocation5 + $0x19b0] sm:$0xff]  ;;  %v5012_v1 = vpack.c.bf16 %v930_v59, %v912_v58  ;;  %v1074_v51 = vld [vmem:[#allocation5 + $0x1e48] sm:$0xff]  ;;  %v1073_v59 = vld [vmem:[#allocation5 + $0x1e40] sm:$0xff] }
 0x237   :  { %2482 = vmatprep.mubr.f32.mxu1 %v5538_v15  ;;  %v4886_v9 = vpack.c.bf16 %v927_v63, %v909_v62  ;;  %v947_v15 = vld [vmem:[#allocation5 + $0x1a50] sm:$0xff]  ;;  %v1110_v62 = vld [vmem:[#allocation5 + $0x1f68] sm:$0xff]  ;;  %v4902_v63 = vpack.c.bf16 %v1071_v56, %v1053_v55  ;;  %v1252_v55 = vld [vmem:[#allocation5 + $0x23d8] sm:$0xff] }
 0x238   :  { %4867 = vmatpush1.bf16.msra.mxu0 %v4866_v5  ;;  %v5018_v25 = vpack.c.bf16 %v965_v18, %v947_v15  ;;  %v1125_v18 = vld [vmem:[#allocation5 + $0x1fe0] sm:$0xff] }
 0x239   :  { %4995 = vmatpush1.bf16.msra.mxu1 %v4994_v6  ;;  %4869 = vmatprep.subr.bf16.mxu0 %v4868_v7  ;;  %v948_v6 = vld [vmem:[#allocation5 + $0x1a58] sm:$0xff]  ;;  %v966_v7 = vld [vmem:[#allocation5 + $0x1ae8] sm:$0xff] }
 0x23a   :  { %4997 = vmatprep.subr.bf16.mxu1 %v4996_v11  ;;  %v5014_v11 = vpack.c.bf16 %v929_v2, %v911_v24  ;;  %v5016_v17 = vpack.c.bf16 %v966_v7, %v948_v6  ;;  %v5030_v24 = vpack.c.bf16 %v1073_v59, %v1055_v57  ;;  %v1089_v2 = vld [vmem:[#allocation5 + $0x1ec0] sm:$0xff]  ;;  %v1236_v57 = vld [vmem:[#allocation5 + $0x2358] sm:$0xff] }
 0x23b   :  { %v1109_v7 = vld [vmem:[#allocation5 + $0x1f60] sm:$0xff]  ;;  %v4906_v14 = vpack.c.bf16 %v1107_v3, %v1089_v2  ;;  %v122_v3 = vld [vmem:[#allocation5 + $0x88] sm:$0xff] }
 0x23c   :  { %4871 = vmatpush1.bf16.msra.mxu0 %v4870_v19  ;;  %v982_v19 = vld [vmem:[#allocation5 + $0x1b68] sm:$0xff]  ;;  %v5034_v15 = vpack.c.bf16 %v1109_v7, %v1091_v4  ;;  %v5868_v59 = vld [vmem:[#allocation7] sm:$0xff]  ;;  %v140_v4 = vld [vmem:[#allocation5 + $0x118] sm:$0xff] }
 0x23d   :  { %4999 = vmatpush1.bf16.msra.mxu1 %v4998_v20  ;;  %4873 = vmatprep.subr.bf16.mxu0 %v4872_v21  ;;  %v1000_v20 = vld [vmem:[#allocation5 + $0x1bf8] sm:$0xff]  ;;  %v1253_v2 = vld [vmem:[#allocation5 + $0x23e0] sm:$0xff] }
 0x23e   :  { %5001 = vmatprep.subr.bf16.mxu1 %v5000_v26  ;;  %v984_v21 = vld [vmem:[#allocation5 + $0x1b78] sm:$0xff]  ;;  %v4892_v26 = vpack.c.bf16 %v1000_v20, %v982_v19  ;;  %v1143_v19 = vld [vmem:[#allocation5 + $0x2070] sm:$0xff]  ;;  %v2665_v7 = vld [vmem:[%s6825_s3 + $0x80] sm:$0xff] }
 0x23f   :  { %v5020_v30 = vpack.c.bf16 %v1002_v22, %v984_v21  ;;  %v1127_v20 = vld [vmem:[#allocation5 + $0x1ff0] sm:$0xff]  ;;  %v1145_v22 = vld [vmem:[#allocation5 + $0x2080] sm:$0xff]  ;;  %v4910_v29 = vpack.c.bf16 %v1143_v19, %v1125_v18  ;;  %v2650_v19 = vld [vmem:[%s6825_s3 + $0x8] sm:$0xff] }
 0x240   :  { %4875 = vmatpush1.bf16.msra.mxu0 %v4874_v32  ;;  %v1018_v32 = vld [vmem:[#allocation5 + $0x1c88] sm:$0xff]  ;;  %v2649_v18 = vld [vmem:[%s6825_s3] sm:$0xff] }
 0x241   :  { %5003 = vmatpush1.bf16.msra.mxu1 %v5002_v33  ;;  %4877 = vmatprep.subr.bf16.mxu0 %v4876_v35  ;;  %v1036_v33 = vld [vmem:[#allocation5 + $0x1d18] sm:$0xff] }
 0x242   :  { %5005 = vmatprep.subr.bf16.mxu1 %v5004_v40  ;;  %v1020_v35 = vld [vmem:[#allocation5 + $0x1c98] sm:$0xff]  ;;  %v4896_v40 = vpack.c.bf16 %v1036_v33, %v1018_v32  ;;  %v1161_v32 = vld [vmem:[#allocation5 + $0x2100] sm:$0xff]  ;;  %v1179_v33 = vld [vmem:[#allocation5 + $0x2190] sm:$0xff] }
 0x243   :  { %v5024_v46 = vpack.c.bf16 %v1038_v36, %v1020_v35  ;;  %v1163_v35 = vld [vmem:[#allocation5 + $0x2110] sm:$0xff]  ;;  %v5040_v36 = vpack.c.bf16 %v1182_v28, %v1164_v27  ;;  %v5182_v27 = vpack.c.bf16 %v2650_v19, %v2649_v18  ;;  %v157_v28 = vld [vmem:[#allocation5 + $0x1a0] sm:$0xff]  ;;  %v302_v18 = vld [vmem:[#allocation5 + $0x628] sm:$0xff] }
 0x244   :  { %4879 = vmatpush1.bf16.msra.mxu0 %v4878_v48  ;;  %v1054_v48 = vld [vmem:[#allocation5 + $0x1da8] sm:$0xff]  ;;  %v320_v19 = vld [vmem:[#allocation5 + $0x6b8] sm:$0xff] }
 0x245   :  { %5007 = vmatpush1.bf16.msra.mxu1 %v5006_v49  ;;  %4881 = vmatprep.subr.bf16.mxu0 %v4880_v50  ;;  %v1072_v49 = vld [vmem:[#allocation5 + $0x1e38] sm:$0xff] }
 0x246   :  { %v5855_v0 = vpop.f32.mrb[2].mxu0  ;;  %5009 = vmatprep.subr.bf16.mxu1 %v5008_v54  ;;  %v1056_v50 = vld [vmem:[#allocation5 + $0x1db8] sm:$0xff]  ;;  %v4900_v54 = vpack.c.bf16 %v1072_v49, %v1054_v48  ;;  %v1197_v49 = vld [vmem:[#allocation5 + $0x2220] sm:$0xff] }
 0x247   :  { %v5857_v5 = vpop.f32.mrb[3].mxu0  ;;  %v5859_v8 = vpop.f32.mrb[2].mxu1  ;;  %v5028_v58 = vpack.c.bf16 %v1074_v51, %v1056_v50  ;;  %v1215_v50 = vld [vmem:[#allocation5 + $0x22b0] sm:$0xff] }
 0x248   :  { %4883 = vmatpush1.bf16.msra.mxu0 %v4882_v60  ;;  %v5861_v10 = vpop.f32.mrb[3].mxu1  ;;  %v1090_v60 = vld [vmem:[#allocation5 + $0x1ec8] sm:$0xff]  ;;  %v1199_v51 = vld [vmem:[#allocation5 + $0x2230] sm:$0xff] }
 0x249   :  { %5011 = vmatpush1.bf16.msra.mxu1 %v5010_v16  ;;  %4885 = vmatprep.subr.bf16.mxu0 %v4884_v61  ;;  %v1108_v16 = vld [vmem:[#allocation5 + $0x1f58] sm:$0xff] }
 0x24a   :  { %5013 = vmatprep.subr.bf16.mxu1 %v5012_v1  ;;  %v1092_v61 = vld [vmem:[#allocation5 + $0x1ed8] sm:$0xff]  ;;  %v4904_v1 = vpack.c.bf16 %v1108_v16, %v1090_v60  ;;  %v4918_v60 = vpack.c.bf16 %v1215_v50, %v1197_v49  ;;  %v2653_v49 = vld [vmem:[%s6825_s3 + $0x20] sm:$0xff] }
 0x24b   :  { %v5032_v6 = vpack.c.bf16 %v1110_v62, %v1092_v61  ;;  %v1233_v62 = vld [vmem:[#allocation5 + $0x2340] sm:$0xff] }
 0x24c   :  { %4887 = vmatpush1.bf16.msra.mxu0 %v4886_v9  ;;  %v1126_v9 = vld [vmem:[#allocation5 + $0x1fe8] sm:$0xff] }
 0x24d   :  { %5015 = vmatpush1.bf16.msra.mxu1 %v5014_v11  ;;  %4889 = vmatprep.subr.bf16.mxu0 %v4888_v12  ;;  %v1144_v11 = vld [vmem:[#allocation5 + $0x2078] sm:$0xff] }
 0x24e   :  { %5017 = vmatprep.subr.bf16.mxu1 %v5016_v17  ;;  %v1128_v12 = vld [vmem:[#allocation5 + $0x1ff8] sm:$0xff]  ;;  %v4908_v17 = vpack.c.bf16 %v1144_v11, %v1126_v9  ;;  %v2666_v9 = vld [vmem:[%s6825_s3 + $0x88] sm:$0xff] }
 0x24f   :  { %v5036_v21 = vpack.c.bf16 %v1146_v13, %v1128_v12  ;;  %v5052_v13 = vpack.c.bf16 %v140_v4, %v122_v3  ;;  %v284_v3 = vld [vmem:[#allocation5 + $0x598] sm:$0xff]  ;;  %v2673_v4 = vld [vmem:[%s6825_s3 + $0xc0] sm:$0xff] }
 0x250   :  { %4891 = vmatpush1.bf16.msra.mxu0 %v4890_v23  ;;  %v1162_v23 = vld [vmem:[#allocation5 + $0x2108] sm:$0xff] }
 0x251   :  { %5019 = vmatpush1.bf16.msra.mxu1 %v5018_v25  ;;  %4893 = vmatprep.subr.bf16.mxu0 %v4892_v26  ;;  %v1180_v25 = vld [vmem:[#allocation5 + $0x2198] sm:$0xff]  ;;  %v1263_v26 = vlaneseq }
 0x252   :  { %5021 = vmatprep.subr.bf16.mxu1 %v5020_v30  ;;  %v5038_v30 = vpack.c.bf16 %v1145_v22, %v1127_v20  ;;  %v4912_v31 = vpack.c.bf16 %v1180_v25, %v1162_v23  ;;  %v158_v20 = vld [vmem:[#allocation5 + $0x1a8] sm:$0xff]  ;;  %v176_v22 = vld [vmem:[#allocation5 + $0x238] sm:$0xff]  ;;  %v2667_v23 = vld [vmem:[%s6825_s3 + $0x90] sm:$0xff] }
 0x253   :  { %v5863_v41 = vshrl.u32 %v1263_v26, 7  ;;  %v2668_v25 = vld [vmem:[%s6825_s3 + $0x98] sm:$0xff] }
 0x254   :  { %4895 = vmatpush1.bf16.msra.mxu0 %v4894_v37  ;;  %v1181_v37 = vld [vmem:[#allocation5 + $0x21a0] sm:$0xff] }
 0x255   :  { %5023 = vmatpush1.bf16.msra.mxu1 %v5022_v38  ;;  %4897 = vmatprep.subr.bf16.mxu0 %v4896_v40  ;;  %v1198_v38 = vld [vmem:[#allocation5 + $0x2228] sm:$0xff]  ;;  %v1216_v40 = vld [vmem:[#allocation5 + $0x22b8] sm:$0xff]  ;;  %v5042_v47 = vpack.c.bf16 %v1181_v37, %v1163_v35  ;;  %v5866_v56 = vsub.s32 1, %v5863_v41  ;;  %v5539_v37 = vld [vmem:[#allocation2 + $0x10] sm:$0xff] }
 0x256   :  { %5025 = vmatprep.subr.bf16.mxu1 %v5024_v46  ;;  %v4914_v46 = vpack.c.bf16 %v1179_v33, %v1161_v32  ;;  %v4916_v48 = vpack.c.bf16 %v1216_v40, %v1198_v38  ;;  %v2652_v32 = vld [vmem:[%s6825_s3 + $0x18] sm:$0xff]  ;;  %v194_v33 = vld [vmem:[#allocation5 + $0x2c8] sm:$0xff]  ;;  %v2669_v38 = vld [vmem:[%s6825_s3 + $0xa0] sm:$0xff] }
 0x257   :  { %v212_v35 = vld [vmem:[#allocation5 + $0x358] sm:$0xff]  ;;  %v2670_v40 = vld [vmem:[%s6825_s3 + $0xa8] sm:$0xff] }
 0x258   :  { %4899 = vmatpush1.bf16.msra.mxu0 %v4898_v52  ;;  %v5044_v52 = vpack.c.bf16 %v1218_v45, %v1200_v43  ;;  %v5188_v50 = vpack.c.bf16 %v2670_v40, %v2669_v38  ;;  %v337_v38 = vld [vmem:[#allocation5 + $0x740] sm:$0xff]  ;;  %v355_v40 = vld [vmem:[#allocation5 + $0x7d0] sm:$0xff] }
 0x259   :  { %5027 = vmatpush1.bf16.msra.mxu1 %v5026_v53  ;;  %4901 = vmatprep.subr.bf16.mxu0 %v4900_v54  ;;  %v1217_v53 = vld [vmem:[#allocation5 + $0x22c0] sm:$0xff]  ;;  %v1234_v54 = vld [vmem:[#allocation5 + $0x2348] sm:$0xff] }
 0x25a   :  { %5029 = vmatprep.subr.bf16.mxu1 %v5028_v58  ;;  %v1254_v58 = vld [vmem:[#allocation5 + $0x23e8] sm:$0xff]  ;;  %v5046_v16 = vpack.c.bf16 %v1217_v53, %v1199_v51  ;;  %v4920_v61 = vpack.c.bf16 %v1252_v55, %v1234_v54  ;;  %v248_v53 = vld [vmem:[#allocation5 + $0x478] sm:$0xff]  ;;  %v2671_v54 = vld [vmem:[%s6825_s3 + $0xb0] sm:$0xff] }
 0x25b   :  { %v2654_v51 = vld [vmem:[%s6825_s3 + $0x28] sm:$0xff]  ;;  %v2672_v55 = vld [vmem:[%s6825_s3 + $0xb8] sm:$0xff] }
 0x25c   :  { %4903 = vmatpush1.bf16.msra.mxu0 %v4902_v63  ;;  %v1251_v63 = vld [vmem:[#allocation5 + $0x23d0] sm:$0xff] }
 0x25d   :  { %5031 = vmatpush1.bf16.msra.mxu1 %v5030_v24  ;;  %4905 = vmatprep.subr.bf16.mxu0 %v4904_v1  ;;  %v1235_v24 = vld [vmem:[#allocation5 + $0x2350] sm:$0xff]  ;;  %v5048_v1 = vpack.c.bf16 %v1254_v58, %v1236_v57  ;;  %v4922_v11 = vpack.c.bf16 %v1251_v63, %v1233_v62  ;;  %v5540_v57 = vld [vmem:[#allocation2 + $0x8] sm:$0xff] }
 0x25e   :  { %5033 = vmatprep.subr.bf16.mxu1 %v5032_v6  ;;  %v1270_v6 = vrot.slane %v5868_v59, %v5866_v56  ;;  %v5050_v12 = vpack.c.bf16 %v1253_v2, %v1235_v24  ;;  %v247_v62 = vld [vmem:[#allocation5 + $0x470] sm:$0xff]  ;;  %v5192_v24 = vpack.c.bf16 %v2672_v55, %v2671_v54  ;;  %v266_v2 = vld [vmem:[#allocation5 + $0x508] sm:$0xff] }
 0x25f   :  { %v2655_v63 = vld [vmem:[%s6825_s3 + $0x30] sm:$0xff] }
 0x260   :  { %4907 = vmatpush1.bf16.msra.mxu0 %v4906_v14  ;;  %v121_v14 = vld [vmem:[#allocation5 + $0x80] sm:$0xff] }
 0x261   :  { %5035 = vmatpush1.bf16.msra.mxu1 %v5034_v15  ;;  %4909 = vmatprep.subr.bf16.mxu0 %v4908_v17  ;;  %v139_v15 = vld [vmem:[#allocation5 + $0x110] sm:$0xff]  ;;  %v5180_v17 = vpack.c.bf16 %v2666_v9, %v2665_v7 }
 0x262   :  { %5037 = vmatprep.subr.bf16.mxu1 %v5036_v21  ;;  %v5481_v21 = vadd.f32 %v5849_v39, %v1270_v6  ;;  %v5054_v26 = vpack.c.bf16 %v139_v15, %v121_v14  ;;  %v2651_v39 = vld [vmem:[%s6825_s3 + $0x10] sm:$0xff]  ;;  %v2674_v6 = vld [vmem:[%s6825_s3 + $0xc8] sm:$0xff]  ;;  %v2657_v14 = vld [vmem:[%s6825_s3 + $0x40] sm:$0xff] }
 0x263   :  { %v5186_v45 = vpack.c.bf16 %v2652_v32, %v2651_v39  ;;  %v5196_v15 = vpack.c.bf16 %v2674_v6, %v2673_v4  ;;  %v2660_v39 = vld [vmem:[%s6825_s3 + $0x58] sm:$0xff]  ;;  %v2677_v32 = vld [vmem:[%s6825_s3 + $0xe0] sm:$0xff] }
 0x264   :  { %4911 = vmatpush1.bf16.msra.mxu0 %v4910_v29  ;;  %v175_v29 = vld [vmem:[#allocation5 + $0x230] sm:$0xff] }
 0x265   :  { %5039 = vmatpush1.bf16.msra.mxu1 %v5038_v30  ;;  %4913 = vmatprep.subr.bf16.mxu0 %v4912_v31  ;;  %v5056_v30 = vpack.c.bf16 %v176_v22, %v158_v20  ;;  %v5184_v31 = vpack.c.bf16 %v2668_v25, %v2667_v23  ;;  %v5058_v43 = vpack.c.bf16 %v175_v29, %v157_v28  ;;  %v2675_v20 = vld [vmem:[%s6825_s3 + $0xd0] sm:$0xff] }
 0x266   :  { %5041 = vmatprep.subr.bf16.mxu1 %v5040_v36  ;;  %v2632_v36 = vmax.f32 %v5481_v21, 0.0  ;;  %v2676_v21 = vld [vmem:[%s6825_s3 + $0xd8] sm:$0xff]  ;;  %v5072_v25 = vpack.c.bf16 %v320_v19, %v302_v18  ;;  %v2659_v28 = vld [vmem:[%s6825_s3 + $0x50] sm:$0xff] }
 0x267   :  { %v5200_v29 = vpack.c.bf16 %v2676_v21, %v2675_v20  ;;  %v464_v19 = vld [vmem:[#allocation5 + $0xb38] sm:$0xff]  ;;  %v2699_v20 = vld [vmem:[%s6825_s3 + $0x190] sm:$0xff] }
 0x268   :  { %4915 = vmatpush1.bf16.msra.mxu0 %v4914_v46  ;;  %v5060_v46 = vpack.c.bf16 %v212_v35, %v194_v33  ;;  %v2678_v33 = vld [vmem:[%s6825_s3 + $0xe8] sm:$0xff] }
 0x269   :  { %5043 = vmatpush1.bf16.msra.mxu1 %v5042_v47  ;;  %4917 = vmatprep.subr.bf16.mxu0 %v4916_v48  ;;  %v193_v47 = vld [vmem:[#allocation5 + $0x2c0] sm:$0xff]  ;;  %v211_v48 = vld [vmem:[#allocation5 + $0x350] sm:$0xff] }
 0x26a   :  { %5045 = vmatprep.subr.bf16.mxu1 %v5044_v52  ;;  %v230_v52 = vld [vmem:[#allocation5 + $0x3e8] sm:$0xff]  ;;  %v5062_v58 = vpack.c.bf16 %v211_v48, %v193_v47 }
 0x26b   :  { %v2662_v47 = vld [vmem:[%s6825_s3 + $0x68] sm:$0xff] }
 0x26c   :  { %4919 = vmatpush1.bf16.msra.mxu0 %v4918_v60  ;;  %v5190_v60 = vpack.c.bf16 %v2654_v51, %v2653_v49  ;;  %v374_v48 = vld [vmem:[#allocation5 + $0x868] sm:$0xff]  ;;  %v392_v49 = vld [vmem:[#allocation5 + $0x8f8] sm:$0xff]  ;;  %v2679_v51 = vld [vmem:[%s6825_s3 + $0xf0] sm:$0xff] }
 0x26d   :  { %5047 = vmatpush1.bf16.msra.mxu1 %v5046_v16  ;;  %4921 = vmatprep.subr.bf16.mxu0 %v4920_v61  ;;  %v5064_v16 = vpack.c.bf16 %v248_v53, %v230_v52  ;;  %v229_v61 = vld [vmem:[#allocation5 + $0x3e0] sm:$0xff]  ;;  %v2680_v52 = vld [vmem:[%s6825_s3 + $0xf8] sm:$0xff]  ;;  %v5078_v53 = vpack.c.bf16 %v355_v40, %v337_v38  ;;  %v5080_v55 = vpack.c.bf16 %v392_v49, %v374_v48  ;;  %v499_v40 = vld [vmem:[#allocation5 + $0xc50] sm:$0xff] }
 0x26e   :  { %5049 = vmatprep.subr.bf16.mxu1 %v5048_v1  ;;  %v2656_v1 = vld [vmem:[%s6825_s3 + $0x38] sm:$0xff]  ;;  %v5066_v7 = vpack.c.bf16 %v247_v62, %v229_v61  ;;  %v5208_v61 = vpack.c.bf16 %v2680_v52, %v2679_v51  ;;  %v481_v38 = vld [vmem:[#allocation5 + $0xbc0] sm:$0xff]  ;;  %v518_v48 = vld [vmem:[#allocation5 + $0xce8] sm:$0xff] }
 0x26f   :  { %v5194_v9 = vpack.c.bf16 %v2656_v1, %v2655_v63  ;;  %v2664_v62 = vld [vmem:[%s6825_s3 + $0x78] sm:$0xff]  ;;  %v410_v63 = vld [vmem:[#allocation5 + $0x988] sm:$0xff]  ;;  %v2703_v51 = vld [vmem:[%s6825_s3 + $0x1b0] sm:$0xff] }
 0x270   :  { %4923 = vmatpush1.bf16.msra.mxu0 %v4922_v11  ;;  %v5068_v11 = vpack.c.bf16 %v284_v3, %v266_v2  ;;  %v2697_v2 = vld [vmem:[%s6825_s3 + $0x180] sm:$0xff]  ;;  %v2698_v3 = vld [vmem:[%s6825_s3 + $0x188] sm:$0xff]  ;;  %v536_v49 = vld [vmem:[#allocation5 + $0xd78] sm:$0xff] }
 0x271   :  { %5051 = vmatpush1.bf16.msra.mxu1 %v5050_v12  ;;  %5053 = vmatprep.subr.bf16.mxu0 %v5052_v13  ;;  %v265_v12 = vld [vmem:[#allocation5 + $0x500] sm:$0xff]  ;;  %v283_v13 = vld [vmem:[#allocation5 + $0x590] sm:$0xff]  ;;  %v2704_v52 = vld [vmem:[%s6825_s3 + $0x1b8] sm:$0xff] }
 0x272   :  { %5181 = vmatprep.subr.bf16.mxu1 %v5180_v17  ;;  %v2658_v17 = vld [vmem:[%s6825_s3 + $0x48] sm:$0xff]  ;;  %v5070_v22 = vpack.c.bf16 %v283_v13, %v265_v12  ;;  %v5212_v13 = vpack.c.bf16 %v2698_v3, %v2697_v2 }
 0x273   :  { %2341 = vmatmul.mubr.f32.vlgmr.msra.gmra.mrb[6].mxu0 %v5539_v37  ;;  %v5198_v23 = vpack.c.bf16 %v2658_v17, %v2657_v14  ;;  %v2681_v14 = vld [vmem:[%s6825_s3 + $0x100] sm:$0xff]  ;;  %v446_v17 = vld [vmem:[#allocation5 + $0xaa8] sm:$0xff] }
 0x274   :  { %2483 = vmatmul.mubr.f32.vlgmr.msra.gmra.mrb[6].mxu1 %v5539_v37  ;;  %5055 = vmatpush1.bf16.msra.mxu0 %v5054_v26  ;;  %v301_v26 = vld [vmem:[#allocation5 + $0x620] sm:$0xff] }
 0x275   :  { %5183 = vmatpush3.bf16.msra.mxu1 %v5182_v27  ;;  %3008 = vmatprep.mubr.f32.mxu1 %v2632_v36  ;;  %v319_v27 = vld [vmem:[#allocation5 + $0x6b0] sm:$0xff]  ;;  %v5202_v36 = vpack.c.bf16 %v2660_v39, %v2659_v28  ;;  %v482_v39 = vld [vmem:[#allocation5 + $0xbc8] sm:$0xff] }
 0x276   :  { %5057 = vmatprep.subr.bf16.mxu0 %v5056_v30  ;;  %5185 = vmatprep.subr.bf16.mxu1 %v5184_v31  ;;  %v338_v30 = vld [vmem:[#allocation5 + $0x748] sm:$0xff]  ;;  %v356_v31 = vld [vmem:[#allocation5 + $0x7d8] sm:$0xff]  ;;  %v5074_v35 = vpack.c.bf16 %v319_v27, %v301_v26  ;;  %v5088_v27 = vpack.c.bf16 %v464_v19, %v446_v17 }
 0x277   :  { %2553 = vmatprep.mubr.f32.mxu0 %v5540_v57  ;;  %v5076_v37 = vpack.c.bf16 %v356_v31, %v338_v30  ;;  %v373_v57 = vld [vmem:[#allocation5 + $0x860] sm:$0xff]  ;;  %v500_v30 = vld [vmem:[#allocation5 + $0xc58] sm:$0xff] }
 0x278   :  { %5059 = vmatpush1.bf16.msra.mxu0 %v5058_v43  ;;  %v2661_v43 = vld [vmem:[%s6825_s3 + $0x60] sm:$0xff]  ;;  %v2708_v17 = vld [vmem:[%s6825_s3 + $0x1d8] sm:$0xff] }
 0x279   :  { %5187 = vmatpush3.bf16.msra.mxu1 %v5186_v45  ;;  %5061 = vmatprep.subr.bf16.mxu0 %v5060_v46  ;;  %v5955_v45 = vsub.s32 0, %v5863_v41  ;;  %v5204_v46 = vpack.c.bf16 %v2678_v33, %v2677_v32  ;;  %v5206_v54 = vpack.c.bf16 %v2662_v47, %v2661_v43  ;;  %v2701_v32 = vld [vmem:[%s6825_s3 + $0x1a0] sm:$0xff]  ;;  %v2702_v33 = vld [vmem:[%s6825_s3 + $0x1a8] sm:$0xff] }
 0x27a   :  { %5189 = vmatprep.subr.bf16.mxu1 %v5188_v50  ;;  %v1277_v50 = vsub.s32 3, %v5863_v41  ;;  %v2685_v43 = vld [vmem:[%s6825_s3 + $0x120] sm:$0xff]  ;;  %v2686_v47 = vld [vmem:[%s6825_s3 + $0x128] sm:$0xff] }
 0x27c   :  { %5063 = vmatpush1.bf16.msra.mxu0 %v5062_v58  ;;  %v391_v58 = vld [vmem:[#allocation5 + $0x8f0] sm:$0xff]  ;;  %v1278_v1 = vrot.slane %v5868_v59, %v1277_v50 }
 0x27d   :  { %5191 = vmatpush3.bf16.msra.mxu1 %v5190_v60  ;;  %5065 = vmatprep.subr.bf16.mxu0 %v5064_v16  ;;  %v2663_v60 = vld [vmem:[%s6825_s3 + $0x70] sm:$0xff]  ;;  %v1266_v16 = vrot.slane %v5868_v59, %v5955_v45  ;;  %v5082_v4 = vpack.c.bf16 %v391_v58, %v373_v57  ;;  %v517_v57 = vld [vmem:[#allocation5 + $0xce0] sm:$0xff] }
 0x27e   :  { %5193 = vmatprep.subr.bf16.mxu1 %v5192_v24  ;;  %v428_v24 = vld [vmem:[#allocation5 + $0xa18] sm:$0xff]  ;;  %v5210_v6 = vpack.c.bf16 %v2664_v62, %v2663_v60  ;;  %v5483_v18 = vadd.f32 %v5853_v44, %v1278_v1  ;;  %v2683_v44 = vld [vmem:[%s6825_s3 + $0x110] sm:$0xff]  ;;  %v554_v62 = vld [vmem:[#allocation5 + $0xe08] sm:$0xff] }
 0x27f   :  { %v5480_v12 = vadd.f32 %v5847_v34, %v1266_v16  ;;  %v2700_v34 = vld [vmem:[%s6825_s3 + $0x198] sm:$0xff]  ;;  %v535_v58 = vld [vmem:[#allocation5 + $0xd70] sm:$0xff]  ;;  %v5224_v16 = vpack.c.bf16 %v2704_v52, %v2703_v51  ;;  %v2706_v1 = vld [vmem:[%s6825_s3 + $0x1c8] sm:$0xff] }
 0x280   :  { %5067 = vmatpush1.bf16.msra.mxu0 %v5066_v7  ;;  %v5084_v7 = vpack.c.bf16 %v428_v24, %v410_v63  ;;  %v5216_v28 = vpack.c.bf16 %v2700_v34, %v2699_v20  ;;  %v2634_v31 = vmax.f32 %v5483_v18, 0.0  ;;  %v2687_v60 = vld [vmem:[%s6825_s3 + $0x130] sm:$0xff]  ;;  %v572_v63 = vld [vmem:[#allocation5 + $0xe98] sm:$0xff]  ;;  %v2705_v24 = vld [vmem:[%s6825_s3 + $0x1c0] sm:$0xff]  ;;  %v5098_v2 = vpack.c.bf16 %v535_v58, %v517_v57 }
 0x281   :  { %5195 = vmatpush3.bf16.msra.mxu1 %v5194_v9  ;;  %5069 = vmatprep.subr.bf16.mxu0 %v5068_v11  ;;  %v409_v9 = vld [vmem:[#allocation5 + $0x980] sm:$0xff]  ;;  %v427_v11 = vld [vmem:[#allocation5 + $0xa10] sm:$0xff]  ;;  %v2631_v26 = vmax.f32 %v5480_v12, 0.0  ;;  %v2690_v12 = vld [vmem:[%s6825_s3 + $0x148] sm:$0xff] }
 0x282   :  { %5197 = vmatprep.subr.bf16.mxu1 %v5196_v15  ;;  %v2682_v15 = vld [vmem:[%s6825_s3 + $0x108] sm:$0xff]  ;;  %v5086_v21 = vpack.c.bf16 %v427_v11, %v409_v9  ;;  %v2689_v9 = vld [vmem:[%s6825_s3 + $0x140] sm:$0xff]  ;;  %v5228_v11 = vpack.c.bf16 %v2706_v1, %v2705_v24  ;;  %v2696_v58 = vld [vmem:[%s6825_s3 + $0x178] sm:$0xff] }
 0x283   :  { %v5230_v19 = vpack.c.bf16 %v2690_v12, %v2689_v9  ;;  %v589_v34 = vld [vmem:[#allocation5 + $0xf20] sm:$0xff]  ;;  %v734_v12 = vld [vmem:[#allocation5 + $0x13a8] sm:$0xff] }
 0x284   :  { %5071 = vmatpush1.bf16.msra.mxu0 %v5070_v22  ;;  %v5214_v22 = vpack.c.bf16 %v2682_v15, %v2681_v14  ;;  %v608_v14 = vld [vmem:[#allocation5 + $0xfb8] sm:$0xff]  ;;  %v2707_v15 = vld [vmem:[%s6825_s3 + $0x1d0] sm:$0xff]  ;;  %v661_v52 = vld [vmem:[#allocation5 + $0x1160] sm:$0xff] }
 0x285   :  { %5199 = vmatpush3.bf16.msra.mxu1 %v5198_v23  ;;  %5073 = vmatprep.subr.bf16.mxu0 %v5072_v25  ;;  %v445_v23 = vld [vmem:[#allocation5 + $0xaa0] sm:$0xff]  ;;  %v463_v25 = vld [vmem:[#allocation5 + $0xb30] sm:$0xff] }
 0x286   :  { %5201 = vmatprep.subr.bf16.mxu1 %v5200_v29  ;;  %v2684_v29 = vld [vmem:[%s6825_s3 + $0x118] sm:$0xff]  ;;  %v2713_v9 = vld [vmem:[%s6825_s3 + $0x200] sm:$0xff] }
 0x288   :  { %5075 = vmatpush1.bf16.msra.mxu0 %v5074_v35  ;;  %v5090_v35 = vpack.c.bf16 %v463_v25, %v445_v23  ;;  %v5232_v23 = vpack.c.bf16 %v2708_v17, %v2707_v15  ;;  %v2692_v25 = vld [vmem:[%s6825_s3 + $0x158] sm:$0xff]  ;;  %v2731_v15 = vld [vmem:[%s6825_s3 + $0x290] sm:$0xff] }
 0x289   :  { %5203 = vmatpush3.bf16.msra.mxu1 %v5202_v36  ;;  %5077 = vmatprep.subr.bf16.mxu0 %v5076_v37  ;;  %v5218_v36 = vpack.c.bf16 %v2684_v29, %v2683_v44  ;;  %v5092_v37 = vpack.c.bf16 %v500_v30, %v482_v39  ;;  %v626_v44 = vld [vmem:[#allocation5 + $0x1048] sm:$0xff] }
 0x28a   :  { %5205 = vmatprep.subr.bf16.mxu1 %v5204_v46  ;;  %v5220_v46 = vpack.c.bf16 %v2702_v33, %v2701_v32  ;;  %v643_v32 = vld [vmem:[#allocation5 + $0x10d0] sm:$0xff]  ;;  %v2693_v33 = vld [vmem:[%s6825_s3 + $0x160] sm:$0xff] }
 0x28c   :  { %5079 = vmatpush1.bf16.msra.mxu0 %v5078_v53  ;;  %v5094_v53 = vpack.c.bf16 %v499_v40, %v481_v38  ;;  %v662_v38 = vld [vmem:[#allocation5 + $0x1168] sm:$0xff]  ;;  %v680_v40 = vld [vmem:[#allocation5 + $0x11f8] sm:$0xff] }
 0x28d   :  { %5207 = vmatpush3.bf16.msra.mxu1 %v5206_v54  ;;  %5081 = vmatprep.subr.bf16.mxu0 %v5080_v55  ;;  %v5222_v54 = vpack.c.bf16 %v2686_v47, %v2685_v43  ;;  %v5096_v55 = vpack.c.bf16 %v536_v49, %v518_v48  ;;  %v1285_v43 = vsub.s32 5, %v5863_v41  ;;  %v2712_v47 = vld [vmem:[%s6825_s3 + $0x1f8] sm:$0xff]  ;;  %v5112_v51 = vpack.c.bf16 %v680_v40, %v662_v38  ;;  %v2718_v38 = vld [vmem:[%s6825_s3 + $0x228] sm:$0xff] }
 0x28e   :  { %5209 = vmatprep.subr.bf16.mxu1 %v5208_v61  ;;  %v2688_v61 = vld [vmem:[%s6825_s3 + $0x138] sm:$0xff]  ;;  %v806_v40 = vld [vmem:[#allocation5 + $0x15e8] sm:$0xff] }
 0x28f   :  { %v5226_v3 = vpack.c.bf16 %v2688_v61, %v2687_v60  ;;  %v698_v60 = vld [vmem:[#allocation5 + $0x1288] sm:$0xff]  ;;  %v1286_v61 = vrot.slane %v5868_v59, %v1285_v43 }
 0x290   :  { %5083 = vmatpush1.bf16.msra.mxu0 %v5082_v4  ;;  %v5100_v4 = vpack.c.bf16 %v572_v63, %v554_v62  ;;  %v2729_v62 = vld [vmem:[%s6825_s3 + $0x280] sm:$0xff]  ;;  %v2730_v63 = vld [vmem:[%s6825_s3 + $0x288] sm:$0xff] }
 0x291   :  { %5211 = vmatpush3.bf16.msra.mxu1 %v5210_v6  ;;  %5085 = vmatprep.subr.bf16.mxu0 %v5084_v7  ;;  %v553_v6 = vld [vmem:[#allocation5 + $0xe00] sm:$0xff]  ;;  %v571_v7 = vld [vmem:[#allocation5 + $0xe90] sm:$0xff] }
 0x292   :  { %5213 = vmatprep.subr.bf16.mxu1 %v5212_v13  ;;  %v590_v13 = vld [vmem:[#allocation5 + $0xf28] sm:$0xff]  ;;  %v5102_v18 = vpack.c.bf16 %v571_v7, %v553_v6  ;;  %v5244_v7 = vpack.c.bf16 %v2730_v63, %v2729_v62  ;;  %v2737_v62 = vld [vmem:[%s6825_s3 + $0x2c0] sm:$0xff] }
 0x293   :  { %v5104_v20 = vpack.c.bf16 %v608_v14, %v590_v13  ;;  %v5485_v13 = vadd.f32 %v5857_v5, %v1286_v61  ;;  %v752_v14 = vld [vmem:[#allocation5 + $0x1438] sm:$0xff]  ;;  %v2715_v5 = vld [vmem:[%s6825_s3 + $0x210] sm:$0xff]  ;;  %v2738_v63 = vld [vmem:[%s6825_s3 + $0x2c8] sm:$0xff] }
 0x294   :  { %3009 = vmatmul.mubr.f32.vlgmr.msra.gmra.mrb[8].mxu1 %v2631_v26  ;;  %5087 = vmatpush1.bf16.msra.mxu0 %v5086_v21  ;;  %v607_v21 = vld [vmem:[#allocation5 + $0xfb0] sm:$0xff]  ;;  %v644_v26 = vld [vmem:[#allocation5 + $0x10d8] sm:$0xff] }
 0x295   :  { %5215 = vmatpush3.bf16.msra.mxu1 %v5214_v22  ;;  %3078 = vmatprep.mubr.f32.mxu1 %v2634_v31  ;;  %v2691_v22 = vld [vmem:[%s6825_s3 + $0x150] sm:$0xff]  ;;  %v5106_v29 = vpack.c.bf16 %v607_v21, %v589_v34  ;;  %v5108_v30 = vpack.c.bf16 %v644_v26, %v626_v44  ;;  %v625_v31 = vld [vmem:[#allocation5 + $0x1040] sm:$0xff]  ;;  %v5120_v21 = vpack.c.bf16 %v752_v14, %v734_v12  ;;  %v788_v44 = vld [vmem:[#allocation5 + $0x1558] sm:$0xff]  ;;  %v2636_v26 = vmax.f32 %v5485_v13, 0.0 }
 0x296   :  { %5089 = vmatprep.subr.bf16.mxu0 %v5088_v27  ;;  %5217 = vmatprep.subr.bf16.mxu1 %v5216_v28  ;;  %v2709_v27 = vld [vmem:[%s6825_s3 + $0x1e0] sm:$0xff]  ;;  %v2710_v28 = vld [vmem:[%s6825_s3 + $0x1e8] sm:$0xff]  ;;  %v5234_v39 = vpack.c.bf16 %v2692_v25, %v2691_v22  ;;  %v5110_v48 = vpack.c.bf16 %v643_v32, %v625_v31  ;;  %v860_v61 = vld [vmem:[#allocation5 + $0x1798] sm:$0xff] }
 0x297   :  { %v770_v25 = vld [vmem:[#allocation5 + $0x14c8] sm:$0xff]  ;;  %v769_v32 = vld [vmem:[#allocation5 + $0x14c0] sm:$0xff]  ;;  %v896_v12 = vld [vmem:[#allocation5 + $0x18b8] sm:$0xff] }
 0x298   :  { %5091 = vmatpush1.bf16.msra.mxu0 %v5090_v35  ;;  %v1273_v35 = vsub.s32 2, %v5863_v41  ;;  %v5124_v31 = vpack.c.bf16 %v788_v44, %v770_v25  ;;  %v2739_v13 = vld [vmem:[%s6825_s3 + $0x2d0] sm:$0xff]  ;;  %v2740_v14 = vld [vmem:[%s6825_s3 + $0x2d8] sm:$0xff]  ;;  %v2742_v25 = vld [vmem:[%s6825_s3 + $0x2e8] sm:$0xff] }
 0x299   :  { %5219 = vmatpush3.bf16.msra.mxu1 %v5218_v36  ;;  %5093 = vmatprep.subr.bf16.mxu0 %v5092_v37  ;;  %v5236_v36 = vpack.c.bf16 %v2710_v28, %v2709_v27  ;;  %v2694_v37 = vld [vmem:[%s6825_s3 + $0x168] sm:$0xff]  ;;  %v5541_v27 = vld [vmem:[#allocation2] sm:$0xff] }
 0x29a   :  { %5221 = vmatprep.subr.bf16.mxu1 %v5220_v46  ;;  %v2711_v46 = vld [vmem:[%s6825_s3 + $0x1f0] sm:$0xff]  ;;  %v5238_v49 = vpack.c.bf16 %v2694_v37, %v2693_v33  ;;  %v2733_v28 = vld [vmem:[%s6825_s3 + $0x2a0] sm:$0xff] }
 0x29b   :  { %v5240_v57 = vpack.c.bf16 %v2712_v47, %v2711_v46  ;;  %v787_v33 = vld [vmem:[#allocation5 + $0x1550] sm:$0xff]  ;;  %v824_v46 = vld [vmem:[#allocation5 + $0x1678] sm:$0xff] }
 0x29c   :  { %5095 = vmatpush1.bf16.msra.mxu0 %v5094_v53  ;;  %v679_v53 = vld [vmem:[#allocation5 + $0x11f0] sm:$0xff] }
 0x29d   :  { %5223 = vmatpush3.bf16.msra.mxu1 %v5222_v54  ;;  %5097 = vmatprep.subr.bf16.mxu0 %v5096_v55  ;;  %v2695_v54 = vld [vmem:[%s6825_s3 + $0x170] sm:$0xff]  ;;  %v1274_v55 = vrot.slane %v5868_v59, %v1273_v35  ;;  %v5114_v24 = vpack.c.bf16 %v679_v53, %v661_v52  ;;  %v5128_v53 = vpack.c.bf16 %v824_v46, %v806_v40 }
 0x29e   :  { %5225 = vmatprep.subr.bf16.mxu1 %v5224_v16  ;;  %v716_v16 = vld [vmem:[#allocation5 + $0x1318] sm:$0xff]  ;;  %v5242_v1 = vpack.c.bf16 %v2696_v58, %v2695_v54  ;;  %v2735_v47 = vld [vmem:[%s6825_s3 + $0x2b0] sm:$0xff]  ;;  %v805_v54 = vld [vmem:[#allocation5 + $0x15e0] sm:$0xff] }
 0x29f   :  { %v5482_v6 = vadd.f32 %v5851_v42, %v1274_v55  ;;  %v2732_v42 = vld [vmem:[%s6825_s3 + $0x298] sm:$0xff]  ;;  %v823_v55 = vld [vmem:[#allocation5 + $0x1670] sm:$0xff] }
 0x2a0   :  { %5099 = vmatpush1.bf16.msra.mxu0 %v5098_v2  ;;  %v5116_v2 = vpack.c.bf16 %v716_v16, %v698_v60  ;;  %v5248_v22 = vpack.c.bf16 %v2732_v42, %v2731_v15  ;;  %v2720_v60 = vld [vmem:[%s6825_s3 + $0x238] sm:$0xff]  ;;  %v842_v16 = vld [vmem:[#allocation5 + $0x1708] sm:$0xff]  ;;  %v2743_v46 = vld [vmem:[%s6825_s3 + $0x2f0] sm:$0xff] }
 0x2a1   :  { %5227 = vmatpush3.bf16.msra.mxu1 %v5226_v3  ;;  %5101 = vmatprep.subr.bf16.mxu0 %v5100_v4  ;;  %v697_v3 = vld [vmem:[#allocation5 + $0x1280] sm:$0xff]  ;;  %v715_v4 = vld [vmem:[#allocation5 + $0x1310] sm:$0xff]  ;;  %v2633_v34 = vmax.f32 %v5482_v6, 0.0 }
 0x2a2   :  { %5229 = vmatprep.subr.bf16.mxu1 %v5228_v11  ;;  %v2714_v11 = vld [vmem:[%s6825_s3 + $0x208] sm:$0xff]  ;;  %v5118_v17 = vpack.c.bf16 %v715_v4, %v697_v3  ;;  %v841_v3 = vld [vmem:[#allocation5 + $0x1700] sm:$0xff]  ;;  %v859_v4 = vld [vmem:[#allocation5 + $0x1790] sm:$0xff] }
 0x2a3   :  { %v2721_v6 = vld [vmem:[%s6825_s3 + $0x240] sm:$0xff]  ;;  %v5134_v15 = vpack.c.bf16 %v859_v4, %v841_v3 }
 0x2a4   :  { %5103 = vmatpush1.bf16.msra.mxu0 %v5102_v18  ;;  %v5246_v18 = vpack.c.bf16 %v2714_v11, %v2713_v9  ;;  %v2722_v9 = vld [vmem:[%s6825_s3 + $0x248] sm:$0xff] }
 0x2a5   :  { %5231 = vmatpush3.bf16.msra.mxu1 %v5230_v19  ;;  %5105 = vmatprep.subr.bf16.mxu0 %v5104_v20  ;;  %v733_v19 = vld [vmem:[#allocation5 + $0x13a0] sm:$0xff]  ;;  %v751_v20 = vld [vmem:[#allocation5 + $0x1430] sm:$0xff]  ;;  %v878_v11 = vld [vmem:[#allocation5 + $0x1828] sm:$0xff]  ;;  %v5262_v42 = vpack.c.bf16 %v2722_v9, %v2721_v6 }
 0x2a6   :  { %5233 = vmatprep.subr.bf16.mxu1 %v5232_v23  ;;  %v2716_v23 = vld [vmem:[%s6825_s3 + $0x218] sm:$0xff]  ;;  %v985_v6 = vld [vmem:[#allocation5 + $0x1b80] sm:$0xff] }
 0x2a8   :  { %5107 = vmatpush1.bf16.msra.mxu0 %v5106_v29  ;;  %v2734_v29 = vld [vmem:[%s6825_s3 + $0x2a8] sm:$0xff] }
 0x2a9   :  { %5235 = vmatpush3.bf16.msra.mxu1 %v5234_v39  ;;  %5109 = vmatprep.subr.bf16.mxu0 %v5108_v30  ;;  %v5122_v39 = vpack.c.bf16 %v751_v20, %v733_v19  ;;  %v5250_v30 = vpack.c.bf16 %v2716_v23, %v2715_v5  ;;  %v5252_v37 = vpack.c.bf16 %v2734_v29, %v2733_v28  ;;  %v895_v19 = vld [vmem:[#allocation5 + $0x18b0] sm:$0xff]  ;;  %v2741_v23 = vld [vmem:[%s6825_s3 + $0x2e0] sm:$0xff] }
 0x2aa   :  { %5237 = vmatprep.subr.bf16.mxu1 %v5236_v36  ;;  %v2717_v36 = vld [vmem:[%s6825_s3 + $0x220] sm:$0xff]  ;;  %v2723_v20 = vld [vmem:[%s6825_s3 + $0x250] sm:$0xff]  ;;  %v5264_v5 = vpack.c.bf16 %v2740_v14, %v2739_v13  ;;  %v1022_v13 = vld [vmem:[#allocation5 + $0x1ca8] sm:$0xff] }
 0x2ab   :  { %v5254_v52 = vpack.c.bf16 %v2718_v38, %v2717_v36  ;;  %v913_v28 = vld [vmem:[#allocation5 + $0x1940] sm:$0xff]  ;;  %v931_v29 = vld [vmem:[#allocation5 + $0x19d0] sm:$0xff]  ;;  %v950_v36 = vld [vmem:[#allocation5 + $0x1a68] sm:$0xff]  ;;  %v1293_v38 = vsub.s32 7, %v5863_v41 }
 0x2ac   :  { %5111 = vmatpush1.bf16.msra.mxu0 %v5110_v48  ;;  %v2736_v48 = vld [vmem:[%s6825_s3 + $0x2b8] sm:$0xff] }
 0x2ad   :  { %5239 = vmatpush3.bf16.msra.mxu1 %v5238_v49  ;;  %5113 = vmatprep.subr.bf16.mxu0 %v5112_v51  ;;  %v5542_v49 = vld [vmem:[#allocation2 + $0x18] sm:$0xff]  ;;  %v5126_v51 = vpack.c.bf16 %v787_v33, %v769_v32  ;;  %v5256_v58 = vpack.c.bf16 %v2736_v48, %v2735_v47  ;;  %v5268_v32 = vpack.c.bf16 %v2742_v25, %v2741_v23  ;;  %v2726_v33 = vld [vmem:[%s6825_s3 + $0x268] sm:$0xff] }
 0x2ae   :  { %5241 = vmatprep.subr.bf16.mxu1 %v5240_v57  ;;  %v2719_v57 = vld [vmem:[%s6825_s3 + $0x230] sm:$0xff]  ;;  %v2744_v47 = vld [vmem:[%s6825_s3 + $0x2f8] sm:$0xff]  ;;  %v1058_v23 = vld [vmem:[#allocation5 + $0x1dc8] sm:$0xff] }
 0x2af   :  { %v1076_v25 = vld [vmem:[#allocation5 + $0x1e58] sm:$0xff] }
 0x2b0   :  { %5115 = vmatpush1.bf16.msra.mxu0 %v5114_v24  ;;  %v5130_v24 = vpack.c.bf16 %v823_v55, %v805_v54  ;;  %v949_v54 = vld [vmem:[#allocation5 + $0x1a60] sm:$0xff]  ;;  %v967_v55 = vld [vmem:[#allocation5 + $0x1af0] sm:$0xff] }
 0x2b1   :  { %5243 = vmatpush3.bf16.msra.mxu1 %v5242_v1  ;;  %5117 = vmatprep.subr.bf16.mxu0 %v5116_v2  ;;  %v5258_v1 = vpack.c.bf16 %v2720_v60, %v2719_v57  ;;  %v5132_v2 = vpack.c.bf16 %v860_v61, %v842_v16  ;;  %v2727_v57 = vld [vmem:[%s6825_s3 + $0x270] sm:$0xff]  ;;  %v5272_v60 = vpack.c.bf16 %v2744_v47, %v2743_v46  ;;  %v2728_v16 = vld [vmem:[%s6825_s3 + $0x278] sm:$0xff]  ;;  %v986_v61 = vld [vmem:[#allocation5 + $0x1b88] sm:$0xff] }
 0x2b2   :  { %5245 = vmatprep.subr.bf16.mxu1 %v5244_v7  ;;  %v5260_v7 = vpack.c.bf16 %v2738_v63, %v2737_v62  ;;  %v1004_v62 = vld [vmem:[#allocation5 + $0x1c18] sm:$0xff]  ;;  %v1294_v63 = vrot.slane %v5868_v59, %v1293_v38  ;;  %v5274_v3 = vpack.c.bf16 %v2728_v16, %v2727_v57  ;;  %v2750_v46 = vld [vmem:[%s6825_s3 + $0x328] sm:$0xff]  ;;  %v2751_v16 = vld [vmem:[%s6825_s3 + $0x330] sm:$0xff] }
 0x2b3   :  { %2554 = vmatmul.mubr.f32.vlgmr.msra.gmra.mrb[8].mxu0 %v5541_v27  ;;  %v5148_v4 = vpack.c.bf16 %v1004_v62, %v986_v61  ;;  %v1094_v47 = vld [vmem:[#allocation5 + $0x1ee8] sm:$0xff]  ;;  %v2752_v62 = vld [vmem:[%s6825_s3 + $0x338] sm:$0xff] }
 0x2b4   :  { %3079 = vmatmul.mubr.f32.vlgmr.msra.gmra.mrb[10].mxu1 %v2633_v34  ;;  %5119 = vmatpush1.bf16.msra.mxu0 %v5118_v17  ;;  %v5136_v17 = vpack.c.bf16 %v896_v12, %v878_v11  ;;  %v2724_v34 = vld [vmem:[%s6825_s3 + $0x258] sm:$0xff]  ;;  %v2745_v11 = vld [vmem:[%s6825_s3 + $0x300] sm:$0xff]  ;;  %v2746_v12 = vld [vmem:[%s6825_s3 + $0x308] sm:$0xff]  ;;  %v5487_v14 = vadd.f32 %v5861_v10, %v1294_v63 }
 0x2b5   :  { %5247 = vmatpush3.bf16.msra.mxu1 %v5246_v18  ;;  %3148 = vmatprep.mubr.f32.mxu1 %v2636_v26  ;;  %v877_v18 = vld [vmem:[#allocation5 + $0x1820] sm:$0xff]  ;;  %v5266_v26 = vpack.c.bf16 %v2724_v34, %v2723_v20  ;;  %v1039_v20 = vld [vmem:[#allocation5 + $0x1d30] sm:$0xff]  ;;  %v1130_v63 = vld [vmem:[#allocation5 + $0x2008] sm:$0xff] }
 0x2b6   :  { %5121 = vmatprep.subr.bf16.mxu0 %v5120_v21  ;;  %5249 = vmatprep.subr.bf16.mxu1 %v5248_v22  ;;  %v914_v21 = vld [vmem:[#allocation5 + $0x1948] sm:$0xff]  ;;  %v932_v22 = vld [vmem:[#allocation5 + $0x19d8] sm:$0xff]  ;;  %v5138_v44 = vpack.c.bf16 %v895_v19, %v877_v18  ;;  %v5278_v18 = vpack.c.bf16 %v2746_v12, %v2745_v11  ;;  %v1021_v19 = vld [vmem:[#allocation5 + $0x1ca0] sm:$0xff] }
 0x2b7   :  { %2624 = vmatprep.mubr.f32.mxu0 %v5542_v49  ;;  %v5140_v27 = vpack.c.bf16 %v932_v22, %v914_v21  ;;  %v5142_v49 = vpack.c.bf16 %v931_v29, %v913_v28  ;;  %v2747_v10 = vld [vmem:[%s6825_s3 + $0x310] sm:$0xff]  ;;  %v2748_v22 = vld [vmem:[%s6825_s3 + $0x318] sm:$0xff]  ;;  %v5154_v28 = vpack.c.bf16 %v1039_v20, %v1021_v19  ;;  %v2754_v12 = vld [vmem:[%s6825_s3 + $0x348] sm:$0xff] }
 0x2b8   :  { %5123 = vmatpush1.bf16.msra.mxu0 %v5122_v39  ;;  %v2725_v39 = vld [vmem:[%s6825_s3 + $0x260] sm:$0xff]  ;;  %v5282_v29 = vpack.c.bf16 %v2748_v22, %v2747_v10  ;;  %v1183_v20 = vld [vmem:[#allocation5 + $0x21b0] sm:$0xff]  ;;  %v1220_v22 = vld [vmem:[#allocation5 + $0x22d8] sm:$0xff] }
 0x2b9   :  { %5251 = vmatpush3.bf16.msra.mxu1 %v5250_v30  ;;  %5125 = vmatprep.subr.bf16.mxu0 %v5124_v31  ;;  %v1281_v30 = vsub.s32 4, %v5863_v41  ;;  %v1165_v19 = vld [vmem:[#allocation5 + $0x2120] sm:$0xff]  ;;  %v2755_v10 = vld [vmem:[%s6825_s3 + $0x350] sm:$0xff] }
 0x2ba   :  { %5253 = vmatprep.subr.bf16.mxu1 %v5252_v37  ;;  %v968_v37 = vld [vmem:[#allocation5 + $0x1af8] sm:$0xff] }
 0x2bc   :  { %5127 = vmatpush1.bf16.msra.mxu0 %v5126_v51 }
 0x2bd   :  { %5255 = vmatpush3.bf16.msra.mxu1 %v5254_v52  ;;  %5129 = vmatprep.subr.bf16.mxu0 %v5128_v53  ;;  %v5270_v52 = vpack.c.bf16 %v2726_v33, %v2725_v39  ;;  %v5144_v53 = vpack.c.bf16 %v968_v37, %v950_v36  ;;  %v5156_v39 = vpack.c.bf16 %v1076_v25, %v1058_v23  ;;  %v1075_v33 = vld [vmem:[#allocation5 + $0x1e50] sm:$0xff]  ;;  %v2749_v36 = vld [vmem:[%s6825_s3 + $0x320] sm:$0xff]  ;;  %v2774_v25 = vld [vmem:[%s6825_s3 + $0x3e8] sm:$0xff] }
 0x2be   :  { %5257 = vmatprep.subr.bf16.mxu1 %v5256_v58  ;;  %v1282_v58 = vrot.slane %v5868_v59, %v1281_v30  ;;  %v2773_v23 = vld [vmem:[%s6825_s3 + $0x3e0] sm:$0xff] }
 0x2c0   :  { %5131 = vmatpush1.bf16.msra.mxu0 %v5130_v24  ;;  %v2761_v24 = vld [vmem:[%s6825_s3 + $0x380] sm:$0xff]  ;;  %v5484_v9 = vadd.f32 %v5855_v0, %v1282_v58  ;;  %v2764_v0 = vld [vmem:[%s6825_s3 + $0x398] sm:$0xff] }
 0x2c1   :  { %5259 = vmatpush3.bf16.msra.mxu1 %v5258_v1  ;;  %5133 = vmatprep.subr.bf16.mxu0 %v5132_v2  ;;  %v2762_v1 = vld [vmem:[%s6825_s3 + $0x388] sm:$0xff]  ;;  %v5146_v2 = vpack.c.bf16 %v967_v55, %v949_v54  ;;  %v5286_v55 = vpack.c.bf16 %v2750_v46, %v2749_v36  ;;  %v1093_v58 = vld [vmem:[#allocation5 + $0x1ee0] sm:$0xff]  ;;  %v1256_v46 = vld [vmem:[#allocation5 + $0x23f8] sm:$0xff] }
 0x2c2   :  { %5261 = vmatprep.subr.bf16.mxu1 %v5260_v7  ;;  %v1003_v7 = vld [vmem:[#allocation5 + $0x1c10] sm:$0xff]  ;;  %v5276_v59 = vpack.c.bf16 %v2762_v1, %v2761_v24  ;;  %v1148_v24 = vld [vmem:[#allocation5 + $0x2098] sm:$0xff]  ;;  %v2769_v1 = vld [vmem:[%s6825_s3 + $0x3c0] sm:$0xff] }
 0x2c3   :  { %v2758_v36 = vld [vmem:[%s6825_s3 + $0x368] sm:$0xff] }
 0x2c4   :  { %5135 = vmatpush1.bf16.msra.mxu0 %v5134_v15  ;;  %v1040_v15 = vld [vmem:[#allocation5 + $0x1d38] sm:$0xff] }
 0x2c5   :  { %5263 = vmatpush3.bf16.msra.mxu1 %v5262_v42  ;;  %5137 = vmatprep.subr.bf16.mxu0 %v5136_v17  ;;  %v2763_v42 = vld [vmem:[%s6825_s3 + $0x390] sm:$0xff]  ;;  %v5150_v17 = vpack.c.bf16 %v1003_v7, %v985_v6  ;;  %v5152_v34 = vpack.c.bf16 %v1040_v15, %v1022_v13  ;;  %v5164_v6 = vpack.c.bf16 %v1148_v24, %v1130_v63  ;;  %v1129_v7 = vld [vmem:[#allocation5 + $0x2000] sm:$0xff]  ;;  %v1166_v13 = vld [vmem:[#allocation5 + $0x2128] sm:$0xff] }
 0x2c6   :  { %v6168_v31 = vpop.f32.mrb[4].mxu0  ;;  %5265 = vmatprep.subr.bf16.mxu1 %v5264_v5  ;;  %v2635_v5 = vmax.f32 %v5484_v9, 0.0  ;;  %v5280_v21 = vpack.c.bf16 %v2764_v0, %v2763_v42  ;;  %v1147_v9 = vld [vmem:[#allocation5 + $0x2090] sm:$0xff]  ;;  %v2772_v42 = vld [vmem:[%s6825_s3 + $0x3d8] sm:$0xff]  ;;  %v2793_v24 = vld [vmem:[%s6825_s3 + $0x480] sm:$0xff] }
 0x2c7   :  { %v6174_v40 = vpop.f32.mrb[5].mxu0  ;;  %v6182_v48 = vpop.f32.mrb[4].mxu1  ;;  %v2771_v15 = vld [vmem:[%s6825_s3 + $0x3d0] sm:$0xff]  ;;  %v5166_v0 = vpack.c.bf16 %v1147_v9, %v1129_v7  ;;  %v2760_v63 = vld [vmem:[%s6825_s3 + $0x378] sm:$0xff] }
 0x2c8   :  { %5139 = vmatpush1.bf16.msra.mxu0 %v5138_v44  ;;  %v6184_v51 = vpop.f32.mrb[5].mxu1  ;;  %v2638_v44 = vmax.f32 %v5487_v14, 0.0  ;;  %v1184_v14 = vld [vmem:[#allocation5 + $0x21b8] sm:$0xff] }
 0x2c9   :  { %5267 = vmatpush3.bf16.msra.mxu1 %v5266_v26  ;;  %5141 = vmatprep.subr.bf16.mxu0 %v5140_v27  ;;  %v2765_v26 = vld [vmem:[%s6825_s3 + $0x3a0] sm:$0xff]  ;;  %v2766_v27 = vld [vmem:[%s6825_s3 + $0x3a8] sm:$0xff] }
 0x2ca   :  { %5269 = vmatprep.subr.bf16.mxu1 %v5268_v32  ;;  %v1057_v32 = vld [vmem:[#allocation5 + $0x1dc0] sm:$0xff]  ;;  %v5284_v37 = vpack.c.bf16 %v2766_v27, %v2765_v26 }
 0x2cb   :  { %v5158_v54 = vpack.c.bf16 %v1075_v33, %v1057_v32  ;;  %v1289_v32 = vsub.s32 6, %v5863_v41  ;;  %v5300_v33 = vpack.c.bf16 %v2774_v25, %v2773_v23  ;;  %v2812_v23 = vld [vmem:[%s6825_s3 + $0x518] sm:$0xff]  ;;  %v2797_v25 = vld [vmem:[%s6825_s3 + $0x4a0] sm:$0xff]  ;;  %v2923_v41 = vld [vmem:[%s6825_s3 + $0x890] sm:$0xff] }
 0x2cc   :  { %5143 = vmatpush1.bf16.msra.mxu0 %v5142_v49  ;;  %v1112_v49 = vld [vmem:[#allocation5 + $0x1f78] sm:$0xff] }
 0x2cd   :  { %5271 = vmatpush3.bf16.msra.mxu1 %v5270_v52  ;;  %5145 = vmatprep.subr.bf16.mxu0 %v5144_v53  ;;  %v2767_v52 = vld [vmem:[%s6825_s3 + $0x3b0] sm:$0xff]  ;;  %v2768_v53 = vld [vmem:[%s6825_s3 + $0x3b8] sm:$0xff]  ;;  %v5160_v57 = vpack.c.bf16 %v1112_v49, %v1094_v47 }
 0x2ce   :  { %5273 = vmatprep.subr.bf16.mxu1 %v5272_v60  ;;  %v1111_v60 = vld [vmem:[#allocation5 + $0x1f70] sm:$0xff]  ;;  %v5288_v61 = vpack.c.bf16 %v2768_v53, %v2767_v52  ;;  %v2776_v49 = vld [vmem:[%s6825_s3 + $0x3f8] sm:$0xff]  ;;  %v6291_v52 = vld [vmem:[#allocation7 + $0x8] sm:$0xff] }
 0x2cf   :  { %v2775_v47 = vld [vmem:[%s6825_s3 + $0x3f0] sm:$0xff] }
 0x2d0   :  { %5147 = vmatpush1.bf16.msra.mxu0 %v5146_v2  ;;  %v2770_v2 = vld [vmem:[%s6825_s3 + $0x3c8] sm:$0xff] }
 0x2d1   :  { %5275 = vmatpush3.bf16.msra.mxu1 %v5274_v3  ;;  %5149 = vmatprep.subr.bf16.mxu0 %v5148_v4  ;;  %v5162_v3 = vpack.c.bf16 %v1111_v60, %v1093_v58  ;;  %v5290_v4 = vpack.c.bf16 %v2752_v62, %v2751_v16  ;;  %v5292_v11 = vpack.c.bf16 %v2770_v2, %v2769_v1  ;;  %v1255_v58 = vld [vmem:[#allocation5 + $0x23f0] sm:$0xff]  ;;  %v5543_v16 = vld [vmem:[#allocation7] sm:$0xff]  ;;  %v2794_v1 = vld [vmem:[%s6825_s3 + $0x488] sm:$0xff] }
 0x2d2   :  { %5277 = vmatprep.subr.bf16.mxu1 %v5276_v59  ;;  %v2753_v59 = vld [vmem:[%s6825_s3 + $0x340] sm:$0xff]  ;;  %v2759_v60 = vld [vmem:[%s6825_s3 + $0x370] sm:$0xff]  ;;  %v5304_v62 = vpack.c.bf16 %v2776_v49, %v2775_v47  ;;  %v1302_v2 = vrot.slane %v6291_v52, %v5866_v56  ;;  %v2782_v47 = vld [vmem:[%s6825_s3 + $0x428] sm:$0xff] }
 0x2d3   :  { %v5306_v9 = vpack.c.bf16 %v2760_v63, %v2759_v60  ;;  %v2813_v49 = vld [vmem:[%s6825_s3 + $0x520] sm:$0xff]  ;;  %v2832_v60 = vld [vmem:[%s6825_s3 + $0x5b8] sm:$0xff]  ;;  %v2783_v63 = vld [vmem:[%s6825_s3 + $0x430] sm:$0xff] }
 0x2d4   :  { %3149 = vmatmul.mubr.f32.vlgmr.msra.gmra.mrb[12].mxu1 %v2635_v5  ;;  %5151 = vmatpush1.bf16.msra.mxu0 %v5150_v17  ;;  %v5294_v17 = vpack.c.bf16 %v2754_v12, %v2753_v59  ;;  %v5296_v5 = vpack.c.bf16 %v2772_v42, %v2771_v15  ;;  %v5308_v59 = vpack.c.bf16 %v2794_v1, %v2793_v24  ;;  %v2778_v12 = vld [vmem:[%s6825_s3 + $0x408] sm:$0xff]  ;;  %v2795_v42 = vld [vmem:[%s6825_s3 + $0x490] sm:$0xff]  ;;  %v2784_v24 = vld [vmem:[%s6825_s3 + $0x438] sm:$0xff] }
 0x2d5   :  { %5279 = vmatpush3.bf16.msra.mxu1 %v5278_v18  ;;  %3218 = vmatprep.mubr.f32.mxu1 %v2638_v44  ;;  %v5168_v18 = vpack.c.bf16 %v1184_v14, %v1166_v13  ;;  %v5170_v44 = vpack.c.bf16 %v1183_v20, %v1165_v19  ;;  %v2810_v15 = vld [vmem:[%s6825_s3 + $0x508] sm:$0xff]  ;;  %v2815_v1 = vld [vmem:[%s6825_s3 + $0x530] sm:$0xff] }
 0x2d6   :  { %5153 = vmatprep.subr.bf16.mxu0 %v5152_v34  ;;  %5281 = vmatprep.subr.bf16.mxu1 %v5280_v21  ;;  %v2756_v34 = vld [vmem:[%s6825_s3 + $0x358] sm:$0xff]  ;;  %v1202_v21 = vld [vmem:[#allocation5 + $0x2248] sm:$0xff] }
 0x2d7   :  { %v5298_v26 = vpack.c.bf16 %v2756_v34, %v2755_v10  ;;  %v5172_v27 = vpack.c.bf16 %v1220_v22, %v1202_v21  ;;  %v2811_v34 = vld [vmem:[%s6825_s3 + $0x510] sm:$0xff] }
 0x2d8   :  { %5155 = vmatpush1.bf16.msra.mxu0 %v5154_v28  ;;  %v1201_v28 = vld [vmem:[#allocation5 + $0x2240] sm:$0xff] }
 0x2d9   :  { %5283 = vmatpush3.bf16.msra.mxu1 %v5282_v29  ;;  %5157 = vmatprep.subr.bf16.mxu0 %v5156_v39  ;;  %v1219_v29 = vld [vmem:[#allocation5 + $0x22d0] sm:$0xff]  ;;  %v2757_v39 = vld [vmem:[%s6825_s3 + $0x360] sm:$0xff] }
 0x2da   :  { %5285 = vmatprep.subr.bf16.mxu1 %v5284_v37  ;;  %v1238_v37 = vld [vmem:[#allocation5 + $0x2368] sm:$0xff]  ;;  %v5174_v53 = vpack.c.bf16 %v1219_v29, %v1201_v28  ;;  %v2829_v28 = vld [vmem:[%s6825_s3 + $0x5a0] sm:$0xff] }
 0x2db   :  { %v2830_v29 = vld [vmem:[%s6825_s3 + $0x5a8] sm:$0xff] }
 0x2dc   :  { %5159 = vmatpush1.bf16.msra.mxu0 %v5158_v54  ;;  %v5302_v54 = vpack.c.bf16 %v2758_v36, %v2757_v39  ;;  %v5346_v36 = vpack.c.bf16 %v2812_v23, %v2811_v34  ;;  %v2819_v34 = vld [vmem:[%s6825_s3 + $0x550] sm:$0xff]  ;;  %v2806_v23 = vld [vmem:[%s6825_s3 + $0x4e8] sm:$0xff] }
 0x2dd   :  { %5287 = vmatpush3.bf16.msra.mxu1 %v5286_v55  ;;  %5161 = vmatprep.subr.bf16.mxu0 %v5160_v57  ;;  %v5176_v55 = vpack.c.bf16 %v1256_v46, %v1238_v37  ;;  %v1237_v57 = vld [vmem:[#allocation5 + $0x2360] sm:$0xff] }
 0x2de   :  { %5289 = vmatprep.subr.bf16.mxu1 %v5288_v61  ;;  %v1290_v61 = vrot.slane %v5543_v16, %v1289_v32  ;;  %v5178_v7 = vpack.c.bf16 %v1255_v58, %v1237_v57  ;;  %v2781_v46 = vld [vmem:[%s6825_s3 + $0x420] sm:$0xff]  ;;  %v2800_v57 = vld [vmem:[%s6825_s3 + $0x4b8] sm:$0xff]  ;;  %v2831_v58 = vld [vmem:[%s6825_s3 + $0x5b0] sm:$0xff] }
 0x2df   :  { %v5318_v16 = vpack.c.bf16 %v2782_v47, %v2781_v46  ;;  %v2807_v46 = vld [vmem:[%s6825_s3 + $0x4f0] sm:$0xff]  ;;  %v2808_v47 = vld [vmem:[%s6825_s3 + $0x4f8] sm:$0xff] }
 0x2e0   :  { %5163 = vmatpush1.bf16.msra.mxu0 %v5162_v3  ;;  %v2825_v3 = vld [vmem:[%s6825_s3 + $0x580] sm:$0xff]  ;;  %v5486_v13 = vadd.f32 %v5859_v8, %v1290_v61  ;;  %v2796_v8 = vld [vmem:[%s6825_s3 + $0x498] sm:$0xff] }
 0x2e1   :  { %5291 = vmatpush3.bf16.msra.mxu1 %v5290_v4  ;;  %5165 = vmatprep.subr.bf16.mxu0 %v5164_v6  ;;  %v2826_v4 = vld [vmem:[%s6825_s3 + $0x588] sm:$0xff]  ;;  %v1310_v6 = vrot.slane %v6291_v52, %v1277_v50  ;;  %v2809_v50 = vld [vmem:[%s6825_s3 + $0x500] sm:$0xff] }
 0x2e2   :  { %5293 = vmatprep.subr.bf16.mxu1 %v5292_v11  ;;  %v2777_v11 = vld [vmem:[%s6825_s3 + $0x400] sm:$0xff]  ;;  %v5340_v14 = vpack.c.bf16 %v2826_v4, %v2825_v3  ;;  %v5342_v10 = vpack.c.bf16 %v2810_v15, %v2809_v50  ;;  %v2637_v21 = vmax.f32 %v5486_v13, 0.0  ;;  %v2816_v3 = vld [vmem:[%s6825_s3 + $0x538] sm:$0xff] }
 0x2e3   :  { %v5491_v19 = vadd.f32 %v6184_v51, %v1310_v6  ;;  %v5310_v20 = vpack.c.bf16 %v2778_v12, %v2777_v11  ;;  %v5312_v51 = vpack.c.bf16 %v2796_v8, %v2795_v42  ;;  %v2801_v4 = vld [vmem:[%s6825_s3 + $0x4c0] sm:$0xff]  ;;  %v2802_v6 = vld [vmem:[%s6825_s3 + $0x4c8] sm:$0xff]  ;;  %v5354_v11 = vpack.c.bf16 %v2816_v3, %v2815_v1  ;;  %v2804_v8 = vld [vmem:[%s6825_s3 + $0x4d8] sm:$0xff] }
 0x2e4   :  { %5167 = vmatpush1.bf16.msra.mxu0 %v5166_v0  ;;  %v5489_v0 = vadd.f32 %v6174_v40, %v1302_v2  ;;  %v2779_v40 = vld [vmem:[%s6825_s3 + $0x410] sm:$0xff]  ;;  %v5352_v2 = vpack.c.bf16 %v2832_v60, %v2831_v58  ;;  %v5324_v12 = vpack.c.bf16 %v2802_v6, %v2801_v4  ;;  %v2785_v13 = vld [vmem:[%s6825_s3 + $0x440] sm:$0xff]  ;;  %v2818_v42 = vld [vmem:[%s6825_s3 + $0x548] sm:$0xff]  ;;  %v5336_v58 = vpack.c.bf16 %v2808_v47, %v2807_v46 }
 0x2e5   :  { %5295 = vmatpush3.bf16.msra.mxu1 %v5294_v17  ;;  %5169 = vmatprep.subr.bf16.mxu0 %v5168_v18  ;;  %v2827_v17 = vld [vmem:[%s6825_s3 + $0x590] sm:$0xff]  ;;  %v2828_v18 = vld [vmem:[%s6825_s3 + $0x598] sm:$0xff]  ;;  %v2642_v39 = vmax.f32 %v5491_v19, 0.0  ;;  %v2817_v50 = vld [vmem:[%s6825_s3 + $0x540] sm:$0xff] }
 0x2e6   :  { %5297 = vmatprep.subr.bf16.mxu1 %v5296_v5  ;;  %v2780_v5 = vld [vmem:[%s6825_s3 + $0x418] sm:$0xff]  ;;  %v5344_v22 = vpack.c.bf16 %v2828_v18, %v2827_v17  ;;  %v2835_v17 = vld [vmem:[%s6825_s3 + $0x5d0] sm:$0xff]  ;;  %v2857_v1 = vld [vmem:[%s6825_s3 + $0x680] sm:$0xff] }
 0x2e7   :  { %v2836_v18 = vld [vmem:[%s6825_s3 + $0x5d8] sm:$0xff]  ;;  %v2791_v60 = vld [vmem:[%s6825_s3 + $0x470] sm:$0xff]  ;;  %v2889_v3 = vld [vmem:[%s6825_s3 + $0x780] sm:$0xff] }
 0x2e8   :  { %5171 = vmatpush1.bf16.msra.mxu0 %v5170_v44  ;;  %v2798_v44 = vld [vmem:[%s6825_s3 + $0x4a8] sm:$0xff]  ;;  %v2895_v46 = vld [vmem:[%s6825_s3 + $0x7b0] sm:$0xff]  ;;  %v2896_v47 = vld [vmem:[%s6825_s3 + $0x7b8] sm:$0xff] }
 0x2e9   :  { %5299 = vmatpush3.bf16.msra.mxu1 %v5298_v26  ;;  %5173 = vmatprep.subr.bf16.mxu0 %v5172_v27  ;;  %v2640_v26 = vmax.f32 %v5489_v0, 0.0  ;;  %v5544_v27 = vld [vmem:[#allocation2 + $0x10] sm:$0xff]  ;;  %v5316_v37 = vpack.c.bf16 %v2798_v44, %v2797_v25  ;;  %v2837_v25 = vld [vmem:[%s6825_s3 + $0x5e0] sm:$0xff]  ;;  %v2838_v44 = vld [vmem:[%s6825_s3 + $0x5e8] sm:$0xff] }
 0x2ea   :  { %5301 = vmatprep.subr.bf16.mxu1 %v5300_v33  ;;  %v5314_v33 = vpack.c.bf16 %v2780_v5, %v2779_v40  ;;  %v2803_v0 = vld [vmem:[%s6825_s3 + $0x4d0] sm:$0xff]  ;;  %v2788_v5 = vld [vmem:[%s6825_s3 + $0x458] sm:$0xff] }
 0x2eb   :  { %v2787_v40 = vld [vmem:[%s6825_s3 + $0x450] sm:$0xff] }
 0x2ec   :  { %5175 = vmatpush1.bf16.msra.mxu0 %v5174_v53  ;;  %v5348_v53 = vpack.c.bf16 %v2830_v29, %v2829_v28  ;;  %v2789_v29 = vld [vmem:[%s6825_s3 + $0x460] sm:$0xff] }
 0x2ed   :  { %5303 = vmatpush3.bf16.msra.mxu1 %v5302_v54  ;;  %5177 = vmatprep.subr.bf16.mxu0 %v5176_v55  ;;  %v2814_v54 = vld [vmem:[%s6825_s3 + $0x528] sm:$0xff]  ;;  %v2799_v55 = vld [vmem:[%s6825_s3 + $0x4b0] sm:$0xff] }
 0x2ee   :  { %5305 = vmatprep.subr.bf16.mxu1 %v5304_v62  ;;  %v5350_v61 = vpack.c.bf16 %v2814_v54, %v2813_v49  ;;  %v5320_v62 = vpack.c.bf16 %v2800_v57, %v2799_v55  ;;  %v2839_v49 = vld [vmem:[%s6825_s3 + $0x5f0] sm:$0xff]  ;;  %v1298_v55 = vrot.slane %v6291_v52, %v5955_v45 }
 0x2f0   :  { %5179 = vmatpush1.bf16.msra.mxu0 %v5178_v7  ;;  %v2833_v7 = vld [vmem:[%s6825_s3 + $0x5c0] sm:$0xff]  ;;  %v5488_v6 = vadd.f32 %v6168_v31, %v1298_v55  ;;  %v2847_v55 = vld [vmem:[%s6825_s3 + $0x630] sm:$0xff] }
 0x2f1   :  { %5307 = vmatpush3.bf16.msra.mxu1 %v5306_v9  ;;  %5309 = vmatprep.subr.bf16.mxu0 %v5308_v59  ;;  %v2834_v9 = vld [vmem:[%s6825_s3 + $0x5c8] sm:$0xff]  ;;  %v5322_v59 = vpack.c.bf16 %v2784_v24, %v2783_v63  ;;  %v2824_v24 = vld [vmem:[%s6825_s3 + $0x578] sm:$0xff] }
 0x2f2   :  { %5341 = vmatprep.subr.bf16.mxu1 %v5340_v14  ;;  %v2786_v14 = vld [vmem:[%s6825_s3 + $0x448] sm:$0xff]  ;;  %v5356_v15 = vpack.c.bf16 %v2834_v9, %v2833_v7 }
 0x2f3   :  { %2625 = vmatmul.mubr.f32.vlgmr.msra.gmra.mrb[8].mxu0 %v5544_v27  ;;  %v5326_v19 = vpack.c.bf16 %v2786_v14, %v2785_v13  ;;  %v2874_v14 = vld [vmem:[%s6825_s3 + $0x708] sm:$0xff] }
 0x2f4   :  { %3219 = vmatmul.mubr.f32.vlgmr.msra.gmra.mrb[14].mxu1 %v2637_v21  ;;  %5311 = vmatpush3.bf16.msra.mxu0 %v5310_v20  ;;  %v5358_v20 = vpack.c.bf16 %v2818_v42, %v2817_v50  ;;  %v5360_v21 = vpack.c.bf16 %v2836_v18, %v2835_v17  ;;  %v2859_v50 = vld [vmem:[%s6825_s3 + $0x690] sm:$0xff] }
 0x2f5   :  { %3288 = vmatprep.mubr.f32.mxu0 %v2640_v26  ;;  %5343 = vmatpush3.bf16.msra.mxu1 %v5342_v10  ;;  %v5328_v10 = vpack.c.bf16 %v2804_v8, %v2803_v0  ;;  %v5330_v26 = vpack.c.bf16 %v2788_v5, %v2787_v40  ;;  %v2891_v42 = vld [vmem:[%s6825_s3 + $0x790] sm:$0xff]  ;;  %v2639_v8 = vmax.f32 %v5488_v6, 0.0  ;;  %v2881_v6 = vld [vmem:[%s6825_s3 + $0x740] sm:$0xff] }
 0x2f6   :  { %5313 = vmatprep.subr.bf16.mxu0 %v5312_v51  ;;  %5345 = vmatprep.subr.bf16.mxu1 %v5344_v22  ;;  %v2820_v51 = vld [vmem:[%s6825_s3 + $0x558] sm:$0xff]  ;;  %v2805_v22 = vld [vmem:[%s6825_s3 + $0x4e0] sm:$0xff] }
 0x2f7   :  { %3358 = vmatprep.mubr.f32.mxu1 %v2642_v39  ;;  %v5362_v27 = vpack.c.bf16 %v2820_v51, %v2819_v34  ;;  %v5332_v28 = vpack.c.bf16 %v2806_v23, %v2805_v22  ;;  %v2790_v39 = vld [vmem:[%s6825_s3 + $0x468] sm:$0xff]  ;;  %v2876_v34 = vld [vmem:[%s6825_s3 + $0x718] sm:$0xff]  ;;  %v2893_v22 = vld [vmem:[%s6825_s3 + $0x7a0] sm:$0xff] }
 0x2f8   :  { %5315 = vmatpush3.bf16.msra.mxu0 %v5314_v33  ;;  %v2821_v33 = vld [vmem:[%s6825_s3 + $0x560] sm:$0xff]  ;;  %v5334_v54 = vpack.c.bf16 %v2790_v39, %v2789_v29  ;;  %v2862_v51 = vld [vmem:[%s6825_s3 + $0x6a8] sm:$0xff] }
 0x2f9   :  { %5347 = vmatpush3.bf16.msra.mxu1 %v5346_v36  ;;  %5317 = vmatprep.subr.bf16.mxu0 %v5316_v37  ;;  %v5364_v36 = vpack.c.bf16 %v2838_v44, %v2837_v25  ;;  %v2822_v37 = vld [vmem:[%s6825_s3 + $0x568] sm:$0xff]  ;;  %v2877_v29 = vld [vmem:[%s6825_s3 + $0x720] sm:$0xff] }
 0x2fa   :  { %5349 = vmatprep.subr.bf16.mxu1 %v5348_v53  ;;  %v2840_v53 = vld [vmem:[%s6825_s3 + $0x5f8] sm:$0xff]  ;;  %v5366_v57 = vpack.c.bf16 %v2822_v37, %v2821_v33  ;;  %v2894_v23 = vld [vmem:[%s6825_s3 + $0x7a8] sm:$0xff] }
 0x2fb   :  { %v5368_v63 = vpack.c.bf16 %v2840_v53, %v2839_v49  ;;  %v5412_v39 = vpack.c.bf16 %v2894_v23, %v2893_v22  ;;  %v2878_v33 = vld [vmem:[%s6825_s3 + $0x728] sm:$0xff]  ;;  %v2864_v37 = vld [vmem:[%s6825_s3 + $0x6b8] sm:$0xff] }
 0x2fc   :  { %5319 = vmatpush3.bf16.msra.mxu0 %v5318_v16  ;;  %v2792_v16 = vld [vmem:[%s6825_s3 + $0x478] sm:$0xff]  ;;  %v5414_v53 = vpack.c.bf16 %v2878_v33, %v2877_v29  ;;  %v2886_v23 = vld [vmem:[%s6825_s3 + $0x768] sm:$0xff]  ;;  %v2855_v33 = vld [vmem:[%s6825_s3 + $0x670] sm:$0xff] }
 0x2fd   :  { %5351 = vmatpush3.bf16.msra.mxu1 %v5350_v61  ;;  %5321 = vmatprep.subr.bf16.mxu0 %v5320_v62  ;;  %v2823_v61 = vld [vmem:[%s6825_s3 + $0x570] sm:$0xff]  ;;  %v1306_v62 = vrot.slane %v6291_v52, %v1273_v35  ;;  %v2890_v35 = vld [vmem:[%s6825_s3 + $0x788] sm:$0xff]  ;;  %v5338_v4 = vpack.c.bf16 %v2792_v16, %v2791_v60  ;;  %v5416_v60 = vpack.c.bf16 %v2896_v47, %v2895_v46  ;;  %v2880_v16 = vld [vmem:[%s6825_s3 + $0x738] sm:$0xff] }
 0x2fe   :  { %5353 = vmatprep.subr.bf16.mxu1 %v5352_v2  ;;  %v2858_v2 = vld [vmem:[%s6825_s3 + $0x688] sm:$0xff]  ;;  %v5370_v7 = vpack.c.bf16 %v2824_v24, %v2823_v61  ;;  %v5404_v31 = vpack.c.bf16 %v2890_v35, %v2889_v3  ;;  %v2865_v61 = vld [vmem:[%s6825_s3 + $0x6c0] sm:$0xff]  ;;  %v2887_v46 = vld [vmem:[%s6825_s3 + $0x770] sm:$0xff] }
 0x2ff   :  { %v5372_v9 = vpack.c.bf16 %v2858_v2, %v2857_v1  ;;  %v5490_v13 = vadd.f32 %v6182_v48, %v1306_v62  ;;  %v2892_v48 = vld [vmem:[%s6825_s3 + $0x798] sm:$0xff]  ;;  %v2866_v62 = vld [vmem:[%s6825_s3 + $0x6c8] sm:$0xff]  ;;  %v2849_v35 = vld [vmem:[%s6825_s3 + $0x640] sm:$0xff] }
 0x300   :  { %5323 = vmatpush3.bf16.msra.mxu0 %v5322_v59  ;;  %v2841_v59 = vld [vmem:[%s6825_s3 + $0x600] sm:$0xff]  ;;  %v5408_v5 = vpack.c.bf16 %v2892_v48, %v2891_v42  ;;  %v2898_v24 = vld [vmem:[%s6825_s3 + $0x7c8] sm:$0xff]  ;;  %v5388_v3 = vpack.c.bf16 %v2866_v62, %v2865_v61  ;;  %v2852_v42 = vld [vmem:[%s6825_s3 + $0x658] sm:$0xff]  ;;  %v1326_v61 = vrot.slane %v6291_v52, %v1293_v38 }
 0x301   :  { %5355 = vmatpush3.bf16.msra.mxu1 %v5354_v11  ;;  %5325 = vmatprep.subr.bf16.mxu0 %v5324_v12  ;;  %v2842_v11 = vld [vmem:[%s6825_s3 + $0x608] sm:$0xff]  ;;  %v2873_v12 = vld [vmem:[%s6825_s3 + $0x700] sm:$0xff]  ;;  %v2641_v40 = vmax.f32 %v5490_v13, 0.0  ;;  %v2900_v13 = vld [vmem:[%s6825_s3 + $0x7d8] sm:$0xff] }
 0x302   :  { %5357 = vmatprep.subr.bf16.mxu1 %v5356_v15  ;;  %v2860_v15 = vld [vmem:[%s6825_s3 + $0x698] sm:$0xff]  ;;  %v5374_v0 = vpack.c.bf16 %v2842_v11, %v2841_v59  ;;  %v5406_v17 = vpack.c.bf16 %v2874_v14, %v2873_v12  ;;  %v2867_v59 = vld [vmem:[%s6825_s3 + $0x6d0] sm:$0xff] }
 0x303   :  { %v5376_v18 = vpack.c.bf16 %v2860_v15, %v2859_v50  ;;  %v2868_v11 = vld [vmem:[%s6825_s3 + $0x6d8] sm:$0xff]  ;;  %v2899_v12 = vld [vmem:[%s6825_s3 + $0x7d0] sm:$0xff] }
 0x304   :  { %5327 = vmatpush3.bf16.msra.mxu0 %v5326_v19  ;;  %v2843_v19 = vld [vmem:[%s6825_s3 + $0x610] sm:$0xff]  ;;  %v5392_v50 = vpack.c.bf16 %v2868_v11, %v2867_v59  ;;  %v2888_v47 = vld [vmem:[%s6825_s3 + $0x778] sm:$0xff] }
 0x305   :  { %5359 = vmatpush3.bf16.msra.mxu1 %v5358_v20  ;;  %5329 = vmatprep.subr.bf16.mxu0 %v5328_v10  ;;  %v2844_v20 = vld [vmem:[%s6825_s3 + $0x618] sm:$0xff]  ;;  %v2875_v10 = vld [vmem:[%s6825_s3 + $0x710] sm:$0xff] }
 0x306   :  { %5361 = vmatprep.subr.bf16.mxu1 %v5360_v21  ;;  %v2861_v21 = vld [vmem:[%s6825_s3 + $0x6a0] sm:$0xff]  ;;  %v5378_v25 = vpack.c.bf16 %v2844_v20, %v2843_v19  ;;  %v5410_v44 = vpack.c.bf16 %v2876_v34, %v2875_v10  ;;  %v2851_v15 = vld [vmem:[%s6825_s3 + $0x650] sm:$0xff]  ;;  %v2902_v20 = vld [vmem:[%s6825_s3 + $0x7e8] sm:$0xff] }
 0x307   :  { %v2883_v48 = vld [vmem:[%s6825_s3 + $0x750] sm:$0xff]  ;;  %v2901_v19 = vld [vmem:[%s6825_s3 + $0x7e0] sm:$0xff]  ;;  %v5394_v10 = vpack.c.bf16 %v2852_v42, %v2851_v15  ;;  %v2924_v38 = vld [vmem:[%s6825_s3 + $0x898] sm:$0xff] }
 0x308   :  { %5331 = vmatpush3.bf16.msra.mxu0 %v5330_v26  ;;  %v5380_v26 = vpack.c.bf16 %v2862_v51, %v2861_v21  ;;  %v2853_v34 = vld [vmem:[%s6825_s3 + $0x660] sm:$0xff]  ;;  %v2854_v21 = vld [vmem:[%s6825_s3 + $0x668] sm:$0xff]  ;;  %v5428_v22 = vpack.c.bf16 %v2902_v20, %v2901_v19  ;;  %v5440_v59 = vpack.c.bf16 %v2924_v38, %v2923_v41  ;;  %v2907_v11 = vld [vmem:[%s6825_s3 + $0x810] sm:$0xff] }
 0x309   :  { %5363 = vmatpush3.bf16.msra.mxu1 %v5362_v27  ;;  %5333 = vmatprep.subr.bf16.mxu0 %v5332_v28  ;;  %v2845_v27 = vld [vmem:[%s6825_s3 + $0x620] sm:$0xff]  ;;  %v2846_v28 = vld [vmem:[%s6825_s3 + $0x628] sm:$0xff]  ;;  %v2912_v19 = vld [vmem:[%s6825_s3 + $0x838] sm:$0xff] }
 0x30a   :  { %5365 = vmatprep.subr.bf16.mxu1 %v5364_v36  ;;  %v2863_v36 = vld [vmem:[%s6825_s3 + $0x6b0] sm:$0xff]  ;;  %v5382_v49 = vpack.c.bf16 %v2846_v28, %v2845_v27  ;;  %v2885_v51 = vld [vmem:[%s6825_s3 + $0x760] sm:$0xff]  ;;  %v2904_v27 = vld [vmem:[%s6825_s3 + $0x7f8] sm:$0xff]  ;;  %v5398_v28 = vpack.c.bf16 %v2854_v21, %v2853_v34 }
 0x30b   :  { %v5430_v29 = vpack.c.bf16 %v2886_v23, %v2885_v51  ;;  %v2909_v15 = vld [vmem:[%s6825_s3 + $0x820] sm:$0xff]  ;;  %v2910_v42 = vld [vmem:[%s6825_s3 + $0x828] sm:$0xff]  ;;  %v2931_v51 = vld [vmem:[%s6825_s3 + $0x8d0] sm:$0xff] }
 0x30c   :  { %5335 = vmatpush3.bf16.msra.mxu0 %v5334_v54  ;;  %v5384_v54 = vpack.c.bf16 %v2864_v37, %v2863_v36  ;;  %v2856_v36 = vld [vmem:[%s6825_s3 + $0x678] sm:$0xff]  ;;  %v2929_v20 = vld [vmem:[%s6825_s3 + $0x8c0] sm:$0xff]  ;;  %v2914_v21 = vld [vmem:[%s6825_s3 + $0x848] sm:$0xff] }
 0x30d   :  { %5367 = vmatpush3.bf16.msra.mxu1 %v5366_v57  ;;  %5337 = vmatprep.subr.bf16.mxu0 %v5336_v58  ;;  %v2848_v57 = vld [vmem:[%s6825_s3 + $0x638] sm:$0xff]  ;;  %v2879_v58 = vld [vmem:[%s6825_s3 + $0x730] sm:$0xff]  ;;  %v2913_v34 = vld [vmem:[%s6825_s3 + $0x840] sm:$0xff] }
 0x30e   :  { %5369 = vmatprep.subr.bf16.mxu1 %v5368_v63  ;;  %v2897_v63 = vld [vmem:[%s6825_s3 + $0x7c0] sm:$0xff]  ;;  %v5386_v1 = vpack.c.bf16 %v2848_v57, %v2847_v55  ;;  %v5418_v2 = vpack.c.bf16 %v2880_v16, %v2879_v58  ;;  %v5434_v55 = vpack.c.bf16 %v2888_v47, %v2887_v46  ;;  %v1314_v58 = vrot.slane %v6291_v52, %v1281_v30  ;;  %v2936_v46 = vld [vmem:[%s6825_s3 + $0x8f8] sm:$0xff]  ;;  %v3577_v38 = vld [vmem:[#allocation10 + $0x18] sm:$0xff] }
 0x30f   :  { %v1322_v16 = vrot.slane %v6291_v52, %v1289_v32  ;;  %v2905_v30 = vld [vmem:[%s6825_s3 + $0x800] sm:$0xff]  ;;  %v5454_v23 = vpack.c.bf16 %v2914_v21, %v2913_v34 }
 0x310   :  { %5339 = vmatpush3.bf16.msra.mxu0 %v5338_v4  ;;  %v2850_v4 = vld [vmem:[%s6825_s3 + $0x648] sm:$0xff] }
 0x311   :  { %5371 = vmatpush3.bf16.msra.mxu1 %v5370_v7  ;;  %5373 = vmatprep.subr.bf16.mxu0 %v5372_v9  ;;  %v5420_v7 = vpack.c.bf16 %v2898_v24, %v2897_v63  ;;  %v2882_v9 = vld [vmem:[%s6825_s3 + $0x748] sm:$0xff] }
 0x312   :  { %5405 = vmatprep.subr.bf16.mxu1 %v5404_v31  ;;  %v5390_v31 = vpack.c.bf16 %v2850_v4, %v2849_v35  ;;  %v5422_v14 = vpack.c.bf16 %v2882_v9, %v2881_v6 }
 0x313   :  { %3289 = vmatmul.mubr.f32.vlgmr.msra.gmra.mrb[10].mxu0 %v2639_v8  ;;  %v2884_v8 = vld [vmem:[%s6825_s3 + $0x758] sm:$0xff] }
 0x314   :  { %3359 = vmatmul.mubr.f32.vlgmr.msra.gmra.mrb[16].mxu1 %v2641_v40  ;;  %5375 = vmatpush3.bf16.msra.mxu0 %v5374_v0  ;;  %v5424_v0 = vpack.c.bf16 %v2900_v13, %v2899_v12  ;;  %v5426_v40 = vpack.c.bf16 %v2884_v8, %v2883_v48  ;;  %v2908_v12 = vld [vmem:[%s6825_s3 + $0x818] sm:$0xff]  ;;  %v2925_v13 = vld [vmem:[%s6825_s3 + $0x8a0] sm:$0xff]  ;;  %v2927_v48 = vld [vmem:[%s6825_s3 + $0x8b0] sm:$0xff]  ;;  %v5446_v8 = vpack.c.bf16 %v2910_v42, %v2909_v15 }
 0x315   :  { %5407 = vmatpush3.bf16.msra.mxu1 %v5406_v17  ;;  %5377 = vmatprep.subr.bf16.mxu0 %v5376_v18  ;;  %v2869_v17 = vld [vmem:[%s6825_s3 + $0x6e0] sm:$0xff]  ;;  %v2870_v18 = vld [vmem:[%s6825_s3 + $0x6e8] sm:$0xff] }
 0x316   :  { %5409 = vmatprep.subr.bf16.mxu1 %v5408_v5  ;;  %v5396_v5 = vpack.c.bf16 %v2870_v18, %v2869_v17  ;;  %v2911_v18 = vld [vmem:[%s6825_s3 + $0x830] sm:$0xff] }
 0x318   :  { %5379 = vmatpush3.bf16.msra.mxu0 %v5378_v25  ;;  %v2871_v25 = vld [vmem:[%s6825_s3 + $0x6f0] sm:$0xff] }
 0x319   :  { %5411 = vmatpush3.bf16.msra.mxu1 %v5410_v44  ;;  %5381 = vmatprep.subr.bf16.mxu0 %v5380_v26  ;;  %v2872_v44 = vld [vmem:[%s6825_s3 + $0x6f8] sm:$0xff]  ;;  %v2903_v26 = vld [vmem:[%s6825_s3 + $0x7f0] sm:$0xff] }
 0x31a   :  { %5413 = vmatprep.subr.bf16.mxu1 %v5412_v39  ;;  %v5400_v39 = vpack.c.bf16 %v2872_v44, %v2871_v25  ;;  %v5432_v37 = vpack.c.bf16 %v2904_v27, %v2903_v26  ;;  %v2915_v44 = vld [vmem:[%s6825_s3 + $0x850] sm:$0xff]  ;;  %v2916_v26 = vld [vmem:[%s6825_s3 + $0x858] sm:$0xff]  ;;  %v2933_v27 = vld [vmem:[%s6825_s3 + $0x8e0] sm:$0xff] }
 0x31c   :  { %5383 = vmatpush3.bf16.msra.mxu0 %v5382_v49  ;;  %v2921_v49 = vld [vmem:[%s6825_s3 + $0x880] sm:$0xff] }
 0x31d   :  { %5415 = vmatpush3.bf16.msra.mxu1 %v5414_v53  ;;  %5385 = vmatprep.subr.bf16.mxu0 %v5384_v54  ;;  %v2922_v53 = vld [vmem:[%s6825_s3 + $0x888] sm:$0xff]  ;;  %v5402_v54 = vpack.c.bf16 %v2856_v36, %v2855_v33  ;;  %v2917_v33 = vld [vmem:[%s6825_s3 + $0x860] sm:$0xff] }
 0x31e   :  { %5417 = vmatprep.subr.bf16.mxu1 %v5416_v60  ;;  %v5436_v57 = vpack.c.bf16 %v2922_v53, %v2921_v49  ;;  %v1318_v60 = vrot.slane %v6291_v52, %v1285_v43  ;;  %v2906_v43 = vld [vmem:[%s6825_s3 + $0x808] sm:$0xff]  ;;  %v2919_v53 = vld [vmem:[%s6825_s3 + $0x870] sm:$0xff] }
 0x31f   :  { %v5438_v6 = vpack.c.bf16 %v2906_v43, %v2905_v30  ;;  %v2918_v36 = vld [vmem:[%s6825_s3 + $0x868] sm:$0xff]  ;;  %v3574_v30 = vld [vmem:[#allocation10] sm:$0xff]  ;;  %v3575_v43 = vld [vmem:[#allocation10 + $0x8] sm:$0xff] }
 0x320   :  { %5387 = vmatpush3.bf16.msra.mxu0 %v5386_v1  ;;  %v5462_v47 = vpack.c.bf16 %v2918_v36, %v2917_v33  ;;  %v5469_v41 = vpack.c.bf16 %v3575_v43, %v3574_v30 }
 0x321   :  { %5419 = vmatpush3.bf16.msra.mxu1 %v5418_v2  ;;  %5389 = vmatprep.subr.bf16.mxu0 %v5388_v3 }
 0x322   :  { %5421 = vmatprep.subr.bf16.mxu1 %v5420_v7 }
 0x324   :  { %5391 = vmatpush3.bf16.msra.mxu0 %v5390_v31  ;;  %v2926_v31 = vld [vmem:[%s6825_s3 + $0x8a8] sm:$0xff] }
 0x325   :  { %5423 = vmatpush3.bf16.msra.mxu1 %v5422_v14  ;;  %5393 = vmatprep.subr.bf16.mxu0 %v5392_v50  ;;  %v5442_v14 = vpack.c.bf16 %v2908_v12, %v2907_v11  ;;  %v5444_v50 = vpack.c.bf16 %v2926_v31, %v2925_v13  ;;  %v1259_v11 = vld [vmem:[#allocation7 + $0x10] sm:$0x3] }
 0x326   :  { %5425 = vmatprep.subr.bf16.mxu1 %v5424_v0  ;;  %v2928_v0 = vld [vmem:[%s6825_s3 + $0x8b8] sm:$0xff]  ;;  %v1330_v12 = vrot.slane %v1259_v11, %v5955_v45  ;;  %v1334_v13 = vrot.slane %v1259_v11, %v5866_v56 }
 0x327   :  { %v5448_v17 = vpack.c.bf16 %v2928_v0, %v2927_v48 }
 0x328   :  { %5395 = vmatpush3.bf16.msra.mxu0 %v5394_v10  ;;  %v2930_v10 = vld [vmem:[%s6825_s3 + $0x8c8] sm:$0xff] }
 0x329   :  { %5427 = vmatpush3.bf16.msra.mxu1 %v5426_v40  ;;  %5397 = vmatprep.subr.bf16.mxu0 %v5396_v5  ;;  %v5450_v40 = vpack.c.bf16 %v2912_v19, %v2911_v18  ;;  %v5452_v5 = vpack.c.bf16 %v2930_v10, %v2929_v20 }
 0x32a   :  { %5429 = vmatprep.subr.bf16.mxu1 %v5428_v22  ;;  %v2932_v22 = vld [vmem:[%s6825_s3 + $0x8d8] sm:$0xff] }
 0x32b   :  { %v5456_v25 = vpack.c.bf16 %v2932_v22, %v2931_v51 }
 0x32c   :  { %5399 = vmatpush3.bf16.msra.mxu0 %v5398_v28  ;;  %v2934_v28 = vld [vmem:[%s6825_s3 + $0x8e8] sm:$0xff] }
 0x32d   :  { %5431 = vmatpush3.bf16.msra.mxu1 %v5430_v29  ;;  %5401 = vmatprep.subr.bf16.mxu0 %v5400_v39  ;;  %v5458_v29 = vpack.c.bf16 %v2916_v26, %v2915_v44  ;;  %v5460_v39 = vpack.c.bf16 %v2934_v28, %v2933_v27 }
 0x32e   :  { %5433 = vmatprep.subr.bf16.mxu1 %v5432_v37  ;;  %v2935_v37 = vld [vmem:[%s6825_s3 + $0x8f0] sm:$0xff] }
 0x32f   :  { %v5464_v49 = vpack.c.bf16 %v2936_v46, %v2935_v37 }
 0x330   :  { %5403 = vmatpush3.bf16.msra.mxu0 %v5402_v54  ;;  %v2920_v54 = vld [vmem:[%s6825_s3 + $0x878] sm:$0xff]  ;;  %s5722_s3 = smov [#allocation13]  }
 0x331   :  { %5435 = vmatpush3.bf16.msra.mxu1 %v5434_v55  ;;  %5437 = vmatprep.subr.bf16.mxu0 %v5436_v57  ;;  %v5466_v55 = vpack.c.bf16 %v2920_v54, %v2919_v53  ;;  %s3670_s26 = sshll.u32 %s5722_s3, 4  ;;  %s3671_s26 = int_to_ptr.vmem [resolvable:$true] %s3670_s26 }
 0x332   :  { %s5677_s5 = scalar_lea.vmem %s3671_s26, 128  ;;  %p5682_p7 = scmp.lt.s32.totalorder %s3671_s26, %s3671_s26 }
 0x333   :  { %p5678_p6 = scmp.ne.s32.totalorder %s3671_s26, %s5677_s5  ;;  %p5683_p8 = scmp.lt.s32.totalorder %s5677_s5, %s5677_s5 }
 0x335   :  { %p5684_p9 = por %p5683_p8, %p5682_p7 }
 0x337   :  { %p5685_p10 = pnand %p5684_p9, %p5678_p6 }
 0x346   :  { %v2342_v62 = vpop.f32.mrb[6].mxu0 }
 0x347   :  { %v5492_v63 = vadd.f32 %v2342_v62, %v1314_v58  ;;  %v2344_v24 = vpop.f32.mrb[7].mxu0  ;;  %v2484_v1 = vpop.f32.mrb[6].mxu1 }
 0x348   :  { %v5493_v2 = vadd.f32 %v2344_v24, %v1318_v60  ;;  %v5494_v3 = vadd.f32 %v2484_v1, %v1322_v16  ;;  %v2486_v35 = vpop.f32.mrb[7].mxu1  ;;  %v3682_v16 = vld [vmem:[#allocation8] ss:$0 sm:$0xff] }
 0x349   :  { %v5495_v32 = vadd.f32 %v2486_v35, %v1326_v61  ;;  %v2643_v7 = vmax.f32 %v5492_v63, 0.0  ;;  %v5719_v35 = vmov 0.0|0.0  }
 0x34a   :  { %v2644_v52 = vmax.f32 %v5493_v2, 0.0  ;;  %v2645_v4 = vmax.f32 %v5494_v3, 0.0  ;;  %v3576_v2 = vld [vmem:[#allocation10 + $0x10] sm:$0xff]  ;;  %5468 = vmatprep.subr.bf16.mxu1 %v5719_v35 }
 0x34b   :  { %v2646_v9 = vmax.f32 %v5495_v32, 0.0 }
 0x34c   :  { %3428 = vmatprep.mubr.f32.mxu0 %v2644_v52 }
 0x34d   :  { %3429 = vmatmul.mubr.f32.vlgmr.msra.gmra.mrb[12].mxu0 %v2643_v7  ;;  %3498 = vmatprep.mubr.f32.mxu1 %v2646_v9  ;;  %v3579_v7 = vld [vmem:[#allocation10 + $0x28] sm:$0xff] }
 0x34e   :  { %3499 = vmatmul.mubr.f32.vlgmr.msra.gmra.mrb[18].mxu1 %v2645_v4  ;;  %5439 = vmatpush3.bf16.msra.mxu0 %v5438_v6  ;;  %v5472_v4 = vpack.c.bf16 %v3577_v38, %v3576_v2  ;;  %v3578_v6 = vld [vmem:[#allocation10 + $0x20] sm:$0xff] }
 0x34f   :  { %5441 = vmatprep.subr.bf16.mxu0 %v5440_v59  ;;  %5470 = vmatpush3.bf16.msra.mxu1 %v5469_v41  ;;  %v5475_v59 = vpack.c.bf16 %v3579_v7, %v3578_v6 }
 0x350   :  { %5471 = vmatprep.subr.bf16.mxu1 %v5719_v35 }
 0x352   :  { %5443 = vmatpush3.bf16.msra.mxu0 %v5442_v14 }
 0x353   :  { %5445 = vmatprep.subr.bf16.mxu0 %v5444_v50  ;;  %5473 = vmatpush3.bf16.msra.mxu1 %v5472_v4 }
 0x354   :  { %5474 = vmatprep.subr.bf16.mxu1 %v5719_v35 }
 0x356   :  { %5447 = vmatpush3.bf16.msra.mxu0 %v5446_v8 }
 0x357   :  { %5449 = vmatprep.subr.bf16.mxu0 %v5448_v17  ;;  %5476 = vmatpush3.bf16.msra.mxu1 %v5475_v59 }
 0x358   :  { %5477 = vmatprep.subr.bf16.mxu1 %v5719_v35 }
 0x35a   :  { %5451 = vmatpush3.bf16.msra.mxu0 %v5450_v40 }
 0x35b   :  { %5453 = vmatprep.subr.bf16.mxu0 %v5452_v5 }
 0x35e   :  { %5455 = vmatpush3.bf16.msra.mxu0 %v5454_v23  ;;  %v3580_v23 = vld [vmem:[#allocation10 + $0x30] sm:$0xff] }
 0x35f   :  { %5457 = vmatprep.subr.bf16.mxu0 %v5456_v25  ;;  %v3581_v25 = vld [vmem:[#allocation10 + $0x38] sm:$0xff] }
 0x360   :  { %v5478_v27 = vpack.c.bf16 %v3581_v25, %v3580_v23 }
 0x362   :  { %5459 = vmatpush3.bf16.msra.mxu0 %v5458_v29  ;;  %5479 = vmatpush3.bf16.msra.mxu1 %v5478_v27 }
 0x363   :  { %5461 = vmatprep.subr.bf16.mxu0 %v5460_v39  ;;  %v5721_v39 = vmov 0.0  }
 0x364   :  { %4025 = vmatprep.mubr.msk.f32.mxu1 %vm5720_vm0, %v5721_v39 }
 0x366   :  { %5463 = vmatpush3.bf16.msra.mxu0 %v5462_v47 }
 0x367   :  { %v3717_v57 = vpop.f32.mrb[8].mxu1  ;;  %5465 = vmatprep.subr.bf16.mxu0 %v5464_v49  ;;  %v3683_v49 = vld [vmem:[#allocation11] ss:$0 sm:$0xff] }
 0x368   :  { %v3718_v58 = vpop.f32.mrb[9].mxu1 }
 0x369   :  { %v3719_v60 = vadd.f32 %v3718_v58, %v3717_v57 }
 0x36a   :  { %5467 = vmatpush3.bf16.msra.mxu0 %v5466_v55 }
 0x36b   :  { %v3011_v63 = vadd.f32 %v3719_v60, %v3682_v16 }
 0x387   :  { %v3752_v61 = vpop.f32.mrb[10].mxu1 }
 0x388   :  { %v3753_v62 = vpop.f32.mrb[11].mxu1 }
 0x389   :  { %v3754_v24 = vadd.f32 %v3753_v62, %v3752_v61 }
 0x38b   :  { %v3081_v1 = vadd.f32 %v3754_v24, %v3011_v63 }
 0x3a7   :  { %v3787_v3 = vpop.f32.mrb[12].mxu1 }
 0x3a8   :  { %v3788_v32 = vpop.f32.mrb[13].mxu1 }
 0x3a9   :  { %v3789_v52 = vadd.f32 %v3788_v32, %v3787_v3 }
 0x3ab   :  { %v3151_v9 = vadd.f32 %v3789_v52, %v3081_v1 }
 0x3c6   :  { %v2626_v31 = vpop.f32.mrb[8].mxu0 }
 0x3c7   :  { %v5496_v14 = vadd.f32 %v2626_v31, %v1330_v12  ;;  %v3822_v50 = vpop.f32.mrb[14].mxu1  ;;  %v2628_v15 = vpop.f32.mrb[9].mxu0 }
 0x3c8   :  { %v5497_v42 = vadd.f32 %v2628_v15, %v1334_v13  ;;  %v3823_v48 = vpop.f32.mrb[15].mxu1 }
 0x3c9   :  { %v3824_v0 = vadd.f32 %v3823_v48, %v3822_v50  ;;  %v2647_v17 = vmax.f32 %v5496_v14, 0.0 }
 0x3ca   :  { %v2648_v8 = vmax.f32 %v5497_v42, 0.0 }
 0x3cb   :  { %v3221_v18 = vadd.f32 %v3824_v0, %v3151_v9 }
 0x3cc   :  { %3568 = vmatprep.mubr.f32.mxu0 %v2648_v8 }
 0x3cd   :  { %3569 = vmatmul.mubr.f32.vlgmr.msra.gmra.mrb[14].mxu0 %v2647_v17 }
 0x3e6   :  { %v3857_v19 = vpop.f32.mrb[10].mxu0 }
 0x3e7   :  { %v3892_v20 = vpop.f32.mrb[16].mxu1  ;;  %v3858_v10 = vpop.f32.mrb[11].mxu0 }
 0x3e8   :  { %v3859_v40 = vadd.f32 %v3858_v10, %v3857_v19  ;;  %v3893_v5 = vpop.f32.mrb[17].mxu1 }
 0x3e9   :  { %v3894_v45 = vadd.f32 %v3893_v5, %v3892_v20 }
 0x3ea   :  { %v3291_v34 = vadd.f32 %v3859_v40, %v3221_v18 }
 0x3ec   :  { %v3361_v56 = vadd.f32 %v3894_v45, %v3291_v34 }
 0x420   :  { %v3927_v21 = vpop.f32.mrb[12].mxu0 }
 0x421   :  { %v3928_v51 = vpop.f32.mrb[13].mxu0  ;;  %v3962_v22 = vpop.f32.mrb[18].mxu1 }
 0x422   :  { %v3929_v44 = vadd.f32 %v3928_v51, %v3927_v21  ;;  %v3963_v26 = vpop.f32.mrb[19].mxu1 }
 0x423   :  { %v3964_v28 = vadd.f32 %v3963_v26, %v3962_v22 }
 0x424   :  { %v3431_v29 = vadd.f32 %v3929_v44, %v3361_v56 }
 0x426   :  { %v3501_v33 = vadd.f32 %v3964_v28, %v3431_v29 }
 0x4a0   :  { %v3997_v36 = vpop.f32.mrb[14].mxu0 }
 0x4a1   :  { %v3998_v37 = vpop.f32.mrb[15].mxu0 }
 0x4a2   :  { %v3999_v46 = vadd.f32 %v3998_v37, %v3997_v36 }
 0x4a4   :  { %v3571_v47 = vadd.f32 %v3999_v46, %v3501_v33 }
 0x4a6   :  { %4026 = vmatmul.mubr.msk.f32.vlgmr.msra.gmra.mrb[20].mxu1 %vm3589_vm1, %v3571_v47 }
 0x579   :  { %v3659_v53 = vpop.f32.mrb[20].mxu1 }
 0x57a   :  { %v3660_v54 = vadd.f32 %v3683_v49, %v3659_v53  ;;  %v4027_v55 = vpop.f32.mrb[21].mxu1 }
 0x57c   :  { %3663 = vst [vmem:[#allocation13] sm:$0xff] %v3660_v54 }
 0x57d   :  { %5688 = shalt.err (!%p5685_p10)
}
 0x57e   :  { %s5689_s6 = scalar_lea.hbm %s6829_s7, 128 }
 0x57f   :  { %p5690_p11 = scmp.ne.s32.totalorder %s6829_s7, %s5689_s6  ;;  %p5693_p12 = scmp.lt.u32.totalorder %s5689_s6, %s6829_s7 }
 0x581   :  { %p5695_p13 = pnand %p5693_p12, %p5690_p11 }
 0x583   :  { %5698 = shalt.err (!%p5695_p13)
}
 0x584   :  { %3673 = dma.vmem_to_hbm [thread:$0]  %s3671_s26, 128, %s6829_s7, [#allocation4]  }
 0x585   :  { %5707 = dma.done.wait [#allocation4], 128  }
 0x586   :  { %5708 = vsyncadd [#allocation4], 4294967168 }
 0x587   :  { %3677 = vsyncpa [#allocation3], 1 }
 0x588   :  { %3678 = vsyncpa [#allocation6], 1 }
 0x589   :  { %3679 = vsyncpa [#allocation9], 1 }
 0x58a   :  { %3680 = vsyncpa [#allocation12], 1 }
 0x58b   :  { %3681 = vsyncpa [#allocation4], 1 }

</bundles_post_ra>
